<compile_context>
chip_gen: v6e
topology: v6e:2x2x1
jax: 0.10.0
libtpu: 0.0.40
codegen_flags: <defaults>
</compile_context>

<pallas_src>
import functools

import jax
import jax.numpy as jnp
from jax import lax
from jax.experimental import pallas as pl
from jax.experimental.pallas import tpu as pltpu


# ---------------------------------------------------------------------------
# Kernel 1: LeakyReLU(0.2) -> Conv2d(k=4, s=2, p=1, bias=False)
#           16 taps accumulated in-kernel, polyphase input, bf16 MXU / f32 acc.
# ---------------------------------------------------------------------------
def _down_kernel(xph_ref, wd_ref, h_ref, *, Ho, Wo, Cin, Cout):
    # xph_ref: (4, Ho+1, Wo+1, Cin)  polyphase view of the zero-padded input (per batch)
    # wd_ref : (16, Cin, Cout)       bf16, one (Cin, Cout) matrix per 4x4 tap
    # h_ref  : (Ho, Wo, Cout)        f32
    x = xph_ref[...]
    # LeakyReLU(0.2) in f32, single bf16 cast hoisted out of the tap loop.
    xb = jnp.where(x >= 0, x, 0.2 * x).astype(jnp.bfloat16)
    acc = jnp.zeros((Ho * Wo, Cout), jnp.float32)
    for kh in range(4):                        # unrolled: 16 shifted tap matmuls
        for kw in range(4):
            r, s = kh % 2, kw % 2
            a, b = kh // 2, kw // 2
            patch = xb[2 * r + s, a:a + Ho, b:b + Wo, :].reshape(Ho * Wo, Cin)
            acc = acc + jnp.dot(patch, wd_ref[kh * 4 + kw],
                                preferred_element_type=jnp.float32)
    h_ref[...] = acc.reshape(Ho, Wo, Cout)


def down_conv(xph, wd_taps, Ho, Wo):
    N = xph.shape[0]
    Hp, Wp, Cin = xph.shape[2], xph.shape[3], xph.shape[4]
    Cout = wd_taps.shape[2]
    kernel = functools.partial(_down_kernel, Ho=Ho, Wo=Wo, Cin=Cin, Cout=Cout)
    return pl.pallas_call(
        kernel,
        out_shape=jax.ShapeDtypeStruct((N, Ho, Wo, Cout), jnp.float32),
        grid=(N,),
        in_specs=[
            pl.BlockSpec((None, 4, Hp, Wp, Cin), lambda n: (n, 0, 0, 0, 0)),
            pl.BlockSpec((16, Cin, Cout), lambda n: (0, 0, 0)),
        ],
        out_specs=pl.BlockSpec((None, Ho, Wo, Cout), lambda n: (n, 0, 0, 0)),
        compiler_params=pltpu.CompilerParams(dimension_semantics=("parallel",)),
    )(xph, wd_taps)


# ---------------------------------------------------------------------------
# Kernel 2: ReLU -> ConvTranspose2d(k=4, s=2, p=1, bias=False)
#           sub-pixel decomposition (4 parities x 4 taps on un-dilated h),
#           BatchNorm sum / sum-of-squares fused into the epilogue.
# ---------------------------------------------------------------------------
def _up_kernel(hp_ref, wu_ref, y_ref, st_ref, *, Ho, Wo, Cin, Cout):
    # hp_ref: (Ho+2, Wo+2, Cin)  f32, zero-padded down-conv output (per batch)
    # wu_ref: (4, 4, Cin, Cout)  bf16 ConvTranspose weight, indexed [kh, kw]
    # y_ref : (4, Ho, Wo, Cout)  f32, parity-major raw up-conv output (p = 2*pi + pj)
    # st_ref: (2, Cout)          f32, per-batch [sum, sum_of_squares] for BatchNorm
    # ReLU in f32 (ReLU(0)=0 -> padding stays 0), single bf16 cast hoisted.
    hb = jnp.maximum(hp_ref[...], 0.0).astype(jnp.bfloat16)
    s = jnp.zeros((1, Cout), jnp.float32)
    ss = jnp.zeros((1, Cout), jnp.float32)
    for pi in range(2):
        for pj in range(2):
            acc = jnp.zeros((Ho * Wo, Cout), jnp.float32)
            for a in range(2):
                for b in range(2):
                    kh = 3 - pi - 2 * a        # out[2u+pi, 2v+pj] uses h[u+pi+a-1, v+pj+b-1]
                    kw = 3 - pj - 2 * b        # with ConvT tap (kh, kw)
                    patch = hb[pi + a:pi + a + Ho, pj + b:pj + b + Wo, :]
                    patch = patch.reshape(Ho * Wo, Cin)
                    acc = acc + jnp.dot(patch, wu_ref[kh, kw],
                                        preferred_element_type=jnp.float32)
            y_ref[2 * pi + pj] = acc.reshape(Ho, Wo, Cout)
            s = s + jnp.sum(acc, axis=0, keepdims=True)
            ss = ss + jnp.sum(acc * acc, axis=0, keepdims=True)
    st_ref[0:1, :] = s
    st_ref[1:2, :] = ss


def up_conv(hp, wu_taps):
    N, Hp2, Wp2, Cin = hp.shape
    Ho, Wo = Hp2 - 2, Wp2 - 2
    Cout = wu_taps.shape[3]
    kernel = functools.partial(_up_kernel, Ho=Ho, Wo=Wo, Cin=Cin, Cout=Cout)
    return pl.pallas_call(
        kernel,
        out_shape=(
            jax.ShapeDtypeStruct((N, 4, Ho, Wo, Cout), jnp.float32),
            jax.ShapeDtypeStruct((N, 2, Cout), jnp.float32),
        ),
        grid=(N,),
        in_specs=[
            pl.BlockSpec((None, Hp2, Wp2, Cin), lambda n: (n, 0, 0, 0)),
            pl.BlockSpec((4, 4, Cin, Cout), lambda n: (0, 0, 0, 0)),
        ],
        out_specs=(
            pl.BlockSpec((None, 4, Ho, Wo, Cout), lambda n: (n, 0, 0, 0, 0)),
            pl.BlockSpec((None, 2, Cout), lambda n: (n, 0, 0)),
        ),
        compiler_params=pltpu.CompilerParams(dimension_semantics=("parallel",)),
    )(hp, wu_taps)


# ---------------------------------------------------------------------------
# Kernel 3: BN affine-normalize + skip concat, one lane-dense per-batch slab.
#           Output block is (Cin+Cout, H*W) -> 256-lane stores (not 16-lane
#           per-channel blocks as before).
# ---------------------------------------------------------------------------
def _finalize_kernel(x_ref, y_ref, scale_ref, shift_ref, o_ref, *, Cin, Cout):
    # x_ref    : (Cin, HW)   identity skip channels
    # y_ref    : (Cout, HW)  raw up-conv output (NCHW, flattened spatial)
    # scale/shift: (Cout, 1) per-channel BN affine terms
    # o_ref    : (Cin+Cout, HW)
    o_ref[0:Cin, :] = x_ref[...]
    o_ref[Cin:Cin + Cout, :] = y_ref[...] * scale_ref[...] + shift_ref[...]


def finalize_concat(x_flat, y_flat, scale, shift):
    N, Cin, HW = x_flat.shape
    Cout = y_flat.shape[1]
    Ctot = Cin + Cout
    kernel = functools.partial(_finalize_kernel, Cin=Cin, Cout=Cout)
    return pl.pallas_call(
        kernel,
        out_shape=jax.ShapeDtypeStruct((N, Ctot, HW), jnp.float32),
        grid=(N,),
        in_specs=[
            pl.BlockSpec((None, Cin, HW), lambda n: (n, 0, 0)),
            pl.BlockSpec((None, Cout, HW), lambda n: (n, 0, 0)),
            pl.BlockSpec((Cout, 1), lambda n: (0, 0)),
            pl.BlockSpec((Cout, 1), lambda n: (0, 0)),
        ],
        out_specs=pl.BlockSpec((None, Ctot, HW), lambda n: (n, 0, 0)),
        compiler_params=pltpu.CompilerParams(dimension_semantics=("parallel",)),
    )(x_flat, y_flat, scale, shift)


# ---------------------------------------------------------------------------
# Forward pass (innermost UnetSkipConnectionBlock)
# ---------------------------------------------------------------------------
def unet_innermost_forward(x_nchw, params, eps=1e-5):
    w_down = params["w_down"]            # (inner_nc, input_nc, 4, 4)  Conv2d weight
    w_up = params["w_up"]                # (inner_nc, outer_nc, 4, 4)  ConvTranspose2d weight
    gamma, beta = params["gamma"], params["beta"]
    inner_nc, input_nc = w_down.shape[0], w_down.shape[1]
    outer_nc = w_up.shape[1]

    N, Cx, H, W = x_nchw.shape
    assert Cx == input_nc and H % 2 == 0 and W % 2 == 0
    Ho, Wo = H // 2, W // 2

    # NCHW -> NHWC, pad by 1, and take the stride-2 polyphase view
    # (p = 2*r + s  <->  x_pad[:, r::2, s::2, :]); a single O(input) pass, not 16x im2col.
    x_nhwc = jnp.transpose(x_nchw, (0, 2, 3, 1))
    xp = jnp.pad(x_nhwc, ((0, 0), (1, 1), (1, 1), (0, 0)))
    xph = jnp.stack([xp[:, r::2, s::2, :] for r in (0, 1) for s in (0, 1)], axis=1)

    # per-tap weight matrices, bf16 MXU operands (f32 accumulation in-kernel)
    wd_taps = jnp.transpose(w_down, (2, 3, 1, 0)).reshape(16, input_nc, inner_nc)
    wd_taps = wd_taps.astype(jnp.bfloat16)
    wu_taps = jnp.transpose(w_up, (2, 3, 0, 1)).astype(jnp.bfloat16)   # (4, 4, inner, outer)

    # down: LeakyReLU(0.2) -> Conv2d(4, s=2, p=1)                       [Pallas]
    h = down_conv(xph, wd_taps, Ho, Wo)                                 # (N, Ho, Wo, inner)

    # up: ReLU -> ConvTranspose2d(4, s=2, p=1) via sub-pixel decomposition,
    # with BatchNorm sum/sumsq fused into the matmul epilogue            [Pallas]
    hp = jnp.pad(h, ((0, 0), (1, 1), (1, 1), (0, 0)))
    y_raw, stats = up_conv(hp, wu_taps)                # (N,4,Ho,Wo,outer), (N,2,outer)

    # BatchNorm2d, training-mode (biased) batch statistics over N*H*W
    m = N * H * W
    tot = jnp.sum(stats, axis=0)                       # (2, outer)
    mean = tot[0] / m
    var = tot[1] / m - mean * mean
    scale = gamma * lax.rsqrt(var + eps)
    shift = beta - mean * scale

    # parity interleave + NHWC->NCHW of the small y intermediate in one XLA transpose;
    # flatten spatial so the finalize kernel sees lane-dense (C, H*W) slabs.
    y_flat = jnp.transpose(
        y_raw.reshape(N, 2, 2, Ho, Wo, outer_nc), (0, 5, 3, 1, 4, 2)
    ).reshape(N, outer_nc, H * W)
    x_flat = x_nchw.reshape(N, Cx, H * W)

    # skip connection: write x and BN(y) into one (N, Cin+Cout, H*W) slab  [Pallas]
    out_flat = finalize_concat(x_flat, y_flat,
                               scale.reshape(-1, 1), shift.reshape(-1, 1))
    return out_flat.reshape(N, Cx + outer_nc, H, W)


# ---------------------------------------------------------------------------
# Pure-JAX/XLA reference
# ---------------------------------------------------------------------------
def reference_forward(x, params, eps=1e-5, mxu_bf16=False):
    """mxu_bf16=True mirrors the kernels' MXU input precision (bf16 operands, f32
    accumulation); mxu_bf16=False is the full-f32 semantic reference."""
    w_down, w_up = params["w_down"], params["w_up"]
    gamma, beta = params["gamma"], params["beta"]
    if mxu_bf16:
        cast, prec = (lambda t: t.astype(jnp.bfloat16)), None
    else:
        cast, prec = (lambda t: t), lax.Precision.HIGHEST

    a1 = jnp.where(x >= 0, x, 0.2 * x)
    h = lax.conv_general_dilated(
        cast(a1), cast(w_down), window_strides=(2, 2), padding=((1, 1), (1, 1)),
        dimension_numbers=("NCHW", "OIHW", "NCHW"),
        preferred_element_type=jnp.float32, precision=prec)
    a2 = jnp.maximum(h, 0.0)
    # ConvTranspose2d(k=4, s=2, p=1) == lhs-dilated conv with flipped/transposed kernel
    w_eq = jnp.transpose(jnp.flip(w_up, axis=(2, 3)), (1, 0, 2, 3))
    y = lax.conv_general_dilated(
        cast(a2), cast(w_eq), window_strides=(1, 1), padding=((2, 2), (2, 2)),
        lhs_dilation=(2, 2), dimension_numbers=("NCHW", "OIHW", "NCHW"),
        preferred_element_type=jnp.float32, precision=prec)
    mean = jnp.mean(y, axis=(0, 2, 3), keepdims=True)
    var = jnp.mean(jnp.square(y - mean), axis=(0, 2, 3), keepdims=True)
    y = (y - mean) * lax.rsqrt(var + eps)
    y = y * gamma.reshape(1, -1, 1, 1) + beta.reshape(1, -1, 1, 1)
    return jnp.concatenate([x, y], axis=1)


# ---------------------------------------------------------------------------
if __name__ == "__main__":
    outer_nc, inner_nc = 4, 8
    input_nc = outer_nc                 # input_nc=None -> outer_nc
    N, H, W = 2, 16, 16

    key = jax.random.PRNGKey(0)
    k_wd, k_wu, k_x = jax.random.split(key, 3)
    params = {
        "w_down": jax.random.normal(k_wd, (inner_nc, input_nc, 4, 4), jnp.float32) * 0.02,
        "w_up": jax.random.normal(k_wu, (inner_nc, outer_nc, 4, 4), jnp.float32) * 0.02,
        "gamma": jnp.ones((outer_nc,), jnp.float32),   # BatchNorm2d default affine init
        "beta": jnp.zeros((outer_nc,), jnp.float32),
    }
    x = jax.random.normal(k_x, (N, input_nc, H, W), jnp.float32)

    out = jax.jit(unet_innermost_forward)(x, params)
    out = jax.block_until_ready(out)
    assert out.shape == (N, input_nc + outer_nc, H, W), out.shape

    # tight check vs a reference with the same MXU input precision (bf16 in, f32 acc)
    ref_bf16 = reference_forward(x, params, mxu_bf16=True)
    err_tight = float(jnp.max(jnp.abs(out - ref_bf16)))
    assert jnp.allclose(out, ref_bf16, atol=5e-3, rtol=5e-3), err_tight

    # loose sanity check vs the full-f32 reference (bf16 MXU operands -> small post-BN noise)
    ref_f32 = reference_forward(x, params, mxu_bf16=False)
    err_loose = float(jnp.max(jnp.abs(out - ref_f32)))
    assert jnp.allclose(out, ref_f32, atol=1e-1, rtol=1e-1), err_loose

    print("KERNEL_OK")
</pallas_src>

<mosaic_0001>
module attributes {stable_mosaic.version = 11 : i64} {
  func.func @_down_kernel(%arg0: i32, %arg1: memref<1x4x9x9x4xf32, #tpu.memory_space<vmem>>, %arg2: memref<16x4x8xbf16, #tpu.memory_space<vmem>>, %arg3: memref<1x8x8x8xf32, #tpu.memory_space<vmem>>) attributes {dimension_semantics = [#tpu.dimension_semantics<parallel>], iteration_bounds = array<i64: 2>, scalar_prefetch = 0 : i64, scratch_operands = 0 : i64, tpu.core_type = #tpu.core_type<tc>, window_params = [{transform_indices = @transform_0, window_bounds = array<i64: 1, 4, 9, 9, 4>}, {pipeline_mode = #tpu.pipeline_mode<synchronous>, transform_indices = @transform_1, window_bounds = array<i64: 16, 4, 8>}, {transform_indices = @transform_2, window_bounds = array<i64: 1, 8, 8, 8>}]} {
    %c0 = arith.constant 0 : index
    %c0_0 = arith.constant 0 : index
    %c0_1 = arith.constant 0 : index
    %c0_2 = arith.constant 0 : index
    %c0_3 = arith.constant 0 : index
    %0 = vector.load %arg1[%c0, %c0_0, %c0_1, %c0_2, %c0_3] : memref<1x4x9x9x4xf32, #tpu.memory_space<vmem>>, vector<1x4x9x9x4xf32>
    %1 = vector.shape_cast %0 : vector<1x4x9x9x4xf32> to vector<4x9x9x4xf32>
    %cst = arith.constant 0.000000e+00 : f32
    %2 = vector.broadcast %cst : f32 to vector<4x9x9x4xf32>
    %3 = arith.cmpf oge, %1, %2 : vector<4x9x9x4xf32>
    %cst_4 = arith.constant 2.000000e-01 : f32
    %4 = vector.broadcast %cst_4 : f32 to vector<4x9x9x4xf32>
    %5 = arith.mulf %4, %1 : vector<4x9x9x4xf32>
    %6 = arith.select %3, %1, %5 : vector<4x9x9x4xi1>, vector<4x9x9x4xf32>
    %7 = arith.truncf %6 : vector<4x9x9x4xf32> to vector<4x9x9x4xbf16>
    %cst_5 = arith.constant 0.000000e+00 : f32
    %8 = vector.broadcast %cst_5 : f32 to vector<64x8xf32>
    %9 = vector.extract_strided_slice %7 {offsets = [0, 0, 0, 0], sizes = [1, 8, 8, 4], strides = [1, 1, 1, 1]} : vector<4x9x9x4xbf16> to vector<1x8x8x4xbf16>
    %10 = vector.shape_cast %9 : vector<1x8x8x4xbf16> to vector<8x8x4xbf16>
    %11 = vector.shape_cast %10 : vector<8x8x4xbf16> to vector<64x4xbf16>
    %c0_6 = arith.constant 0 : index
    %c0_7 = arith.constant 0 : index
    %c0_8 = arith.constant 0 : index
    %12 = vector.load %arg2[%c0_6, %c0_7, %c0_8] : memref<16x4x8xbf16, #tpu.memory_space<vmem>>, vector<1x4x8xbf16>
    %13 = vector.shape_cast %12 : vector<1x4x8xbf16> to vector<4x8xbf16>
    %cst_9 = arith.constant dense<0.000000e+00> : vector<64x8xf32>
    %14 = tpu.matmul %11, %13, %cst_9 {dimension_numbers = #tpu.dot_dimension_numbers<[1], [0], [0], [1], [0, 0, 1, 1], [], []>} : vector<64x4xbf16>, vector<4x8xbf16>, vector<64x8xf32> -> vector<64x8xf32>
    %15 = arith.addf %8, %14 : vector<64x8xf32>
    %16 = vector.extract_strided_slice %7 {offsets = [1, 0, 0, 0], sizes = [1, 8, 8, 4], strides = [1, 1, 1, 1]} : vector<4x9x9x4xbf16> to vector<1x8x8x4xbf16>
    %17 = vector.shape_cast %16 : vector<1x8x8x4xbf16> to vector<8x8x4xbf16>
    %18 = vector.shape_cast %17 : vector<8x8x4xbf16> to vector<64x4xbf16>
    %c1 = arith.constant 1 : index
    %c0_10 = arith.constant 0 : index
    %c0_11 = arith.constant 0 : index
    %19 = vector.load %arg2[%c1, %c0_10, %c0_11] : memref<16x4x8xbf16, #tpu.memory_space<vmem>>, vector<1x4x8xbf16>
    %20 = vector.shape_cast %19 : vector<1x4x8xbf16> to vector<4x8xbf16>
    %cst_12 = arith.constant dense<0.000000e+00> : vector<64x8xf32>
    %21 = tpu.matmul %18, %20, %cst_12 {dimension_numbers = #tpu.dot_dimension_numbers<[1], [0], [0], [1], [0, 0, 1, 1], [], []>} : vector<64x4xbf16>, vector<4x8xbf16>, vector<64x8xf32> -> vector<64x8xf32>
    %22 = arith.addf %15, %21 : vector<64x8xf32>
    %23 = vector.extract_strided_slice %7 {offsets = [0, 0, 1, 0], sizes = [1, 8, 8, 4], strides = [1, 1, 1, 1]} : vector<4x9x9x4xbf16> to vector<1x8x8x4xbf16>
    %24 = vector.shape_cast %23 : vector<1x8x8x4xbf16> to vector<8x8x4xbf16>
    %25 = vector.shape_cast %24 : vector<8x8x4xbf16> to vector<64x4xbf16>
    %c2 = arith.constant 2 : index
    %c0_13 = arith.constant 0 : index
    %c0_14 = arith.constant 0 : index
    %26 = vector.load %arg2[%c2, %c0_13, %c0_14] : memref<16x4x8xbf16, #tpu.memory_space<vmem>>, vector<1x4x8xbf16>
    %27 = vector.shape_cast %26 : vector<1x4x8xbf16> to vector<4x8xbf16>
    %cst_15 = arith.constant dense<0.000000e+00> : vector<64x8xf32>
    %28 = tpu.matmul %25, %27, %cst_15 {dimension_numbers = #tpu.dot_dimension_numbers<[1], [0], [0], [1], [0, 0, 1, 1], [], []>} : vector<64x4xbf16>, vector<4x8xbf16>, vector<64x8xf32> -> vector<64x8xf32>
    %29 = arith.addf %22, %28 : vector<64x8xf32>
    %30 = vector.extract_strided_slice %7 {offsets = [1, 0, 1, 0], sizes = [1, 8, 8, 4], strides = [1, 1, 1, 1]} : vector<4x9x9x4xbf16> to vector<1x8x8x4xbf16>
    %31 = vector.shape_cast %30 : vector<1x8x8x4xbf16> to vector<8x8x4xbf16>
    %32 = vector.shape_cast %31 : vector<8x8x4xbf16> to vector<64x4xbf16>
    %c3 = arith.constant 3 : index
    %c0_16 = arith.constant 0 : index
    %c0_17 = arith.constant 0 : index
    %33 = vector.load %arg2[%c3, %c0_16, %c0_17] : memref<16x4x8xbf16, #tpu.memory_space<vmem>>, vector<1x4x8xbf16>
    %34 = vector.shape_cast %33 : vector<1x4x8xbf16> to vector<4x8xbf16>
    %cst_18 = arith.constant dense<0.000000e+00> : vector<64x8xf32>
    %35 = tpu.matmul %32, %34, %cst_18 {dimension_numbers = #tpu.dot_dimension_numbers<[1], [0], [0], [1], [0, 0, 1, 1], [], []>} : vector<64x4xbf16>, vector<4x8xbf16>, vector<64x8xf32> -> vector<64x8xf32>
    %36 = arith.addf %29, %35 : vector<64x8xf32>
    %37 = vector.extract_strided_slice %7 {offsets = [2, 0, 0, 0], sizes = [1, 8, 8, 4], strides = [1, 1, 1, 1]} : vector<4x9x9x4xbf16> to vector<1x8x8x4xbf16>
    %38 = vector.shape_cast %37 : vector<1x8x8x4xbf16> to vector<8x8x4xbf16>
    %39 = vector.shape_cast %38 : vector<8x8x4xbf16> to vector<64x4xbf16>
    %c4 = arith.constant 4 : index
    %c0_19 = arith.constant 0 : index
    %c0_20 = arith.constant 0 : index
    %40 = vector.load %arg2[%c4, %c0_19, %c0_20] : memref<16x4x8xbf16, #tpu.memory_space<vmem>>, vector<1x4x8xbf16>
    %41 = vector.shape_cast %40 : vector<1x4x8xbf16> to vector<4x8xbf16>
    %cst_21 = arith.constant dense<0.000000e+00> : vector<64x8xf32>
    %42 = tpu.matmul %39, %41, %cst_21 {dimension_numbers = #tpu.dot_dimension_numbers<[1], [0], [0], [1], [0, 0, 1, 1], [], []>} : vector<64x4xbf16>, vector<4x8xbf16>, vector<64x8xf32> -> vector<64x8xf32>
    %43 = arith.addf %36, %42 : vector<64x8xf32>
    %44 = vector.extract_strided_slice %7 {offsets = [3, 0, 0, 0], sizes = [1, 8, 8, 4], strides = [1, 1, 1, 1]} : vector<4x9x9x4xbf16> to vector<1x8x8x4xbf16>
    %45 = vector.shape_cast %44 : vector<1x8x8x4xbf16> to vector<8x8x4xbf16>
    %46 = vector.shape_cast %45 : vector<8x8x4xbf16> to vector<64x4xbf16>
    %c5 = arith.constant 5 : index
    %c0_22 = arith.constant 0 : index
    %c0_23 = arith.constant 0 : index
    %47 = vector.load %arg2[%c5, %c0_22, %c0_23] : memref<16x4x8xbf16, #tpu.memory_space<vmem>>, vector<1x4x8xbf16>
    %48 = vector.shape_cast %47 : vector<1x4x8xbf16> to vector<4x8xbf16>
    %cst_24 = arith.constant dense<0.000000e+00> : vector<64x8xf32>
    %49 = tpu.matmul %46, %48, %cst_24 {dimension_numbers = #tpu.dot_dimension_numbers<[1], [0], [0], [1], [0, 0, 1, 1], [], []>} : vector<64x4xbf16>, vector<4x8xbf16>, vector<64x8xf32> -> vector<64x8xf32>
    %50 = arith.addf %43, %49 : vector<64x8xf32>
    %51 = vector.extract_strided_slice %7 {offsets = [2, 0, 1, 0], sizes = [1, 8, 8, 4], strides = [1, 1, 1, 1]} : vector<4x9x9x4xbf16> to vector<1x8x8x4xbf16>
    %52 = vector.shape_cast %51 : vector<1x8x8x4xbf16> to vector<8x8x4xbf16>
    %53 = vector.shape_cast %52 : vector<8x8x4xbf16> to vector<64x4xbf16>
    %c6 = arith.constant 6 : index
    %c0_25 = arith.constant 0 : index
    %c0_26 = arith.constant 0 : index
    %54 = vector.load %arg2[%c6, %c0_25, %c0_26] : memref<16x4x8xbf16, #tpu.memory_space<vmem>>, vector<1x4x8xbf16>
    %55 = vector.shape_cast %54 : vector<1x4x8xbf16> to vector<4x8xbf16>
    %cst_27 = arith.constant dense<0.000000e+00> : vector<64x8xf32>
    %56 = tpu.matmul %53, %55, %cst_27 {dimension_numbers = #tpu.dot_dimension_numbers<[1], [0], [0], [1], [0, 0, 1, 1], [], []>} : vector<64x4xbf16>, vector<4x8xbf16>, vector<64x8xf32> -> vector<64x8xf32>
    %57 = arith.addf %50, %56 : vector<64x8xf32>
    %58 = vector.extract_strided_slice %7 {offsets = [3, 0, 1, 0], sizes = [1, 8, 8, 4], strides = [1, 1, 1, 1]} : vector<4x9x9x4xbf16> to vector<1x8x8x4xbf16>
    %59 = vector.shape_cast %58 : vector<1x8x8x4xbf16> to vector<8x8x4xbf16>
    %60 = vector.shape_cast %59 : vector<8x8x4xbf16> to vector<64x4xbf16>
    %c7 = arith.constant 7 : index
    %c0_28 = arith.constant 0 : index
    %c0_29 = arith.constant 0 : index
    %61 = vector.load %arg2[%c7, %c0_28, %c0_29] : memref<16x4x8xbf16, #tpu.memory_space<vmem>>, vector<1x4x8xbf16>
    %62 = vector.shape_cast %61 : vector<1x4x8xbf16> to vector<4x8xbf16>
    %cst_30 = arith.constant dense<0.000000e+00> : vector<64x8xf32>
    %63 = tpu.matmul %60, %62, %cst_30 {dimension_numbers = #tpu.dot_dimension_numbers<[1], [0], [0], [1], [0, 0, 1, 1], [], []>} : vector<64x4xbf16>, vector<4x8xbf16>, vector<64x8xf32> -> vector<64x8xf32>
    %64 = arith.addf %57, %63 : vector<64x8xf32>
    %65 = vector.extract_strided_slice %7 {offsets = [0, 1, 0, 0], sizes = [1, 8, 8, 4], strides = [1, 1, 1, 1]} : vector<4x9x9x4xbf16> to vector<1x8x8x4xbf16>
    %66 = vector.shape_cast %65 : vector<1x8x8x4xbf16> to vector<8x8x4xbf16>
    %67 = vector.shape_cast %66 : vector<8x8x4xbf16> to vector<64x4xbf16>
    %c8 = arith.constant 8 : index
    %c0_31 = arith.constant 0 : index
    %c0_32 = arith.constant 0 : index
    %68 = vector.load %arg2[%c8, %c0_31, %c0_32] : memref<16x4x8xbf16, #tpu.memory_space<vmem>>, vector<1x4x8xbf16>
    %69 = vector.shape_cast %68 : vector<1x4x8xbf16> to vector<4x8xbf16>
    %cst_33 = arith.constant dense<0.000000e+00> : vector<64x8xf32>
    %70 = tpu.matmul %67, %69, %cst_33 {dimension_numbers = #tpu.dot_dimension_numbers<[1], [0], [0], [1], [0, 0, 1, 1], [], []>} : vector<64x4xbf16>, vector<4x8xbf16>, vector<64x8xf32> -> vector<64x8xf32>
    %71 = arith.addf %64, %70 : vector<64x8xf32>
    %72 = vector.extract_strided_slice %7 {offsets = [1, 1, 0, 0], sizes = [1, 8, 8, 4], strides = [1, 1, 1, 1]} : vector<4x9x9x4xbf16> to vector<1x8x8x4xbf16>
    %73 = vector.shape_cast %72 : vector<1x8x8x4xbf16> to vector<8x8x4xbf16>
    %74 = vector.shape_cast %73 : vector<8x8x4xbf16> to vector<64x4xbf16>
    %c9 = arith.constant 9 : index
    %c0_34 = arith.constant 0 : index
    %c0_35 = arith.constant 0 : index
    %75 = vector.load %arg2[%c9, %c0_34, %c0_35] : memref<16x4x8xbf16, #tpu.memory_space<vmem>>, vector<1x4x8xbf16>
    %76 = vector.shape_cast %75 : vector<1x4x8xbf16> to vector<4x8xbf16>
    %cst_36 = arith.constant dense<0.000000e+00> : vector<64x8xf32>
    %77 = tpu.matmul %74, %76, %cst_36 {dimension_numbers = #tpu.dot_dimension_numbers<[1], [0], [0], [1], [0, 0, 1, 1], [], []>} : vector<64x4xbf16>, vector<4x8xbf16>, vector<64x8xf32> -> vector<64x8xf32>
    %78 = arith.addf %71, %77 : vector<64x8xf32>
    %79 = vector.extract_strided_slice %7 {offsets = [0, 1, 1, 0], sizes = [1, 8, 8, 4], strides = [1, 1, 1, 1]} : vector<4x9x9x4xbf16> to vector<1x8x8x4xbf16>
    %80 = vector.shape_cast %79 : vector<1x8x8x4xbf16> to vector<8x8x4xbf16>
    %81 = vector.shape_cast %80 : vector<8x8x4xbf16> to vector<64x4xbf16>
    %c10 = arith.constant 10 : index
    %c0_37 = arith.constant 0 : index
    %c0_38 = arith.constant 0 : index
    %82 = vector.load %arg2[%c10, %c0_37, %c0_38] : memref<16x4x8xbf16, #tpu.memory_space<vmem>>, vector<1x4x8xbf16>
    %83 = vector.shape_cast %82 : vector<1x4x8xbf16> to vector<4x8xbf16>
    %cst_39 = arith.constant dense<0.000000e+00> : vector<64x8xf32>
    %84 = tpu.matmul %81, %83, %cst_39 {dimension_numbers = #tpu.dot_dimension_numbers<[1], [0], [0], [1], [0, 0, 1, 1], [], []>} : vector<64x4xbf16>, vector<4x8xbf16>, vector<64x8xf32> -> vector<64x8xf32>
    %85 = arith.addf %78, %84 : vector<64x8xf32>
    %86 = vector.extract_strided_slice %7 {offsets = [1, 1, 1, 0], sizes = [1, 8, 8, 4], strides = [1, 1, 1, 1]} : vector<4x9x9x4xbf16> to vector<1x8x8x4xbf16>
    %87 = vector.shape_cast %86 : vector<1x8x8x4xbf16> to vector<8x8x4xbf16>
    %88 = vector.shape_cast %87 : vector<8x8x4xbf16> to vector<64x4xbf16>
    %c11 = arith.constant 11 : index
    %c0_40 = arith.constant 0 : index
    %c0_41 = arith.constant 0 : index
    %89 = vector.load %arg2[%c11, %c0_40, %c0_41] : memref<16x4x8xbf16, #tpu.memory_space<vmem>>, vector<1x4x8xbf16>
    %90 = vector.shape_cast %89 : vector<1x4x8xbf16> to vector<4x8xbf16>
    %cst_42 = arith.constant dense<0.000000e+00> : vector<64x8xf32>
    %91 = tpu.matmul %88, %90, %cst_42 {dimension_numbers = #tpu.dot_dimension_numbers<[1], [0], [0], [1], [0, 0, 1, 1], [], []>} : vector<64x4xbf16>, vector<4x8xbf16>, vector<64x8xf32> -> vector<64x8xf32>
    %92 = arith.addf %85, %91 : vector<64x8xf32>
    %93 = vector.extract_strided_slice %7 {offsets = [2, 1, 0, 0], sizes = [1, 8, 8, 4], strides = [1, 1, 1, 1]} : vector<4x9x9x4xbf16> to vector<1x8x8x4xbf16>
    %94 = vector.shape_cast %93 : vector<1x8x8x4xbf16> to vector<8x8x4xbf16>
    %95 = vector.shape_cast %94 : vector<8x8x4xbf16> to vector<64x4xbf16>
    %c12 = arith.constant 12 : index
    %c0_43 = arith.constant 0 : index
    %c0_44 = arith.constant 0 : index
    %96 = vector.load %arg2[%c12, %c0_43, %c0_44] : memref<16x4x8xbf16, #tpu.memory_space<vmem>>, vector<1x4x8xbf16>
    %97 = vector.shape_cast %96 : vector<1x4x8xbf16> to vector<4x8xbf16>
    %cst_45 = arith.constant dense<0.000000e+00> : vector<64x8xf32>
    %98 = tpu.matmul %95, %97, %cst_45 {dimension_numbers = #tpu.dot_dimension_numbers<[1], [0], [0], [1], [0, 0, 1, 1], [], []>} : vector<64x4xbf16>, vector<4x8xbf16>, vector<64x8xf32> -> vector<64x8xf32>
    %99 = arith.addf %92, %98 : vector<64x8xf32>
    %100 = vector.extract_strided_slice %7 {offsets = [3, 1, 0, 0], sizes = [1, 8, 8, 4], strides = [1, 1, 1, 1]} : vector<4x9x9x4xbf16> to vector<1x8x8x4xbf16>
    %101 = vector.shape_cast %100 : vector<1x8x8x4xbf16> to vector<8x8x4xbf16>
    %102 = vector.shape_cast %101 : vector<8x8x4xbf16> to vector<64x4xbf16>
    %c13 = arith.constant 13 : index
    %c0_46 = arith.constant 0 : index
    %c0_47 = arith.constant 0 : index
    %103 = vector.load %arg2[%c13, %c0_46, %c0_47] : memref<16x4x8xbf16, #tpu.memory_space<vmem>>, vector<1x4x8xbf16>
    %104 = vector.shape_cast %103 : vector<1x4x8xbf16> to vector<4x8xbf16>
    %cst_48 = arith.constant dense<0.000000e+00> : vector<64x8xf32>
    %105 = tpu.matmul %102, %104, %cst_48 {dimension_numbers = #tpu.dot_dimension_numbers<[1], [0], [0], [1], [0, 0, 1, 1], [], []>} : vector<64x4xbf16>, vector<4x8xbf16>, vector<64x8xf32> -> vector<64x8xf32>
    %106 = arith.addf %99, %105 : vector<64x8xf32>
    %107 = vector.extract_strided_slice %7 {offsets = [2, 1, 1, 0], sizes = [1, 8, 8, 4], strides = [1, 1, 1, 1]} : vector<4x9x9x4xbf16> to vector<1x8x8x4xbf16>
    %108 = vector.shape_cast %107 : vector<1x8x8x4xbf16> to vector<8x8x4xbf16>
    %109 = vector.shape_cast %108 : vector<8x8x4xbf16> to vector<64x4xbf16>
    %c14 = arith.constant 14 : index
    %c0_49 = arith.constant 0 : index
    %c0_50 = arith.constant 0 : index
    %110 = vector.load %arg2[%c14, %c0_49, %c0_50] : memref<16x4x8xbf16, #tpu.memory_space<vmem>>, vector<1x4x8xbf16>
    %111 = vector.shape_cast %110 : vector<1x4x8xbf16> to vector<4x8xbf16>
    %cst_51 = arith.constant dense<0.000000e+00> : vector<64x8xf32>
    %112 = tpu.matmul %109, %111, %cst_51 {dimension_numbers = #tpu.dot_dimension_numbers<[1], [0], [0], [1], [0, 0, 1, 1], [], []>} : vector<64x4xbf16>, vector<4x8xbf16>, vector<64x8xf32> -> vector<64x8xf32>
    %113 = arith.addf %106, %112 : vector<64x8xf32>
    %114 = vector.extract_strided_slice %7 {offsets = [3, 1, 1, 0], sizes = [1, 8, 8, 4], strides = [1, 1, 1, 1]} : vector<4x9x9x4xbf16> to vector<1x8x8x4xbf16>
    %115 = vector.shape_cast %114 : vector<1x8x8x4xbf16> to vector<8x8x4xbf16>
    %116 = vector.shape_cast %115 : vector<8x8x4xbf16> to vector<64x4xbf16>
    %c15 = arith.constant 15 : index
    %c0_52 = arith.constant 0 : index
    %c0_53 = arith.constant 0 : index
    %117 = vector.load %arg2[%c15, %c0_52, %c0_53] : memref<16x4x8xbf16, #tpu.memory_space<vmem>>, vector<1x4x8xbf16>
    %118 = vector.shape_cast %117 : vector<1x4x8xbf16> to vector<4x8xbf16>
    %cst_54 = arith.constant dense<0.000000e+00> : vector<64x8xf32>
    %119 = tpu.matmul %116, %118, %cst_54 {dimension_numbers = #tpu.dot_dimension_numbers<[1], [0], [0], [1], [0, 0, 1, 1], [], []>} : vector<64x4xbf16>, vector<4x8xbf16>, vector<64x8xf32> -> vector<64x8xf32>
    %120 = arith.addf %113, %119 : vector<64x8xf32>
    %121 = vector.shape_cast %120 : vector<64x8xf32> to vector<8x8x8xf32>
    %c0_55 = arith.constant 0 : index
    %c0_56 = arith.constant 0 : index
    %c0_57 = arith.constant 0 : index
    %c0_58 = arith.constant 0 : index
    %122 = vector.load %arg3[%c0_55, %c0_56, %c0_57, %c0_58] : memref<1x8x8x8xf32, #tpu.memory_space<vmem>>, vector<1x8x8x8xf32>
    %123 = vector.shape_cast %122 : vector<1x8x8x8xf32> to vector<8x8x8xf32>
    %124 = vector.shape_cast %121 : vector<8x8x8xf32> to vector<1x8x8x8xf32>
    tpu.vector_store %arg3[%c0_55, %c0_56, %c0_57, %c0_58], %124 {strides = array<i32>} : memref<1x8x8x8xf32, #tpu.memory_space<vmem>>, vector<1x8x8x8xf32>,
    return
  }
  func.func @transform_0(%arg0: i32) -> (i32, i32, i32, i32, i32) {
    %c0_i32 = arith.constant 0 : i32
    %c0_i32_0 = arith.constant 0 : i32
    %c0_i32_1 = arith.constant 0 : i32
    %c0_i32_2 = arith.constant 0 : i32
    %c0_i32_3 = arith.constant 0 : i32
    return %arg0, %c0_i32, %c0_i32_0, %c0_i32_1, %c0_i32_2 : i32, i32, i32, i32, i32
  }
  func.func @transform_1(%arg0: i32) -> (i32, i32, i32) {
    %c0_i32 = arith.constant 0 : i32
    %c0_i32_0 = arith.constant 0 : i32
    %c0_i32_1 = arith.constant 0 : i32
    %c0_i32_2 = arith.constant 0 : i32
    return %c0_i32, %c0_i32_0, %c0_i32_1 : i32, i32, i32
  }
  func.func @transform_2(%arg0: i32) -> (i32, i32, i32, i32) {
    %c0_i32 = arith.constant 0 : i32
    %c0_i32_0 = arith.constant 0 : i32
    %c0_i32_1 = arith.constant 0 : i32
    %c0_i32_2 = arith.constant 0 : i32
    return %arg0, %c0_i32, %c0_i32_0, %c0_i32_1 : i32, i32, i32, i32
  }
}

module attributes {stable_mosaic.version = 11 : i64} {
  func.func @_up_kernel(%arg0: i32, %arg1: memref<1x10x10x8xf32, #tpu.memory_space<vmem>>, %arg2: memref<4x4x8x4xbf16, #tpu.memory_space<vmem>>, %arg3: memref<1x4x8x8x4xf32, #tpu.memory_space<vmem>>, %arg4: memref<1x2x4xf32, #tpu.memory_space<vmem>>) attributes {dimension_semantics = [#tpu.dimension_semantics<parallel>], iteration_bounds = array<i64: 2>, scalar_prefetch = 0 : i64, scratch_operands = 0 : i64, tpu.core_type = #tpu.core_type<tc>, window_params = [{transform_indices = @transform_0, window_bounds = array<i64: 1, 10, 10, 8>}, {pipeline_mode = #tpu.pipeline_mode<synchronous>, transform_indices = @transform_1, window_bounds = array<i64: 4, 4, 8, 4>}, {transform_indices = @transform_2, window_bounds = array<i64: 1, 4, 8, 8, 4>}, {transform_indices = @transform_3, window_bounds = array<i64: 1, 2, 4>}]} {
    %c0 = arith.constant 0 : index
    %c0_0 = arith.constant 0 : index
    %c0_1 = arith.constant 0 : index
    %c0_2 = arith.constant 0 : index
    %0 = vector.load %arg1[%c0, %c0_0, %c0_1, %c0_2] : memref<1x10x10x8xf32, #tpu.memory_space<vmem>>, vector<1x10x10x8xf32>
    %1 = vector.shape_cast %0 : vector<1x10x10x8xf32> to vector<10x10x8xf32>
    %cst = arith.constant 0.000000e+00 : f32
    %2 = vector.broadcast %cst : f32 to vector<10x10x8xf32>
    %3 = arith.maximumf %1, %2 : vector<10x10x8xf32>
    %4 = arith.truncf %3 : vector<10x10x8xf32> to vector<10x10x8xbf16>
    %cst_3 = arith.constant 0.000000e+00 : f32
    %5 = vector.broadcast %cst_3 : f32 to vector<1x4xf32>
    %cst_4 = arith.constant 0.000000e+00 : f32
    %6 = vector.broadcast %cst_4 : f32 to vector<1x4xf32>
    %cst_5 = arith.constant 0.000000e+00 : f32
    %7 = vector.broadcast %cst_5 : f32 to vector<64x4xf32>
    %8 = vector.extract_strided_slice %4 {offsets = [0, 0, 0], sizes = [8, 8, 8], strides = [1, 1, 1]} : vector<10x10x8xbf16> to vector<8x8x8xbf16>
    %9 = vector.shape_cast %8 : vector<8x8x8xbf16> to vector<64x8xbf16>
    %c3 = arith.constant 3 : index
    %c3_6 = arith.constant 3 : index
    %c0_7 = arith.constant 0 : index
    %c0_8 = arith.constant 0 : index
    %10 = vector.load %arg2[%c3, %c3_6, %c0_7, %c0_8] : memref<4x4x8x4xbf16, #tpu.memory_space<vmem>>, vector<1x1x8x4xbf16>
    %11 = vector.shape_cast %10 : vector<1x1x8x4xbf16> to vector<8x4xbf16>
    %cst_9 = arith.constant dense<0.000000e+00> : vector<64x4xf32>
    %12 = tpu.matmul %9, %11, %cst_9 {dimension_numbers = #tpu.dot_dimension_numbers<[1], [0], [0], [1], [0, 0, 1, 1], [], []>} : vector<64x8xbf16>, vector<8x4xbf16>, vector<64x4xf32> -> vector<64x4xf32>
    %13 = arith.addf %7, %12 : vector<64x4xf32>
    %14 = vector.extract_strided_slice %4 {offsets = [0, 1, 0], sizes = [8, 8, 8], strides = [1, 1, 1]} : vector<10x10x8xbf16> to vector<8x8x8xbf16>
    %15 = vector.shape_cast %14 : vector<8x8x8xbf16> to vector<64x8xbf16>
    %c3_10 = arith.constant 3 : index
    %c1 = arith.constant 1 : index
    %c0_11 = arith.constant 0 : index
    %c0_12 = arith.constant 0 : index
    %16 = vector.load %arg2[%c3_10, %c1, %c0_11, %c0_12] : memref<4x4x8x4xbf16, #tpu.memory_space<vmem>>, vector<1x1x8x4xbf16>
    %17 = vector.shape_cast %16 : vector<1x1x8x4xbf16> to vector<8x4xbf16>
    %cst_13 = arith.constant dense<0.000000e+00> : vector<64x4xf32>
    %18 = tpu.matmul %15, %17, %cst_13 {dimension_numbers = #tpu.dot_dimension_numbers<[1], [0], [0], [1], [0, 0, 1, 1], [], []>} : vector<64x8xbf16>, vector<8x4xbf16>, vector<64x4xf32> -> vector<64x4xf32>
    %19 = arith.addf %13, %18 : vector<64x4xf32>
    %20 = vector.extract_strided_slice %4 {offsets = [1, 0, 0], sizes = [8, 8, 8], strides = [1, 1, 1]} : vector<10x10x8xbf16> to vector<8x8x8xbf16>
    %21 = vector.shape_cast %20 : vector<8x8x8xbf16> to vector<64x8xbf16>
    %c1_14 = arith.constant 1 : index
    %c3_15 = arith.constant 3 : index
    %c0_16 = arith.constant 0 : index
    %c0_17 = arith.constant 0 : index
    %22 = vector.load %arg2[%c1_14, %c3_15, %c0_16, %c0_17] : memref<4x4x8x4xbf16, #tpu.memory_space<vmem>>, vector<1x1x8x4xbf16>
    %23 = vector.shape_cast %22 : vector<1x1x8x4xbf16> to vector<8x4xbf16>
    %cst_18 = arith.constant dense<0.000000e+00> : vector<64x4xf32>
    %24 = tpu.matmul %21, %23, %cst_18 {dimension_numbers = #tpu.dot_dimension_numbers<[1], [0], [0], [1], [0, 0, 1, 1], [], []>} : vector<64x8xbf16>, vector<8x4xbf16>, vector<64x4xf32> -> vector<64x4xf32>
    %25 = arith.addf %19, %24 : vector<64x4xf32>
    %26 = vector.extract_strided_slice %4 {offsets = [1, 1, 0], sizes = [8, 8, 8], strides = [1, 1, 1]} : vector<10x10x8xbf16> to vector<8x8x8xbf16>
    %27 = vector.shape_cast %26 : vector<8x8x8xbf16> to vector<64x8xbf16>
    %c1_19 = arith.constant 1 : index
    %c1_20 = arith.constant 1 : index
    %c0_21 = arith.constant 0 : index
    %c0_22 = arith.constant 0 : index
    %28 = vector.load %arg2[%c1_19, %c1_20, %c0_21, %c0_22] : memref<4x4x8x4xbf16, #tpu.memory_space<vmem>>, vector<1x1x8x4xbf16>
    %29 = vector.shape_cast %28 : vector<1x1x8x4xbf16> to vector<8x4xbf16>
    %cst_23 = arith.constant dense<0.000000e+00> : vector<64x4xf32>
    %30 = tpu.matmul %27, %29, %cst_23 {dimension_numbers = #tpu.dot_dimension_numbers<[1], [0], [0], [1], [0, 0, 1, 1], [], []>} : vector<64x8xbf16>, vector<8x4xbf16>, vector<64x4xf32> -> vector<64x4xf32>
    %31 = arith.addf %25, %30 : vector<64x4xf32>
    %32 = vector.shape_cast %31 : vector<64x4xf32> to vector<8x8x4xf32>
    %c0_24 = arith.constant 0 : index
    %c0_25 = arith.constant 0 : index
    %c0_26 = arith.constant 0 : index
    %c0_27 = arith.constant 0 : index
    %c0_28 = arith.constant 0 : index
    %33 = vector.load %arg3[%c0_24, %c0_25, %c0_26, %c0_27, %c0_28] : memref<1x4x8x8x4xf32, #tpu.memory_space<vmem>>, vector<1x1x8x8x4xf32>
    %34 = vector.shape_cast %33 : vector<1x1x8x8x4xf32> to vector<8x8x4xf32>
    %35 = vector.shape_cast %32 : vector<8x8x4xf32> to vector<1x1x8x8x4xf32>
    tpu.vector_store %arg3[%c0_24, %c0_25, %c0_26, %c0_27, %c0_28], %35 {strides = array<i32>} : memref<1x4x8x8x4xf32, #tpu.memory_space<vmem>>, vector<1x1x8x8x4xf32>,
    %cst_29 = arith.constant dense<0.000000e+00> : vector<4xf32>
    %36 = vector.multi_reduction <add>, %31, %cst_29 [0] : vector<64x4xf32> to vector<4xf32>
    %37 = vector.shape_cast %36 : vector<4xf32> to vector<1x4xf32>
    %38 = arith.addf %5, %37 : vector<1x4xf32>
    %39 = arith.mulf %31, %31 : vector<64x4xf32>
    %cst_30 = arith.constant dense<0.000000e+00> : vector<4xf32>
    %40 = vector.multi_reduction <add>, %39, %cst_30 [0] : vector<64x4xf32> to vector<4xf32>
    %41 = vector.shape_cast %40 : vector<4xf32> to vector<1x4xf32>
    %42 = arith.addf %6, %41 : vector<1x4xf32>
    %cst_31 = arith.constant 0.000000e+00 : f32
    %43 = vector.broadcast %cst_31 : f32 to vector<64x4xf32>
    %44 = vector.extract_strided_slice %4 {offsets = [0, 1, 0], sizes = [8, 8, 8], strides = [1, 1, 1]} : vector<10x10x8xbf16> to vector<8x8x8xbf16>
    %45 = vector.shape_cast %44 : vector<8x8x8xbf16> to vector<64x8xbf16>
    %c3_32 = arith.constant 3 : index
    %c2 = arith.constant 2 : index
    %c0_33 = arith.constant 0 : index
    %c0_34 = arith.constant 0 : index
    %46 = vector.load %arg2[%c3_32, %c2, %c0_33, %c0_34] : memref<4x4x8x4xbf16, #tpu.memory_space<vmem>>, vector<1x1x8x4xbf16>
    %47 = vector.shape_cast %46 : vector<1x1x8x4xbf16> to vector<8x4xbf16>
    %cst_35 = arith.constant dense<0.000000e+00> : vector<64x4xf32>
    %48 = tpu.matmul %45, %47, %cst_35 {dimension_numbers = #tpu.dot_dimension_numbers<[1], [0], [0], [1], [0, 0, 1, 1], [], []>} : vector<64x8xbf16>, vector<8x4xbf16>, vector<64x4xf32> -> vector<64x4xf32>
    %49 = arith.addf %43, %48 : vector<64x4xf32>
    %50 = vector.extract_strided_slice %4 {offsets = [0, 2, 0], sizes = [8, 8, 8], strides = [1, 1, 1]} : vector<10x10x8xbf16> to vector<8x8x8xbf16>
    %51 = vector.shape_cast %50 : vector<8x8x8xbf16> to vector<64x8xbf16>
    %c3_36 = arith.constant 3 : index
    %c0_37 = arith.constant 0 : index
    %c0_38 = arith.constant 0 : index
    %c0_39 = arith.constant 0 : index
    %52 = vector.load %arg2[%c3_36, %c0_37, %c0_38, %c0_39] : memref<4x4x8x4xbf16, #tpu.memory_space<vmem>>, vector<1x1x8x4xbf16>
    %53 = vector.shape_cast %52 : vector<1x1x8x4xbf16> to vector<8x4xbf16>
    %cst_40 = arith.constant dense<0.000000e+00> : vector<64x4xf32>
    %54 = tpu.matmul %51, %53, %cst_40 {dimension_numbers = #tpu.dot_dimension_numbers<[1], [0], [0], [1], [0, 0, 1, 1], [], []>} : vector<64x8xbf16>, vector<8x4xbf16>, vector<64x4xf32> -> vector<64x4xf32>
    %55 = arith.addf %49, %54 : vector<64x4xf32>
    %56 = vector.extract_strided_slice %4 {offsets = [1, 1, 0], sizes = [8, 8, 8], strides = [1, 1, 1]} : vector<10x10x8xbf16> to vector<8x8x8xbf16>
    %57 = vector.shape_cast %56 : vector<8x8x8xbf16> to vector<64x8xbf16>
    %c1_41 = arith.constant 1 : index
    %c2_42 = arith.constant 2 : index
    %c0_43 = arith.constant 0 : index
    %c0_44 = arith.constant 0 : index
    %58 = vector.load %arg2[%c1_41, %c2_42, %c0_43, %c0_44] : memref<4x4x8x4xbf16, #tpu.memory_space<vmem>>, vector<1x1x8x4xbf16>
    %59 = vector.shape_cast %58 : vector<1x1x8x4xbf16> to vector<8x4xbf16>
    %cst_45 = arith.constant dense<0.000000e+00> : vector<64x4xf32>
    %60 = tpu.matmul %57, %59, %cst_45 {dimension_numbers = #tpu.dot_dimension_numbers<[1], [0], [0], [1], [0, 0, 1, 1], [], []>} : vector<64x8xbf16>, vector<8x4xbf16>, vector<64x4xf32> -> vector<64x4xf32>
    %61 = arith.addf %55, %60 : vector<64x4xf32>
    %62 = vector.extract_strided_slice %4 {offsets = [1, 2, 0], sizes = [8, 8, 8], strides = [1, 1, 1]} : vector<10x10x8xbf16> to vector<8x8x8xbf16>
    %63 = vector.shape_cast %62 : vector<8x8x8xbf16> to vector<64x8xbf16>
    %c1_46 = arith.constant 1 : index
    %c0_47 = arith.constant 0 : index
    %c0_48 = arith.constant 0 : index
    %c0_49 = arith.constant 0 : index
    %64 = vector.load %arg2[%c1_46, %c0_47, %c0_48, %c0_49] : memref<4x4x8x4xbf16, #tpu.memory_space<vmem>>, vector<1x1x8x4xbf16>
    %65 = vector.shape_cast %64 : vector<1x1x8x4xbf16> to vector<8x4xbf16>
    %cst_50 = arith.constant dense<0.000000e+00> : vector<64x4xf32>
    %66 = tpu.matmul %63, %65, %cst_50 {dimension_numbers = #tpu.dot_dimension_numbers<[1], [0], [0], [1], [0, 0, 1, 1], [], []>} : vector<64x8xbf16>, vector<8x4xbf16>, vector<64x4xf32> -> vector<64x4xf32>
    %67 = arith.addf %61, %66 : vector<64x4xf32>
    %68 = vector.shape_cast %67 : vector<64x4xf32> to vector<8x8x4xf32>
    %c0_51 = arith.constant 0 : index
    %c1_52 = arith.constant 1 : index
    %c0_53 = arith.constant 0 : index
    %c0_54 = arith.constant 0 : index
    %c0_55 = arith.constant 0 : index
    %69 = vector.load %arg3[%c0_51, %c1_52, %c0_53, %c0_54, %c0_55] : memref<1x4x8x8x4xf32, #tpu.memory_space<vmem>>, vector<1x1x8x8x4xf32>
    %70 = vector.shape_cast %69 : vector<1x1x8x8x4xf32> to vector<8x8x4xf32>
    %71 = vector.shape_cast %68 : vector<8x8x4xf32> to vector<1x1x8x8x4xf32>
    tpu.vector_store %arg3[%c0_51, %c1_52, %c0_53, %c0_54, %c0_55], %71 {strides = array<i32>} : memref<1x4x8x8x4xf32, #tpu.memory_space<vmem>>, vector<1x1x8x8x4xf32>,
    %cst_56 = arith.constant dense<0.000000e+00> : vector<4xf32>
    %72 = vector.multi_reduction <add>, %67, %cst_56 [0] : vector<64x4xf32> to vector<4xf32>
    %73 = vector.shape_cast %72 : vector<4xf32> to vector<1x4xf32>
    %74 = arith.addf %38, %73 : vector<1x4xf32>
    %75 = arith.mulf %67, %67 : vector<64x4xf32>
    %cst_57 = arith.constant dense<0.000000e+00> : vector<4xf32>
    %76 = vector.multi_reduction <add>, %75, %cst_57 [0] : vector<64x4xf32> to vector<4xf32>
    %77 = vector.shape_cast %76 : vector<4xf32> to vector<1x4xf32>
    %78 = arith.addf %42, %77 : vector<1x4xf32>
    %cst_58 = arith.constant 0.000000e+00 : f32
    %79 = vector.broadcast %cst_58 : f32 to vector<64x4xf32>
    %80 = vector.extract_strided_slice %4 {offsets = [1, 0, 0], sizes = [8, 8, 8], strides = [1, 1, 1]} : vector<10x10x8xbf16> to vector<8x8x8xbf16>
    %81 = vector.shape_cast %80 : vector<8x8x8xbf16> to vector<64x8xbf16>
    %c2_59 = arith.constant 2 : index
    %c3_60 = arith.constant 3 : index
    %c0_61 = arith.constant 0 : index
    %c0_62 = arith.constant 0 : index
    %82 = vector.load %arg2[%c2_59, %c3_60, %c0_61, %c0_62] : memref<4x4x8x4xbf16, #tpu.memory_space<vmem>>, vector<1x1x8x4xbf16>
    %83 = vector.shape_cast %82 : vector<1x1x8x4xbf16> to vector<8x4xbf16>
    %cst_63 = arith.constant dense<0.000000e+00> : vector<64x4xf32>
    %84 = tpu.matmul %81, %83, %cst_63 {dimension_numbers = #tpu.dot_dimension_numbers<[1], [0], [0], [1], [0, 0, 1, 1], [], []>} : vector<64x8xbf16>, vector<8x4xbf16>, vector<64x4xf32> -> vector<64x4xf32>
    %85 = arith.addf %79, %84 : vector<64x4xf32>
    %86 = vector.extract_strided_slice %4 {offsets = [1, 1, 0], sizes = [8, 8, 8], strides = [1, 1, 1]} : vector<10x10x8xbf16> to vector<8x8x8xbf16>
    %87 = vector.shape_cast %86 : vector<8x8x8xbf16> to vector<64x8xbf16>
    %c2_64 = arith.constant 2 : index
    %c1_65 = arith.constant 1 : index
    %c0_66 = arith.constant 0 : index
    %c0_67 = arith.constant 0 : index
    %88 = vector.load %arg2[%c2_64, %c1_65, %c0_66, %c0_67] : memref<4x4x8x4xbf16, #tpu.memory_space<vmem>>, vector<1x1x8x4xbf16>
    %89 = vector.shape_cast %88 : vector<1x1x8x4xbf16> to vector<8x4xbf16>
    %cst_68 = arith.constant dense<0.000000e+00> : vector<64x4xf32>
    %90 = tpu.matmul %87, %89, %cst_68 {dimension_numbers = #tpu.dot_dimension_numbers<[1], [0], [0], [1], [0, 0, 1, 1], [], []>} : vector<64x8xbf16>, vector<8x4xbf16>, vector<64x4xf32> -> vector<64x4xf32>
    %91 = arith.addf %85, %90 : vector<64x4xf32>
    %92 = vector.extract_strided_slice %4 {offsets = [2, 0, 0], sizes = [8, 8, 8], strides = [1, 1, 1]} : vector<10x10x8xbf16> to vector<8x8x8xbf16>
    %93 = vector.shape_cast %92 : vector<8x8x8xbf16> to vector<64x8xbf16>
    %c0_69 = arith.constant 0 : index
    %c3_70 = arith.constant 3 : index
    %c0_71 = arith.constant 0 : index
    %c0_72 = arith.constant 0 : index
    %94 = vector.load %arg2[%c0_69, %c3_70, %c0_71, %c0_72] : memref<4x4x8x4xbf16, #tpu.memory_space<vmem>>, vector<1x1x8x4xbf16>
    %95 = vector.shape_cast %94 : vector<1x1x8x4xbf16> to vector<8x4xbf16>
    %cst_73 = arith.constant dense<0.000000e+00> : vector<64x4xf32>
    %96 = tpu.matmul %93, %95, %cst_73 {dimension_numbers = #tpu.dot_dimension_numbers<[1], [0], [0], [1], [0, 0, 1, 1], [], []>} : vector<64x8xbf16>, vector<8x4xbf16>, vector<64x4xf32> -> vector<64x4xf32>
    %97 = arith.addf %91, %96 : vector<64x4xf32>
    %98 = vector.extract_strided_slice %4 {offsets = [2, 1, 0], sizes = [8, 8, 8], strides = [1, 1, 1]} : vector<10x10x8xbf16> to vector<8x8x8xbf16>
    %99 = vector.shape_cast %98 : vector<8x8x8xbf16> to vector<64x8xbf16>
    %c0_74 = arith.constant 0 : index
    %c1_75 = arith.constant 1 : index
    %c0_76 = arith.constant 0 : index
    %c0_77 = arith.constant 0 : index
    %100 = vector.load %arg2[%c0_74, %c1_75, %c0_76, %c0_77] : memref<4x4x8x4xbf16, #tpu.memory_space<vmem>>, vector<1x1x8x4xbf16>
    %101 = vector.shape_cast %100 : vector<1x1x8x4xbf16> to vector<8x4xbf16>
    %cst_78 = arith.constant dense<0.000000e+00> : vector<64x4xf32>
    %102 = tpu.matmul %99, %101, %cst_78 {dimension_numbers = #tpu.dot_dimension_numbers<[1], [0], [0], [1], [0, 0, 1, 1], [], []>} : vector<64x8xbf16>, vector<8x4xbf16>, vector<64x4xf32> -> vector<64x4xf32>
    %103 = arith.addf %97, %102 : vector<64x4xf32>
    %104 = vector.shape_cast %103 : vector<64x4xf32> to vector<8x8x4xf32>
    %c0_79 = arith.constant 0 : index
    %c2_80 = arith.constant 2 : index
    %c0_81 = arith.constant 0 : index
    %c0_82 = arith.constant 0 : index
    %c0_83 = arith.constant 0 : index
    %105 = vector.load %arg3[%c0_79, %c2_80, %c0_81, %c0_82, %c0_83] : memref<1x4x8x8x4xf32, #tpu.memory_space<vmem>>, vector<1x1x8x8x4xf32>
    %106 = vector.shape_cast %105 : vector<1x1x8x8x4xf32> to vector<8x8x4xf32>
    %107 = vector.shape_cast %104 : vector<8x8x4xf32> to vector<1x1x8x8x4xf32>
    tpu.vector_store %arg3[%c0_79, %c2_80, %c0_81, %c0_82, %c0_83], %107 {strides = array<i32>} : memref<1x4x8x8x4xf32, #tpu.memory_space<vmem>>, vector<1x1x8x8x4xf32>,
    %cst_84 = arith.constant dense<0.000000e+00> : vector<4xf32>
    %108 = vector.multi_reduction <add>, %103, %cst_84 [0] : vector<64x4xf32> to vector<4xf32>
    %109 = vector.shape_cast %108 : vector<4xf32> to vector<1x4xf32>
    %110 = arith.addf %74, %109 : vector<1x4xf32>
    %111 = arith.mulf %103, %103 : vector<64x4xf32>
    %cst_85 = arith.constant dense<0.000000e+00> : vector<4xf32>
    %112 = vector.multi_reduction <add>, %111, %cst_85 [0] : vector<64x4xf32> to vector<4xf32>
    %113 = vector.shape_cast %112 : vector<4xf32> to vector<1x4xf32>
    %114 = arith.addf %78, %113 : vector<1x4xf32>
    %cst_86 = arith.constant 0.000000e+00 : f32
    %115 = vector.broadcast %cst_86 : f32 to vector<64x4xf32>
    %116 = vector.extract_strided_slice %4 {offsets = [1, 1, 0], sizes = [8, 8, 8], strides = [1, 1, 1]} : vector<10x10x8xbf16> to vector<8x8x8xbf16>
    %117 = vector.shape_cast %116 : vector<8x8x8xbf16> to vector<64x8xbf16>
    %c2_87 = arith.constant 2 : index
    %c2_88 = arith.constant 2 : index
    %c0_89 = arith.constant 0 : index
    %c0_90 = arith.constant 0 : index
    %118 = vector.load %arg2[%c2_87, %c2_88, %c0_89, %c0_90] : memref<4x4x8x4xbf16, #tpu.memory_space<vmem>>, vector<1x1x8x4xbf16>
    %119 = vector.shape_cast %118 : vector<1x1x8x4xbf16> to vector<8x4xbf16>
    %cst_91 = arith.constant dense<0.000000e+00> : vector<64x4xf32>
    %120 = tpu.matmul %117, %119, %cst_91 {dimension_numbers = #tpu.dot_dimension_numbers<[1], [0], [0], [1], [0, 0, 1, 1], [], []>} : vector<64x8xbf16>, vector<8x4xbf16>, vector<64x4xf32> -> vector<64x4xf32>
    %121 = arith.addf %115, %120 : vector<64x4xf32>
    %122 = vector.extract_strided_slice %4 {offsets = [1, 2, 0], sizes = [8, 8, 8], strides = [1, 1, 1]} : vector<10x10x8xbf16> to vector<8x8x8xbf16>
    %123 = vector.shape_cast %122 : vector<8x8x8xbf16> to vector<64x8xbf16>
    %c2_92 = arith.constant 2 : index
    %c0_93 = arith.constant 0 : index
    %c0_94 = arith.constant 0 : index
    %c0_95 = arith.constant 0 : index
    %124 = vector.load %arg2[%c2_92, %c0_93, %c0_94, %c0_95] : memref<4x4x8x4xbf16, #tpu.memory_space<vmem>>, vector<1x1x8x4xbf16>
    %125 = vector.shape_cast %124 : vector<1x1x8x4xbf16> to vector<8x4xbf16>
    %cst_96 = arith.constant dense<0.000000e+00> : vector<64x4xf32>
    %126 = tpu.matmul %123, %125, %cst_96 {dimension_numbers = #tpu.dot_dimension_numbers<[1], [0], [0], [1], [0, 0, 1, 1], [], []>} : vector<64x8xbf16>, vector<8x4xbf16>, vector<64x4xf32> -> vector<64x4xf32>
    %127 = arith.addf %121, %126 : vector<64x4xf32>
    %128 = vector.extract_strided_slice %4 {offsets = [2, 1, 0], sizes = [8, 8, 8], strides = [1, 1, 1]} : vector<10x10x8xbf16> to vector<8x8x8xbf16>
    %129 = vector.shape_cast %128 : vector<8x8x8xbf16> to vector<64x8xbf16>
    %c0_97 = arith.constant 0 : index
    %c2_98 = arith.constant 2 : index
    %c0_99 = arith.constant 0 : index
    %c0_100 = arith.constant 0 : index
    %130 = vector.load %arg2[%c0_97, %c2_98, %c0_99, %c0_100] : memref<4x4x8x4xbf16, #tpu.memory_space<vmem>>, vector<1x1x8x4xbf16>
    %131 = vector.shape_cast %130 : vector<1x1x8x4xbf16> to vector<8x4xbf16>
    %cst_101 = arith.constant dense<0.000000e+00> : vector<64x4xf32>
    %132 = tpu.matmul %129, %131, %cst_101 {dimension_numbers = #tpu.dot_dimension_numbers<[1], [0], [0], [1], [0, 0, 1, 1], [], []>} : vector<64x8xbf16>, vector<8x4xbf16>, vector<64x4xf32> -> vector<64x4xf32>
    %133 = arith.addf %127, %132 : vector<64x4xf32>
    %134 = vector.extract_strided_slice %4 {offsets = [2, 2, 0], sizes = [8, 8, 8], strides = [1, 1, 1]} : vector<10x10x8xbf16> to vector<8x8x8xbf16>
    %135 = vector.shape_cast %134 : vector<8x8x8xbf16> to vector<64x8xbf16>
    %c0_102 = arith.constant 0 : index
    %c0_103 = arith.constant 0 : index
    %c0_104 = arith.constant 0 : index
    %c0_105 = arith.constant 0 : index
    %136 = vector.load %arg2[%c0_102, %c0_103, %c0_104, %c0_105] : memref<4x4x8x4xbf16, #tpu.memory_space<vmem>>, vector<1x1x8x4xbf16>
    %137 = vector.shape_cast %136 : vector<1x1x8x4xbf16> to vector<8x4xbf16>
    %cst_106 = arith.constant dense<0.000000e+00> : vector<64x4xf32>
    %138 = tpu.matmul %135, %137, %cst_106 {dimension_numbers = #tpu.dot_dimension_numbers<[1], [0], [0], [1], [0, 0, 1, 1], [], []>} : vector<64x8xbf16>, vector<8x4xbf16>, vector<64x4xf32> -> vector<64x4xf32>
    %139 = arith.addf %133, %138 : vector<64x4xf32>
    %140 = vector.shape_cast %139 : vector<64x4xf32> to vector<8x8x4xf32>
    %c0_107 = arith.constant 0 : index
    %c3_108 = arith.constant 3 : index
    %c0_109 = arith.constant 0 : index
    %c0_110 = arith.constant 0 : index
    %c0_111 = arith.constant 0 : index
    %141 = vector.load %arg3[%c0_107, %c3_108, %c0_109, %c0_110, %c0_111] : memref<1x4x8x8x4xf32, #tpu.memory_space<vmem>>, vector<1x1x8x8x4xf32>
    %142 = vector.shape_cast %141 : vector<1x1x8x8x4xf32> to vector<8x8x4xf32>
    %143 = vector.shape_cast %140 : vector<8x8x4xf32> to vector<1x1x8x8x4xf32>
    tpu.vector_store %arg3[%c0_107, %c3_108, %c0_109, %c0_110, %c0_111], %143 {strides = array<i32>} : memref<1x4x8x8x4xf32, #tpu.memory_space<vmem>>, vector<1x1x8x8x4xf32>,
    %cst_112 = arith.constant dense<0.000000e+00> : vector<4xf32>
    %144 = vector.multi_reduction <add>, %139, %cst_112 [0] : vector<64x4xf32> to vector<4xf32>
    %145 = vector.shape_cast %144 : vector<4xf32> to vector<1x4xf32>
    %146 = arith.addf %110, %145 : vector<1x4xf32>
    %147 = arith.mulf %139, %139 : vector<64x4xf32>
    %cst_113 = arith.constant dense<0.000000e+00> : vector<4xf32>
    %148 = vector.multi_reduction <add>, %147, %cst_113 [0] : vector<64x4xf32> to vector<4xf32>
    %149 = vector.shape_cast %148 : vector<4xf32> to vector<1x4xf32>
    %150 = arith.addf %114, %149 : vector<1x4xf32>
    %c0_114 = arith.constant 0 : index
    %c0_115 = arith.constant 0 : index
    %c0_116 = arith.constant 0 : index
    %151 = vector.load %arg4[%c0_114, %c0_115, %c0_116] : memref<1x2x4xf32, #tpu.memory_space<vmem>>, vector<1x1x4xf32>
    %152 = vector.shape_cast %151 : vector<1x1x4xf32> to vector<1x4xf32>
    %153 = vector.shape_cast %146 : vector<1x4xf32> to vector<1x1x4xf32>
    tpu.vector_store %arg4[%c0_114, %c0_115, %c0_116], %153 {strides = array<i32>} : memref<1x2x4xf32, #tpu.memory_space<vmem>>, vector<1x1x4xf32>,
    %c0_117 = arith.constant 0 : index
    %c1_118 = arith.constant 1 : index
    %c0_119 = arith.constant 0 : index
    %154 = vector.load %arg4[%c0_117, %c1_118, %c0_119] : memref<1x2x4xf32, #tpu.memory_space<vmem>>, vector<1x1x4xf32>
    %155 = vector.shape_cast %154 : vector<1x1x4xf32> to vector<1x4xf32>
    %156 = vector.shape_cast %150 : vector<1x4xf32> to vector<1x1x4xf32>
    tpu.vector_store %arg4[%c0_117, %c1_118, %c0_119], %156 {strides = array<i32>} : memref<1x2x4xf32, #tpu.memory_space<vmem>>, vector<1x1x4xf32>,
    return
  }
  func.func @transform_0(%arg0: i32) -> (i32, i32, i32, i32) {
    %c0_i32 = arith.constant 0 : i32
    %c0_i32_0 = arith.constant 0 : i32
    %c0_i32_1 = arith.constant 0 : i32
    %c0_i32_2 = arith.constant 0 : i32
    return %arg0, %c0_i32, %c0_i32_0, %c0_i32_1 : i32, i32, i32, i32
  }
  func.func @transform_1(%arg0: i32) -> (i32, i32, i32, i32) {
    %c0_i32 = arith.constant 0 : i32
    %c0_i32_0 = arith.constant 0 : i32
    %c0_i32_1 = arith.constant 0 : i32
    %c0_i32_2 = arith.constant 0 : i32
    %c0_i32_3 = arith.constant 0 : i32
    return %c0_i32, %c0_i32_0, %c0_i32_1, %c0_i32_2 : i32, i32, i32, i32
  }
  func.func @transform_2(%arg0: i32) -> (i32, i32, i32, i32, i32) {
    %c0_i32 = arith.constant 0 : i32
    %c0_i32_0 = arith.constant 0 : i32
    %c0_i32_1 = arith.constant 0 : i32
    %c0_i32_2 = arith.constant 0 : i32
    %c0_i32_3 = arith.constant 0 : i32
    return %arg0, %c0_i32, %c0_i32_0, %c0_i32_1, %c0_i32_2 : i32, i32, i32, i32, i32
  }
  func.func @transform_3(%arg0: i32) -> (i32, i32, i32) {
    %c0_i32 = arith.constant 0 : i32
    %c0_i32_0 = arith.constant 0 : i32
    %c0_i32_1 = arith.constant 0 : i32
    return %arg0, %c0_i32, %c0_i32_0 : i32, i32, i32
  }
}

module attributes {stable_mosaic.version = 11 : i64} {
  func.func @_finalize_kernel(%arg0: i32, %arg1: memref<1x4x256xf32, #tpu.memory_space<vmem>>, %arg2: memref<1x4x256xf32, #tpu.memory_space<vmem>>, %arg3: memref<4x1xf32, #tpu.memory_space<vmem>>, %arg4: memref<4x1xf32, #tpu.memory_space<vmem>>, %arg5: memref<1x8x256xf32, #tpu.memory_space<vmem>>) attributes {dimension_semantics = [#tpu.dimension_semantics<parallel>], iteration_bounds = array<i64: 2>, scalar_prefetch = 0 : i64, scratch_operands = 0 : i64, tpu.core_type = #tpu.core_type<tc>, window_params = [{transform_indices = @transform_0, window_bounds = array<i64: 1, 4, 256>}, {transform_indices = @transform_1, window_bounds = array<i64: 1, 4, 256>}, {pipeline_mode = #tpu.pipeline_mode<synchronous>, transform_indices = @transform_2, window_bounds = array<i64: 4, 1>}, {pipeline_mode = #tpu.pipeline_mode<synchronous>, transform_indices = @transform_3, window_bounds = array<i64: 4, 1>}, {transform_indices = @transform_4, window_bounds = array<i64: 1, 8, 256>}]} {
    %c0 = arith.constant 0 : index
    %c0_0 = arith.constant 0 : index
    %c0_1 = arith.constant 0 : index
    %0 = vector.load %arg1[%c0, %c0_0, %c0_1] : memref<1x4x256xf32, #tpu.memory_space<vmem>>, vector<1x4x256xf32>
    %1 = vector.shape_cast %0 : vector<1x4x256xf32> to vector<4x256xf32>
    %c0_2 = arith.constant 0 : index
    %c0_3 = arith.constant 0 : index
    %c0_4 = arith.constant 0 : index
    %2 = vector.load %arg5[%c0_2, %c0_3, %c0_4] : memref<1x8x256xf32, #tpu.memory_space<vmem>>, vector<1x4x256xf32>
    %3 = vector.shape_cast %2 : vector<1x4x256xf32> to vector<4x256xf32>
    %4 = vector.shape_cast %1 : vector<4x256xf32> to vector<1x4x256xf32>
    tpu.vector_store %arg5[%c0_2, %c0_3, %c0_4], %4 {strides = array<i32>} : memref<1x8x256xf32, #tpu.memory_space<vmem>>, vector<1x4x256xf32>,
    %c0_5 = arith.constant 0 : index
    %c0_6 = arith.constant 0 : index
    %c0_7 = arith.constant 0 : index
    %5 = vector.load %arg2[%c0_5, %c0_6, %c0_7] : memref<1x4x256xf32, #tpu.memory_space<vmem>>, vector<1x4x256xf32>
    %6 = vector.shape_cast %5 : vector<1x4x256xf32> to vector<4x256xf32>
    %c0_8 = arith.constant 0 : index
    %c0_9 = arith.constant 0 : index
    %7 = vector.load %arg3[%c0_8, %c0_9] : memref<4x1xf32, #tpu.memory_space<vmem>>, vector<4x1xf32>
    %8 = vector.broadcast %7 : vector<4x1xf32> to vector<4x256xf32>
    %9 = arith.mulf %6, %8 : vector<4x256xf32>
    %c0_10 = arith.constant 0 : index
    %c0_11 = arith.constant 0 : index
    %10 = vector.load %arg4[%c0_10, %c0_11] : memref<4x1xf32, #tpu.memory_space<vmem>>, vector<4x1xf32>
    %11 = vector.broadcast %10 : vector<4x1xf32> to vector<4x256xf32>
    %12 = arith.addf %9, %11 : vector<4x256xf32>
    %c0_12 = arith.constant 0 : index
    %c4 = arith.constant 4 : index
    %c0_13 = arith.constant 0 : index
    %13 = vector.load %arg5[%c0_12, %c4, %c0_13] : memref<1x8x256xf32, #tpu.memory_space<vmem>>, vector<1x4x256xf32>
    %14 = vector.shape_cast %13 : vector<1x4x256xf32> to vector<4x256xf32>
    %15 = vector.shape_cast %12 : vector<4x256xf32> to vector<1x4x256xf32>
    tpu.vector_store %arg5[%c0_12, %c4, %c0_13], %15 {strides = array<i32>} : memref<1x8x256xf32, #tpu.memory_space<vmem>>, vector<1x4x256xf32>,
    return
  }
  func.func @transform_0(%arg0: i32) -> (i32, i32, i32) {
    %c0_i32 = arith.constant 0 : i32
    %c0_i32_0 = arith.constant 0 : i32
    %c0_i32_1 = arith.constant 0 : i32
    return %arg0, %c0_i32, %c0_i32_0 : i32, i32, i32
  }
  func.func @transform_1(%arg0: i32) -> (i32, i32, i32) {
    %c0_i32 = arith.constant 0 : i32
    %c0_i32_0 = arith.constant 0 : i32
    %c0_i32_1 = arith.constant 0 : i32
    return %arg0, %c0_i32, %c0_i32_0 : i32, i32, i32
  }
  func.func @transform_2(%arg0: i32) -> (i32, i32) {
    %c0_i32 = arith.constant 0 : i32
    %c0_i32_0 = arith.constant 0 : i32
    %c0_i32_1 = arith.constant 0 : i32
    return %c0_i32, %c0_i32_0 : i32, i32
  }
  func.func @transform_3(%arg0: i32) -> (i32, i32) {
    %c0_i32 = arith.constant 0 : i32
    %c0_i32_0 = arith.constant 0 : i32
    %c0_i32_1 = arith.constant 0 : i32
    return %c0_i32, %c0_i32_0 : i32, i32
  }
  func.func @transform_4(%arg0: i32) -> (i32, i32, i32) {
    %c0_i32 = arith.constant 0 : i32
    %c0_i32_0 = arith.constant 0 : i32
    %c0_i32_1 = arith.constant 0 : i32
    return %arg0, %c0_i32, %c0_i32_0 : i32, i32, i32
  }
}

</mosaic_0001>

<bundles_post_ra>
// kernel: unet_innermost_forward.5
= control target key start
LH: loop header
LB: loop body
LE: loop exit
PB: predicated region body
PF: predicated region fallthrough
CT: control target
= control target key end

     0   :  { %s388_s15 = smov 0   ;;  %s414_s0 = inlined_call_operand.vmem [shape: f32[2,4,256], index: 0, kind: input, shape index: {}]   ;;  %s415_s1 = inlined_call_operand.vmem [shape: f32[2,4,256], index: 1, kind: input, shape index: {}]   ;;  %s416_s2 = inlined_call_operand.vmem [shape: f32[4,1], index: 2, kind: input, shape index: {}]   ;;  %s417_s3 = inlined_call_operand.vmem [shape: f32[4,1], index: 3, kind: input, shape index: {}]   ;;  %s418_s4 = inlined_call_operand.vmem [shape: f32[2,8,256], index: 4, kind: output, shape index: {}]  }
   0x1 LB: > { %s325_s16 = sadd.s32 4294967295, %s359_s15   ;;  %p329_p0 = scmp.ge.s32.totalorder %s359_s15, 1  ;;  %s359_s15 = sphi %s388_s15, %s14_s15  }
   0x2   : > { %p172_p1 = scmp.lt.s32.totalorder %s359_s15, 3 }
   0x4   : > { %p173_p2 = pnand %p329_p0, %p172_p1 }
   0x5   : > { %p203_p3 = scmp.lt.s32.totalorder (!%p173_p2), %s325_s16, 1 }
   0x6   : > { %176 = sbr.rel (%p173_p2) target bundleno = 148 (0x94), region = 36 }
   0xb   : > { %v225_v0 = vld [vmem:[%s416_s2] sm:$0xf]  ;;  %v361_v1 = vmov 0   ;;  %s420_s16 = smov (!%p203_p3, %s325_s16), 1  ;;  %v362_v5 = vmov 839922192   ;;  %v233_v7 = vlaneseq }
   0xc   : > { %351 = vset.pattern.permute.xlu0 %v361_v1  ;;  %v239_v2 = vld [vmem:[%s417_s3] sm:$0xf]  ;;  %s338_s21 = sshll.u32 %s420_s16, 3  ;;  %s340_s22 = sshll.u32 %s420_s16, 4  ;;  %v231_v6 = vunpack.c.l.s4 %v362_v5 }
   0xd   : > { %228 = vperm.xlu0 %351, %v225_v0   ;;  %s207_s25 = scalar_lea.vmem %s414_s0, %s338_s21  ;;  %s217_s28 = scalar_lea.vmem %s418_s4, %s340_s22  ;;  %v234_v9 = vshrl.u32 %v233_v7, 7 }
   0xe   : > { %v218_v3 = vld [vmem:[%s207_s25] sm:$0xff]  ;;  %v232_v8 = vunpack.c.0.s8 %v231_v6  ;;  %s212_s5 = scalar_lea.vmem %s415_s1, %s338_s21 }
   0xf   : > { %v220_v4 = vcombine.high %v218_v3, %v218_v3  ;;  %222 = vst [vmem:[%s217_s28] sm:$0xf] %v218_v3  ;;  %v224_v13 = vld [vmem:[%s212_s5] sm:$0xff] }
  0x10   : > { %v235_v10 = vsub.s32 %v232_v8, %v234_v9 }
  0x11   : > { %242 = vperm.xlu0 %351, %v239_v2   ;;  %223 = vst [vmem:[%s217_s28 + $0x8] sm:$0xf] %v220_v4 }
  0x88   : > { %v229_v11 = vpop.permute.xlu0 %228 }
  0x89   : > { %v236_v12 = vrot.slane %v229_v11, %v235_v10 }
  0x8b   : > { %v238_v15 = vmul.f32 %v236_v12, %v224_v13 }
  0x8c   : > { %v243_v14 = vpop.permute.xlu0 %242 }
  0x8d   : > { %v250_v16 = vrot.slane %v243_v14, %v235_v10 }
  0x8f   : > { %v252_v17 = vadd.f32 %v250_v16, %v238_v15 }
  0x91   : > { %v254_v18 = vcombine.low %v252_v17, %v252_v17  ;;  %257 = vst [vmem:[%s217_s28 + $0x8] sm:$0xf0] %v252_v17 }
  0x93   : > { %256 = vst [vmem:[%s217_s28] sm:$0xf0] %v254_v18 }
  0x94 PF: > { %s14_s15 = sadd.s32 1, %s359_s15  }
  0x95   : > { %p11_p4 = scmp.ge.s32.totalorder %s14_s15, 4  }
  0x97   :  { %13 = sbr.rel (!%p11_p4) target bundleno = 1 (0x1), region = 69 }

// kernel: unet_innermost_forward.4
= control target key start
LH: loop header
LB: loop body
LE: loop exit
PB: predicated region body
PF: predicated region fallthrough
CT: control target
= control target key end

     0   :  { %s2609_s12 = smov 0   ;;  %s3319_s0 = inlined_call_operand.vmem [shape: f32[2,10,10,8], index: 0, kind: input, shape index: {}]   ;;  %s3320_s1 = inlined_call_operand.vmem [shape: bf16[4,4,8,4], index: 1, kind: input, shape index: {}]   ;;  %s3321_s2 = inlined_call_operand.vmem [shape: f32[2,4,8,8,4], index: 2, kind: output, shape index: {0}]   ;;  %s3322_s3 = inlined_call_operand.vmem [shape: f32[2,2,4], index: 3, kind: output, shape index: {1}]  }
   0x1 LB: > { %s2115_s13 = sadd.s32 4294967295, %s2587_s12   ;;  %p2119_p0 = scmp.ge.s32.totalorder %s2587_s12, 1  ;;  %s2587_s12 = sphi %s2609_s12, %s14_s12  }
   0x2   : > { %p140_p1 = scmp.lt.s32.totalorder %s2587_s12, 3 }
   0x4   : > { %p141_p2 = pnand %p2119_p0, %p140_p1 }
   0x5   : > { %p168_p3 = scmp.lt.s32.totalorder (!%p141_p2), %s2115_s13, 1 }
   0x6   : > { %144 = sbr.rel (%p141_p2) target bundleno = 392 (0x188), region = 28 }
   0xb   : > { %v2124_v0 = vld [vmem:[%s3320_s1 + $0x3c] sm:$0xf]  ;;  %vm417_vm0 = vcmask 1043456   ;;  %v2141_v1 = vld [vmem:[%s3320_s1 + $0x34] sm:$0xf]  ;;  %s3328_s13 = smov (!%p168_p3, %s2115_s13), 1 }
   0xc   : > { %2557 = vmatprep.subr.msk.bf16.mxu1 %vm417_vm0, %v2124_v0  ;;  %v503_v2 = vsel %vm417_vm0, %v2124_v0, 0  ;;  %2556 = vmatprep.subr.msk.bf16.mxu0 %vm417_vm0, %v2141_v1  ;;  %v419_v3 = vsel %vm417_vm0, %v2141_v1, 0  ;;  %v2632_v4 = vld [vmem:[%s3320_s1 + $0x1c] sm:$0xf]  ;;  %v2169_v5 = vld [vmem:[%s3320_s1 + $0x14] sm:$0xf] }
   0xd   : > { %2407 = vmatpush3.bf16.msra.mxu1 %v503_v2  ;;  %2397 = vmatpush3.bf16.msra.mxu0 %v419_v3  ;;  %s2572_s22 = smul.u32 160, %s3328_s13  ;;  %vm404_vm1 = vcmask 64512   ;;  %vm275_vm2 = vsmask.f32 3328  ;;  %vm276_vm3 = vsmask.f32 7440 }
   0xe   : > { %2558 = vmatprep.subr.msk.bf16.mxu0 %vm417_vm0, %v2632_v4  ;;  %2559 = vmatprep.subr.msk.bf16.mxu1 %vm417_vm0, %v2169_v5  ;;  %v703_v23 = vsel %vm417_vm0, %v2169_v5, 0  ;;  %v2680_v31 = vld [vmem:[%s3320_s1 + $0x38] sm:$0xf]  ;;  %vm2721_vm4 = vmor %vm275_vm2, %vm276_vm3  ;;  %vm841_vm5 = vcmask 1042432   ;;  %vm842_vm6 = vcmask 1046532   ;;  %vm778_vm8 = vcmask 31744  }
   0xf   : > { %s2644_s25 = scalar_lea.vmem %s3319_s0, %s2572_s22  ;;  %vm2876_vm7 = vmor %vm841_vm5, %vm842_vm6  ;;  %v2224_v60 = vld [vmem:[%s3320_s1 + $0x24] sm:$0xf]  ;;  %s2123_s29 = sshll.u32 %s3328_s13, 1  ;;  %vm2026_vm9 = vcmask 24576  }
  0x10   : > { %v183_v6 = vld [vmem:[%s2644_s25] sm:$0xff]  ;;  %v185_v7 = vld [vmem:[%s2644_s25 + $0x10] sm:$0xff]  ;;  %v184_v13 = vld [vmem:[%s2644_s25 + $0x8] sm:$0x3]  ;;  %s181_s5 = scalar_lea.vmem %s3322_s3, %s2123_s29 }
  0x11   : > { %v187_v8 = vld [vmem:[%s2644_s25 + $0x20] sm:$0xff]  ;;  %v203_v9 = vmax.f32 %v183_v6, 0.0  ;;  %v2649_v10 = vmax.f32 %v185_v7, 0.0  ;;  %v189_v11 = vld [vmem:[%s2644_s25 + $0x30] sm:$0xff]  ;;  %v186_v15 = vld [vmem:[%s2644_s25 + $0x18] sm:$0x3] }
  0x12   : > { %v2652_v12 = vmax.f32 %v187_v8, 0.0  ;;  %v2655_v14 = vmax.f32 %v189_v11, 0.0  ;;  %v188_v16 = vld [vmem:[%s2644_s25 + $0x28] sm:$0x3]  ;;  %v191_v17 = vld [vmem:[%s2644_s25 + $0x40] sm:$0xff]  ;;  %v204_v22 = vmax.f32 %v184_v13, 0.0 }
  0x13   : > { %v2660_v18 = vpack.c.bf16 %v203_v9, %v203_v9  ;;  %v2303_v19 = vpack.c.bf16 %v2649_v10, %v203_v9  ;;  %v190_v20 = vld [vmem:[%s2644_s25 + $0x38] sm:$0x3]  ;;  %v192_v21 = vld [vmem:[%s2644_s25 + $0x48] sm:$0x3]  ;;  %v2668_v24 = vpack.c.bf16 %v2649_v10, %v2649_v10  ;;  %v206_v26 = vmax.f32 %v186_v15, 0.0 }
  0x14   : > { %v2672_v25 = vpack.c.bf16 %v2655_v14, %v2652_v12  ;;  %v208_v27 = vmax.f32 %v188_v16, 0.0  ;;  %v210_v28 = vmax.f32 %v190_v20, 0.0  ;;  %v2675_v29 = vmax.f32 %v191_v17, 0.0  ;;  %v195_v20 = vld [vmem:[%s2644_s25 + $0x60] sm:$0xff] }
  0x15   : > { %2408 = vmatprep.mubr.msk.bf16.mxu1 %vm404_vm1, %v2303_v19  ;;  %v212_v30 = vmax.f32 %v192_v21, 0.0  ;;  %v2684_v32 = vpack.c.bf16 %v2655_v14, %v2655_v14  ;;  %v2688_v33 = vpack.c.bf16 %v204_v22, %v204_v22  ;;  %v2690_v34 = vpack.c.bf16 %v206_v26, %v206_v26  ;;  %v193_v19 = vld [vmem:[%s2644_s25 + $0x50] sm:$0xff] }
  0x16   : > { %2409 = vmatmul.mubr.msk.bf16.vlgmr.msra.gmra.mxu1 %vm404_vm1, %v2672_v25  ;;  %v2694_v35 = vpack.c.bf16 %v2652_v12, %v2652_v12  ;;  %v2696_v36 = vpack.c.bf16 %v208_v27, %v208_v27  ;;  %v2698_v37 = vpack.c.bf16 %v210_v28, %v210_v28  ;;  %v2702_v38 = vpack.c.bf16 %v2675_v29, %v2675_v29  ;;  %v197_v27 = vld [vmem:[%s2644_s25 + $0x70] sm:$0xff]  ;;  %v194_v28 = vld [vmem:[%s2644_s25 + $0x58] sm:$0x3] }
  0x17   : > { %v2704_v39 = vpack.c.bf16 %v212_v30, %v212_v30  ;;  %2427 = vmatpush3.bf16.msra.mxu1 %v703_v23  ;;  %v279_v40 = vshrl.u32 %v2660_v18, 16  ;;  %v282_v41 = vshll.u32 %v2660_v18, 16  ;;  %v288_v42 = vshll.u32 %v2688_v33, 16 }
  0x18   : > { %v293_v43 = vshrl.u32 %v2668_v24, 16  ;;  %2561 = vmatprep.subr.msk.bf16.mxu1 %vm417_vm0, %v2680_v31  ;;  %v296_v44 = vshll.u32 %v2668_v24, 16  ;;  %v302_v45 = vshll.u32 %v2690_v34, 16  ;;  %v307_v46 = vshrl.u32 %v2694_v35, 16 }
  0x19   : > { %v310_v47 = vshll.u32 %v2694_v35, 16  ;;  %v281_v48 = vrot.slane %v279_v40, 4  ;;  %v284_v49 = vrot.slane %v282_v41, 5  ;;  %v290_v50 = vrot.slane %v288_v42, 5 }
  0x1a   : > { %v295_v51 = vrot.slane %v293_v43, 4  ;;  %v298_v52 = vrot.slane %v296_v44, 5  ;;  %v304_v53 = vrot.slane %v302_v45, 5  ;;  %v309_v54 = vrot.slane %v307_v46, 4  ;;  %v196_v45 = vld [vmem:[%s2644_s25 + $0x68] sm:$0x3] }
  0x1b   : > { %v312_v55 = vrot.slane %v310_v47, 5  ;;  %v285_v56 = vor.u32 %v284_v49, %v281_v48  ;;  %v316_v57 = vshll.u32 %v2696_v36, 16  ;;  %v321_v58 = vshrl.u32 %v2684_v32, 16 }
  0x1c   : > { %v324_v59 = vshll.u32 %v2684_v32, 16  ;;  %v299_v61 = vor.u32 %v298_v52, %v295_v51  ;;  %v330_v63 = vshll.u32 %v2698_v37, 16  ;;  %v335_v0 = vshrl.u32 %v2702_v38, 16 }
  0x1d   : > { %v313_v62 = vor.u32 %v312_v55, %v309_v54  ;;  %v286_v1 = vrot.slane %v285_v56, 4  ;;  %v318_v2 = vrot.slane %v316_v57, 5  ;;  %v323_v3 = vrot.slane %v321_v58, 4  ;;  %v2774_v54 = vld [vmem:[%s3320_s1 + $0x30] sm:$0xf] }
  0x1e   : > { %v326_v5 = vrot.slane %v324_v59, 5  ;;  %v300_v6 = vrot.slane %v299_v61, 4  ;;  %v332_v8 = vrot.slane %v330_v63, 5  ;;  %v337_v9 = vrot.slane %v335_v0, 4 }
  0x1f   : > { %v314_v7 = vrot.slane %v313_v62, 4  ;;  %v291_v11 = vsel %vm2721_vm4, %v286_v1, %v290_v50  ;;  %v338_v15 = vshll.u32 %v2702_v38, 16  ;;  %v344_v16 = vshll.u32 %v2704_v39, 16 }
  0x20   : > { %v327_v13 = vor.u32 %v326_v5, %v323_v3  ;;  %v305_v17 = vsel %vm2721_vm4, %v300_v6, %v304_v53  ;;  %v591_v40 = vsel %vm417_vm0, %v2632_v4, 0  ;;  %v2747_v43 = vmax.f32 %v193_v19, 0.0  ;;  %v198_v4 = vld [vmem:[%s2644_s25 + $0x78] sm:$0x3] }
  0x21   : > { %v319_v21 = vsel %vm2721_vm4, %v314_v7, %v318_v2  ;;  %v340_v23 = vrot.slane %v338_v15, 5  ;;  %v2737_v26 = vcombine.low %v291_v11, %v305_v17  ;;  %v346_v30 = vrot.slane %v344_v16, 5 }
  0x22   : > { %v328_v22 = vrot.slane %v327_v13, 4  ;;  %v2749_v44 = vmax.f32 %v195_v20, 0.0  ;;  %v2754_v47 = vcombine.low %v305_v17, %v319_v21  ;;  %v2756_v48 = vmax.f32 %v197_v27, 0.0  ;;  %v199_v20 = vld [vmem:[%s2644_s25 + $0x80] sm:$0xff] }
  0x23   : > { %v341_v42 = vor.u32 %v340_v23, %v337_v9  ;;  %2398 = vmatprep.mubr.msk.bf16.mxu0 %vm404_vm1, %v2737_v26  ;;  %v214_v49 = vmax.f32 %v194_v28, 0.0  ;;  %v2761_v51 = vpack.c.bf16 %v2747_v43, %v2747_v43  ;;  %v2765_v52 = vpack.c.bf16 %v2747_v43, %v2675_v29 }
  0x24   : > { %v333_v41 = vsel %vm2721_vm4, %v328_v22, %v332_v8  ;;  %v2769_v53 = vpack.c.bf16 %v2749_v44, %v2749_v44  ;;  %v2780_v55 = vpack.c.bf16 %v2756_v48, %v2756_v48  ;;  %v2784_v56 = vpack.c.bf16 %v2756_v48, %v2749_v44 }
  0x25   : > { %v2752_v46 = vcombine.low %v319_v21, %v333_v41  ;;  %v342_v50 = vrot.slane %v341_v42, 4  ;;  %v2786_v57 = vpack.c.bf16 %v214_v49, %v214_v49  ;;  %v216_v58 = vmax.f32 %v196_v45, 0.0  ;;  %2412 = vmatprep.mubr.msk.bf16.mxu1 %vm404_vm1, %v2765_v52  ;;  %v200_v21 = vld [vmem:[%s2644_s25 + $0x88] sm:$0x3] }
  0x26   : > { %v349_v59 = vshrl.u32 %v2761_v51, 16  ;;  %v352_v61 = vshll.u32 %v2761_v51, 16  ;;  %v218_v62 = vmax.f32 %v198_v4, 0.0  ;;  %2413 = vmatmul.mubr.msk.bf16.gmra.mxu1 %vm404_vm1, %v2784_v56  ;;  %v363_v2 = vshrl.u32 %v2769_v53, 16 }
  0x27   : > { %2399 = vmatmul.mubr.msk.bf16.vlgmr.msra.gmra.mxu0 %vm404_vm1, %v2752_v46  ;;  %v347_v63 = vsel %vm2721_vm4, %v342_v50, %v346_v30  ;;  %v358_v0 = vshll.u32 %v2786_v57, 16  ;;  %v2797_v1 = vpack.c.bf16 %v216_v58, %v216_v58  ;;  %v366_v7 = vshll.u32 %v2769_v53, 16  ;;  %2428 = vmatprep.mubr.msk.bf16.mxu1 %vm404_vm1, %v2754_v47 }
  0x28   : > { %2417 = vmatpush3.bf16.msra.mxu0 %v591_v40  ;;  %v351_v3 = vrot.slane %v349_v59, 4  ;;  %v354_v5 = vrot.slane %v352_v61, 5  ;;  %v2802_v6 = vpack.c.bf16 %v218_v62, %v218_v62  ;;  %v365_v9 = vrot.slane %v363_v2, 4 }
  0x29   : > { %2560 = vmatprep.subr.msk.bf16.mxu0 %vm417_vm0, %v2774_v54  ;;  %v360_v8 = vrot.slane %v358_v0, 5  ;;  %v372_v11 = vshll.u32 %v2797_v1, 16  ;;  %v377_v13 = vshrl.u32 %v2780_v55, 16  ;;  %v368_v16 = vrot.slane %v366_v7, 5 }
  0x2a   : > { %v355_v15 = vor.u32 %v354_v5, %v351_v3  ;;  %v380_v17 = vshll.u32 %v2780_v55, 16  ;;  %v386_v19 = vshll.u32 %v2802_v6, 16  ;;  %v2813_v22 = vcombine.low %v333_v41, %v347_v63  ;;  %v2206_v41 = vld [vmem:[%s3320_s1 + $0x10] sm:$0xf] }
  0x2b   : > { %v379_v23 = vrot.slane %v377_v13, 4  ;;  %v369_v28 = vor.u32 %v368_v16, %v365_v9  ;;  %v374_v30 = vrot.slane %v372_v11, 5  ;;  %v971_v42 = vsel %vm417_vm0, %v2680_v31, 0 }
  0x2c   : > { %v356_v27 = vrot.slane %v355_v15, 4  ;;  %v382_v40 = vrot.slane %v380_v17, 5  ;;  %v2817_v45 = vmax.f32 %v199_v20, 0.0  ;;  %v220_v49 = vmax.f32 %v200_v21, 0.0 }
  0x2d   : > { %v370_v50 = vrot.slane %v369_v28, 4  ;;  %v388_v59 = vrot.slane %v386_v19, 5  ;;  %v2848_v9 = vpack.c.bf16 %v2652_v12, %v2649_v10  ;;  %v201_v10 = vld [vmem:[%s2644_s25 + $0x90] sm:$0xff]  ;;  %v202_v12 = vld [vmem:[%s2644_s25 + $0x98] sm:$0x3]  ;;  %v2179_v20 = vrot.slane %v2660_v18, 9 }
  0x2e   : > { %v361_v4 = vsel %vm2721_vm4, %v356_v27, %v360_v8  ;;  %v383_v58 = vor.u32 %v382_v40, %v379_v23  ;;  %2429 = vmatmul.mubr.msk.bf16.vlgmr.msra.gmra.mxu1 %vm404_vm1, %v2813_v22  ;;  %v2830_v31 = vpack.c.bf16 %v2817_v45, %v2817_v45  ;;  %v2832_v62 = vpack.c.bf16 %v220_v49, %v220_v49  ;;  %s2286_s25 = sshll.u32 %s3328_s13, 8 }
  0x2f   : > { %v2824_v61 = vcombine.low %v347_v63, %v361_v4  ;;  %v375_v0 = vsel %vm2721_vm4, %v370_v50, %v374_v30  ;;  %2447 = vmatpush3.bf16.msra.mxu1 %v971_v42  ;;  %v846_v21 = vrot.slane %v2688_v33, 5  ;;  %v2864_v23 = vpack.c.bf16 %v2675_v29, %v2655_v14  ;;  %s3096_s28 = scalar_lea.vmem %s3321_s2, %s2286_s25 }
  0x30   : > { %v384_v2 = vrot.slane %v383_v58, 4  ;;  %v2838_v3 = vcombine.low %v361_v4, %v375_v0  ;;  %v670_v63 = vshrl.u32 %v2830_v31, 16  ;;  %v673_v5 = vshll.u32 %v2830_v31, 16  ;;  %2563 = vmatprep.subr.msk.bf16.mxu1 %vm417_vm0, %v2206_v41 }
  0x31   : > { %2402 = vmatprep.mubr.msk.bf16.mxu0 %vm404_vm1, %v2824_v61  ;;  %v679_v7 = vshll.u32 %v2832_v62, 16  ;;  %v850_v28 = vrot.slane %v2690_v34, 5  ;;  %v2873_v40 = vpack.c.bf16 %v2749_v44, %v2747_v43  ;;  %v2180_v42 = vrot.slane %v2668_v24, 9  ;;  %v2200_v43 = vld [vmem:[%s3320_s1 + $0x18] sm:$0xf] }
  0x32   : > { %v389_v8 = vsel %vm2721_vm4, %v384_v2, %v388_v59  ;;  %2432 = vmatprep.mubr.msk.bf16.mxu1 %vm404_vm1, %v2838_v3  ;;  %v672_v13 = vrot.slane %v670_v63, 4  ;;  %v675_v15 = vrot.slane %v673_v5, 5  ;;  %v903_v14 = vsel %vm417_vm0, %v2774_v54, 0 }
  0x33   : > { %v2850_v11 = vcombine.low %v375_v0, %v389_v8  ;;  %v681_v17 = vrot.slane %v679_v7, 5  ;;  %v2882_v29 = vmax.f32 %v201_v10, 0.0  ;;  %v222_v33 = vmax.f32 %v202_v12, 0.0 }
  0x34   : > { %v676_v16 = vor.u32 %v675_v15, %v672_v13  ;;  %v2182_v34 = vrot.slane %v2684_v32, 9  ;;  %v1140_v24 = vsel %vm417_vm0, %v2206_v41, 0  ;;  %v2181_v44 = vrot.slane %v2694_v35, 9 }
  0x35   : > { %2403 = vmatmul.mubr.msk.bf16.gmra.mxu0 %vm404_vm1, %v2850_v11  ;;  %v2314_v32 = vpack.c.bf16 %v2882_v29, %v2882_v29  ;;  %v2315_v54 = vpack.c.bf16 %v222_v33, %v222_v33  ;;  %v2313_v49 = vpack.c.bf16 %v2882_v29, %v2817_v45  ;;  %v847_v35 = vsel %vm2876_vm7, %v2179_v20, %v846_v21 }
  0x36   : > { %2418 = vmatprep.mubr.msk.bf16.mxu0 %vm404_vm1, %v2848_v9  ;;  %v677_v19 = vrot.slane %v676_v16, 4  ;;  %v851_v4 = vsel %vm2876_vm7, %v2180_v42, %v850_v28  ;;  %v2205_v50 = vrot.slane %v2830_v31, 9  ;;  %v854_v2 = vrot.slane %v2696_v36, 5 }
  0x37   : > { %v1504_v58 = vshrl.u32 %v2314_v32, 16  ;;  %v1507_v59 = vshll.u32 %v2314_v32, 16  ;;  %v1513_v41 = vshll.u32 %v2315_v54, 16  ;;  %v2270_v0 = vrot.slane %v2314_v32, 9 }
  0x38   : > { %v682_v27 = vsel %vm2721_vm4, %v677_v19, %v681_v17  ;;  %v858_v63 = vrot.slane %v2698_v37, 5  ;;  %v2913_v5 = vpack.c.bf16 %v2817_v45, %v2756_v48  ;;  %v1881_v7 = vrot.slane %v2315_v54, 5 }
  0x39   : > { %v2869_v30 = vcombine.low %v389_v8, %v682_v27  ;;  %v2188_v8 = vcombine.low %v847_v35, %v851_v4  ;;  %v2183_v31 = vrot.slane %v2702_v38, 9  ;;  %v1506_v13 = vrot.slane %v1504_v58, 4  ;;  %v2241_v35 = vld [vmem:[%s3320_s1 + $0x4] sm:$0xf]  ;;  %v2255_v58 = vld [vmem:[%s3320_s1 + $0x28] sm:$0xf] }
  0x3a   : > { %v862_v15 = vrot.slane %v2704_v39, 5  ;;  %v2184_v16 = vrot.slane %v2761_v51, 9  ;;  %v2924_v36 = vsel %vm2876_vm7, %v2270_v0, %v1881_v7  ;;  %v866_v37 = vrot.slane %v2786_v57, 5  ;;  %v2223_v39 = vld [vmem:[%s3320_s1 + $0x2c] sm:$0xf] }
  0x3b   : > { %2433 = vmatmul.mubr.msk.bf16.gmra.mxu1 %vm404_vm1, %v2869_v30  ;;  %v1515_v19 = vrot.slane %v1513_v41, 5  ;;  %v855_v57 = vsel %vm2876_vm7, %v2181_v44, %v854_v2  ;;  %v859_v10 = vsel %vm2876_vm7, %v2182_v34, %v858_v63  ;;  %v2186_v44 = vrot.slane %v2780_v55, 9  ;;  %v2265_v0 = vld [vmem:[%s3320_s1 + $0x8] sm:$0xf] }
  0x3c   : > { %2448 = vmatprep.mubr.msk.bf16.mxu1 %vm404_vm1, %v2737_v26  ;;  %v1118_v26 = vrot.slane %v2832_v62, 5  ;;  %v1509_v62 = vrot.slane %v1507_v59, 5  ;;  %v863_v12 = vsel %vm2876_vm7, %v2183_v31, %v862_v15  ;;  %v867_v20 = vsel %vm2876_vm7, %v2184_v16, %v866_v37  ;;  %v1883_v59 = vld [vmem:[%s3320_s1] sm:$0xf] }
  0x3d   : > { %2419 = vmatmul.mubr.msk.bf16.vlgmr.msra.gmra.mxu0 %vm404_vm1, %v2864_v23  ;;  %v2952_v42 = vcombine.low %v855_v57, %v859_v10  ;;  %v2955_v33 = vcombine.low %v851_v4, %v855_v57  ;;  %v2957_v34 = vcombine.low %v863_v12, %v867_v20  ;;  %v874_v32 = vrot.slane %v2802_v6, 5 }
  0x3e   : > { %2437 = vmatpush3.bf16.msra.mxu0 %v903_v14  ;;  %2422 = vmatprep.mubr.msk.bf16.mxu0 %vm404_vm1, %v2873_v40  ;;  %v2920_v17 = vsel %vm2876_vm7, %v2205_v50, %v1118_v26  ;;  %v1510_v48 = vor.u32 %v1509_v62, %v1506_v13  ;;  %v2185_v14 = vrot.slane %v2769_v53, 9  ;;  %v1041_v54 = vsel %vm417_vm0, %v2200_v43, 0  ;;  %v2233_v50 = vld [vmem:[%s3320_s1 + $0xc] sm:$0xf] }
  0x3f   : > { %2562 = vmatprep.subr.msk.bf16.mxu0 %vm417_vm0, %v2200_v43  ;;  %v2271_v38 = vcombine.low %v2920_v17, %v2924_v36  ;;  %v875_v55 = vsel %vm2876_vm7, %v2186_v44, %v874_v32  ;;  %v1281_v4 = vsel %vm417_vm0, %v2224_v60, 0  ;;  %v1525_v26 = vsel %vm417_vm0, %v2241_v35, 0 }
  0x40   : > { %v1511_v51 = vrot.slane %v1510_v48, 4  ;;  %v2210_v18 = vcombine.low %v875_v55, %v2920_v17 }
  0x42   : > { %v1516_v21 = vsel %vm2721_vm4, %v1511_v51, %v1515_v19 }
  0x43   : > { %2449 = vmatmul.mubr.msk.bf16.vlgmr.msra.gmra.mxu1 %vm404_vm1, %v2752_v46  ;;  %v2950_v28 = vcombine.low %v682_v27, %v1516_v21  ;;  %v1349_v27 = vsel %vm417_vm0, %v2223_v39, 0 }
  0x44   : > { %2467 = vmatpush3.bf16.msra.mxu1 %v1140_v24  ;;  %2452 = vmatprep.mubr.msk.bf16.mxu1 %vm404_vm1, %v2824_v61  ;;  %v870_v24 = vrot.slane %v2797_v1, 5  ;;  %v2208_v1 = vcombine.low %v859_v10, %v863_v12 }
  0x45   : > { %2423 = vmatmul.mubr.msk.bf16.gmra.mxu0 %vm404_vm1, %v2913_v5  ;;  %2565 = vmatprep.subr.msk.bf16.mxu1 %vm417_vm0, %v2223_v39 }
  0x46   : > { %2438 = vmatprep.mubr.msk.bf16.mxu0 %vm404_vm1, %v2188_v8  ;;  %v871_v53 = vsel %vm2876_vm7, %v2185_v14, %v870_v24 }
  0x47   : > { %v2979_v6 = vcombine.low %v871_v53, %v875_v55  ;;  %v2209_v43 = vcombine.low %v867_v20, %v871_v53 }
  0x4b   : > { %2453 = vmatmul.mubr.msk.bf16.gmra.mxu1 %vm404_vm1, %v2850_v11 }
  0x4c   : > { %2468 = vmatprep.mubr.msk.bf16.mxu1 %vm404_vm1, %v2955_v33 }
  0x4d   : > { %2439 = vmatmul.mubr.msk.bf16.vlgmr.msra.gmra.mxu0 %vm404_vm1, %v2952_v42 }
  0x4e   : > { %2457 = vmatpush3.bf16.msra.mxu0 %v1041_v54  ;;  %2442 = vmatprep.mubr.msk.bf16.mxu0 %vm404_vm1, %v2957_v34 }
  0x4f   : > { %2564 = vmatprep.subr.msk.bf16.mxu0 %vm417_vm0, %v2224_v60 }
  0x53   : > { %2469 = vmatmul.mubr.msk.bf16.vlgmr.msra.gmra.mxu1 %vm404_vm1, %v2208_v1 }
  0x54   : > { %2487 = vmatpush3.bf16.msra.mxu1 %v1349_v27  ;;  %2472 = vmatprep.mubr.msk.bf16.mxu1 %vm404_vm1, %v2209_v43 }
  0x55   : > { %2443 = vmatmul.mubr.msk.bf16.gmra.mxu0 %vm404_vm1, %v2979_v6  ;;  %2567 = vmatprep.subr.msk.bf16.mxu1 %vm417_vm0, %v2241_v35 }
  0x56   : > { %2458 = vmatprep.mubr.msk.bf16.mxu0 %vm404_vm1, %v2754_v47 }
  0x5b   : > { %2473 = vmatmul.mubr.msk.bf16.gmra.mxu1 %vm404_vm1, %v2210_v18 }
  0x5c   : > { %2488 = vmatprep.mubr.msk.bf16.mxu1 %vm404_vm1, %v2848_v9  ;;  %v1425_v9 = vsel %vm417_vm0, %v2233_v50, 0 }
  0x5d   : > { %2459 = vmatmul.mubr.msk.bf16.vlgmr.msra.gmra.mxu0 %vm404_vm1, %v2813_v22 }
  0x5e   : > { %2477 = vmatpush3.bf16.msra.mxu0 %v1281_v4  ;;  %2462 = vmatprep.mubr.msk.bf16.mxu0 %vm404_vm1, %v2838_v3 }
  0x5f   : > { %2566 = vmatprep.subr.msk.bf16.mxu0 %vm417_vm0, %v2233_v50 }
  0x63   : > { %2489 = vmatmul.mubr.msk.bf16.vlgmr.msra.gmra.mxu1 %vm404_vm1, %v2864_v23  ;;  %v2256_v23 = vld [vmem:[%s3320_s1 + $0x20] sm:$0xf] }
  0x64   : > { %2507 = vmatpush3.bf16.msra.mxu1 %v1525_v26  ;;  %2492 = vmatprep.mubr.msk.bf16.mxu1 %vm404_vm1, %v2873_v40  ;;  %v1734_v40 = vsel %vm417_vm0, %v2255_v58, 0  ;;  %v1666_v41 = vsel %vm417_vm0, %v2256_v23, 0 }
  0x65   : > { %2463 = vmatmul.mubr.msk.bf16.gmra.mxu0 %vm404_vm1, %v2869_v30  ;;  %2569 = vmatprep.subr.msk.bf16.mxu1 %vm417_vm0, %v2255_v58 }
  0x66   : > { %2478 = vmatprep.mubr.msk.bf16.mxu0 %vm404_vm1, %v2754_v47 }
  0x6b   : > { %2493 = vmatmul.mubr.msk.bf16.gmra.mxu1 %vm404_vm1, %v2913_v5 }
  0x6c   : > { %2508 = vmatprep.mubr.msk.bf16.mxu1 %vm404_vm1, %v2752_v46 }
  0x6d   : > { %2479 = vmatmul.mubr.msk.bf16.vlgmr.msra.gmra.mxu0 %vm404_vm1, %v2813_v22 }
  0x6e   : > { %2497 = vmatpush3.bf16.msra.mxu0 %v1425_v9  ;;  %2482 = vmatprep.mubr.msk.bf16.mxu0 %vm404_vm1, %v2838_v3 }
  0x6f   : > { %2568 = vmatprep.subr.msk.bf16.mxu0 %vm417_vm0, %v2256_v23 }
  0x73   : > { %2509 = vmatmul.mubr.msk.bf16.vlgmr.msra.gmra.mxu1 %vm404_vm1, %v2824_v61 }
  0x74   : > { %2527 = vmatpush3.bf16.msra.mxu1 %v1734_v40  ;;  %2512 = vmatprep.mubr.msk.bf16.mxu1 %vm404_vm1, %v2850_v11 }
  0x75   : > { %2483 = vmatmul.mubr.msk.bf16.gmra.mxu0 %vm404_vm1, %v2869_v30  ;;  %2571 = vmatprep.subr.msk.bf16.mxu1 %vm417_vm0, %v1883_v59 }
  0x76   : > { %2498 = vmatprep.mubr.msk.bf16.mxu0 %vm404_vm1, %v2672_v25  ;;  %v1890_v25 = vsel %vm417_vm0, %v1883_v59, 0 }
  0x7b   : > { %2513 = vmatmul.mubr.msk.bf16.gmra.mxu1 %vm404_vm1, %v2950_v28 }
  0x7c   : > { %2528 = vmatprep.mubr.msk.bf16.mxu1 %vm404_vm1, %v2754_v47  ;;  %v1804_v47 = vsel %vm417_vm0, %v2265_v0, 0 }
  0x7d   : > { %2499 = vmatmul.mubr.msk.bf16.vlgmr.msra.gmra.mxu0 %vm404_vm1, %v2765_v52 }
  0x7e   : > { %2517 = vmatpush3.bf16.msra.mxu0 %v1666_v41  ;;  %2502 = vmatprep.mubr.msk.bf16.mxu0 %vm404_vm1, %v2784_v56 }
  0x7f   : > { %2570 = vmatprep.subr.msk.bf16.mxu0 %vm417_vm0, %v2265_v0 }
  0x83   : > { %2529 = vmatmul.mubr.msk.bf16.vlgmr.msra.gmra.mxu1 %vm404_vm1, %v2813_v22 }
  0x84   : > { %2547 = vmatpush3.bf16.msra.mxu1 %v1890_v25  ;;  %2532 = vmatprep.mubr.msk.bf16.mxu1 %vm404_vm1, %v2838_v3 }
  0x85   : > { %2503 = vmatmul.mubr.msk.bf16.gmra.mxu0 %vm404_vm1, %v2313_v49 }
  0x86   : > { %2518 = vmatprep.mubr.msk.bf16.mxu0 %vm404_vm1, %v2955_v33 }
  0x8b   : > { %2533 = vmatmul.mubr.msk.bf16.gmra.mxu1 %vm404_vm1, %v2869_v30 }
  0x8c   : > { %2548 = vmatprep.mubr.msk.bf16.mxu1 %vm404_vm1, %v2952_v42 }
  0x8d   : > { %2519 = vmatmul.mubr.msk.bf16.vlgmr.msra.gmra.mxu0 %vm404_vm1, %v2208_v1 }
  0x8e   : > { %2537 = vmatpush3.bf16.msra.mxu0 %v1804_v47  ;;  %2522 = vmatprep.mubr.msk.bf16.mxu0 %vm404_vm1, %v2209_v43 }
  0x93   : > { %2549 = vmatmul.mubr.msk.bf16.vlgmr.msra.gmra.mxu1 %vm404_vm1, %v2957_v34 }
  0x94   : > { %2552 = vmatprep.mubr.msk.bf16.mxu1 %vm404_vm1, %v2979_v6 }
  0x95   : > { %2523 = vmatmul.mubr.msk.bf16.gmra.mxu0 %vm404_vm1, %v2210_v18 }
  0x96   : > { %2538 = vmatprep.mubr.msk.bf16.mxu0 %vm404_vm1, %v2752_v46 }
  0x9b   : > { %2553 = vmatmul.mubr.msk.bf16.gmra.mxu1 %vm404_vm1, %v2271_v38 }
  0x9d   : > { %2539 = vmatmul.mubr.msk.bf16.vlgmr.msra.gmra.mxu0 %vm404_vm1, %v2824_v61 }
  0x9e   : > { %2542 = vmatprep.mubr.msk.bf16.mxu0 %vm404_vm1, %v2850_v11 }
  0xa5   : > { %2543 = vmatmul.mubr.msk.bf16.gmra.mxu0 %vm404_vm1, %v2950_v28 }
  0xd6   : > { %v2410_v52 = vpop.f32.mrf.mxu1 }
  0xd8   : > { %v539_v56 = vpop.f32.mrf.mxu1 }
  0xda   : > { %v2411_v22 = vpop.f32.mrf.mxu1 }
  0xdc   : > { %v542_v45 = vpop.f32.mrf.mxu1 }
  0xe6   : > { %v2414_v46 = vpop.f32.mrf.mxu1 }
  0xe7   : > { %v2400_v3 = vpop.f32.mrf.mxu0 }
  0xe8   : > { %v555_v29 = vpop.f32.mrf.mxu1  ;;  %v548_v16 = vadd.f32 %v2410_v52, %v2400_v3 }
  0xe9   : > { %v455_v30 = vpop.f32.mrf.mxu0 }
  0xea   : > { %v2415_v49 = vpop.f32.mrf.mxu1  ;;  %v540_v37 = vadd.f32 %v539_v56, %v455_v30 }
  0xeb   : > { %v2401_v2 = vpop.f32.mrf.mxu0 }
  0xec   : > { %v558_v63 = vpop.f32.mrf.mxu1  ;;  %v551_v39 = vadd.f32 %v2411_v22, %v2401_v2 }
  0xed   : > { %v458_v61 = vpop.f32.mrf.mxu0 }
  0xee   : > { %v2430_v5 = vpop.f32.mrf.mxu1  ;;  %v543_v42 = vadd.f32 %v542_v45, %v458_v61 }
  0xf0   : > { %v739_v7 = vpop.f32.mrf.mxu1 }
  0xf2   : > { %v2431_v8 = vpop.f32.mrf.mxu1 }
  0xf4   : > { %v742_v13 = vpop.f32.mrf.mxu1 }
  0xf5   : > { %v2404_v11 = vpop.f32.mrf.mxu0 }
  0xf6   : > { %v564_v33 = vadd.f32 %v2414_v46, %v2404_v11 }
  0xf7   : > { %v471_v31 = vpop.f32.mrf.mxu0 }
  0xf8   : > { %v556_v54 = vadd.f32 %v555_v29, %v471_v31 }
  0xf9   : > { %v2405_v62 = vpop.f32.mrf.mxu0 }
  0xfa   : > { %v567_v4 = vadd.f32 %v2415_v49, %v2405_v62 }
  0xfb   : > { %v474_v15 = vpop.f32.mrf.mxu0  ;;  %v2434_v17 = vpop.f32.mrf.mxu1 }
  0xfc   : > { %v559_v23 = vadd.f32 %v558_v63, %v474_v15 }
  0xfd   : > { %v2420_v36 = vpop.f32.mrf.mxu0  ;;  %v755_v19 = vpop.f32.mrf.mxu1 }
  0xfe   : > { %v660_v48 = vadd.f32 %v2420_v36, %v548_v16 }
  0xff   : > { %v627_v38 = vpop.f32.mrf.mxu0  ;;  %v2435_v10 = vpop.f32.mrf.mxu1 }
 0x100   : > { %v772_v51 = vadd.f32 %v2430_v5, %v660_v48  ;;  %v658_v57 = vadd.f32 %v627_v38, %v540_v37 }
 0x101   : > { %v2421_v12 = vpop.f32.mrf.mxu0  ;;  %v758_v28 = vpop.f32.mrf.mxu1 }
 0x102   : > { %781 = vst.msk [vmem:[%s3096_s28 + $0x10] sm:$0xff] %vm778_vm8, %v772_v51  ;;  %v770_v20 = vadd.f32 %v739_v7, %v658_v57  ;;  %v661_v21 = vadd.f32 %v2421_v12, %v551_v39  ;;  %v811_v27 = vmul.f32 %v772_v51, %v772_v51  ;;  %v790_v40 = vsel %vm778_vm8, %v772_v51, 0.0 }
 0x103   : > { %v630_v14 = vpop.f32.mrf.mxu0  ;;  %v3102_v24 = vpop.f32.mrf.mxu1 }
 0x104   : > { %779 = vst.msk [vmem:[%s3096_s28] sm:$0xff] %vm778_vm8, %v770_v20  ;;  %v773_v34 = vadd.f32 %v2431_v8, %v661_v21  ;;  %v659_v44 = vadd.f32 %v630_v14, %v543_v42  ;;  %v809_v55 = vmul.f32 %v770_v20, %v770_v20  ;;  %v787_v50 = vsel %vm778_vm8, %v770_v20, 0.0 }
 0x105   : > { %v2424_v32 = vpop.f32.mrf.mxu0  ;;  %v3106_v53 = vpop.f32.mrf.mxu1  ;;  %v820_v45 = vsel %vm778_vm8, %v811_v27, 0.0 }
 0x106   : > { %782 = vst.msk [vmem:[%s3096_s28 + $0x18] sm:$0xff] %vm778_vm8, %v773_v34  ;;  %v664_v60 = vadd.f32 %v2424_v32, %v564_v33  ;;  %v771_v1 = vadd.f32 %v742_v13, %v659_v44  ;;  %v817_v25 = vsel %vm778_vm8, %v809_v55, 0.0  ;;  %v812_v47 = vmul.f32 %v773_v34, %v773_v34 }
 0x107   : > { %v643_v6 = vpop.f32.mrf.mxu0  ;;  %v3108_v18 = vpop.f32.mrf.mxu1  ;;  %v792_v29 = vsel %vm778_vm8, %v773_v34, 0.0 }
 0x108   : > { %v776_v43 = vadd.f32 %v2434_v17, %v664_v60  ;;  %v662_v35 = vadd.f32 %v643_v6, %v556_v54  ;;  %780 = vst.msk [vmem:[%s3096_s28 + $0x8] sm:$0xff] %vm778_vm8, %v771_v1  ;;  %v788_v26 = vsel %vm778_vm8, %v771_v1, 0.0  ;;  %v810_v58 = vmul.f32 %v771_v1, %v771_v1 }
 0x109   : > { %v2425_v9 = vpop.f32.mrf.mxu0  ;;  %v789_v59 = vadd.f32 %v788_v26, %v787_v50  ;;  %v3117_v0 = vpop.f32.mrf.mxu1  ;;  %v822_v11 = vsel %vm778_vm8, %v812_v47, 0.0 }
 0x10a   : > { %785 = vst.msk [vmem:[%s3096_s28 + $0x30] sm:$0xff] %vm778_vm8, %v776_v43  ;;  %v774_v41 = vadd.f32 %v755_v19, %v662_v35  ;;  %v818_v52 = vsel %vm778_vm8, %v810_v58, 0.0  ;;  %v665_v56 = vadd.f32 %v2425_v9, %v567_v4  ;;  %v815_v36 = vmul.f32 %v776_v43, %v776_v43 }
 0x10b   : > { %v646_v22 = vpop.f32.mrf.mxu0  ;;  %v791_v3 = vadd.f32 %v790_v40, %v789_v59  ;;  %v819_v46 = vadd.f32 %v818_v52, %v817_v25  ;;  %v3124_v30 = vpop.f32.mrf.mxu1 }
 0x10c   : > { %783 = vst.msk [vmem:[%s3096_s28 + $0x20] sm:$0xff] %vm778_vm8, %v774_v41  ;;  %v813_v49 = vmul.f32 %v774_v41, %v774_v41  ;;  %v777_v2 = vadd.f32 %v2435_v10, %v665_v56  ;;  %v663_v63 = vadd.f32 %v646_v22, %v559_v23  ;;  %v794_v31 = vsel %vm778_vm8, %v774_v41, 0.0 }
 0x10d   : > { %v2440_v5 = vpop.f32.mrf.mxu0  ;;  %v821_v61 = vadd.f32 %v820_v45, %v819_v46  ;;  %v793_v7 = vadd.f32 %v792_v29, %v791_v3  ;;  %v1023_v8 = vpop.f32.mrf.mxu1  ;;  %v798_v10 = vsel %vm778_vm8, %v776_v43, 0.0  ;;  %v828_v33 = vsel %vm778_vm8, %v815_v36, 0.0 }
 0x10e   : > { %786 = vst.msk [vmem:[%s3096_s28 + $0x38] sm:$0xff] %vm778_vm8, %v777_v2  ;;  %v775_v13 = vadd.f32 %v758_v28, %v663_v63  ;;  %v824_v37 = vsel %vm778_vm8, %v813_v49, 0.0  ;;  %v816_v12 = vmul.f32 %v777_v2, %v777_v2  ;;  %v800_v34 = vsel %vm778_vm8, %v777_v2, 0.0 }
 0x10f   : > { %v939_v62 = vpop.f32.mrf.mxu0  ;;  %v795_v15 = vadd.f32 %v794_v31, %v793_v7  ;;  %v823_v16 = vadd.f32 %v822_v11, %v821_v61  ;;  %v3131_v17 = vpop.f32.mrf.mxu1  ;;  %v1016_v50 = vadd.f32 %v3102_v24, %v2440_v5 }
 0x110   : > { %784 = vst.msk [vmem:[%s3096_s28 + $0x28] sm:$0xff] %vm778_vm8, %v775_v13  ;;  %v796_v48 = vsel %vm778_vm8, %v775_v13, 0.0  ;;  %v814_v19 = vmul.f32 %v775_v13, %v775_v13  ;;  %v830_v55 = vsel %vm778_vm8, %v816_v12, 0.0  ;;  %v1008_v9 = vadd.f32 %v3106_v53, %v939_v62 }
 0x111   : > { %v2441_v38 = vpop.f32.mrf.mxu0  ;;  %v825_v39 = vadd.f32 %v824_v37, %v823_v16  ;;  %v797_v51 = vadd.f32 %v796_v48, %v795_v15  ;;  %v1026_v57 = vpop.f32.mrf.mxu1 }
 0x112   : > { %v826_v20 = vsel %vm778_vm8, %v814_v19, 0.0  ;;  %v1019_v52 = vadd.f32 %v3108_v18, %v2441_v38 }
 0x113   : > { %v942_v21 = vpop.f32.mrf.mxu0  ;;  %v799_v28 = vadd.f32 %v798_v10, %v797_v51  ;;  %v827_v42 = vadd.f32 %v826_v20, %v825_v39  ;;  %v2470_v14 = vpop.f32.mrf.mxu1 }
 0x114   : > { %v1011_v22 = vadd.f32 %v3117_v0, %v942_v21 }
 0x115   : > { %v2444_v44 = vpop.f32.mrf.mxu0  ;;  %v3141_v32 = vadd.f32 %v800_v34, %v799_v28  ;;  %v829_v54 = vadd.f32 %v828_v33, %v827_v42  ;;  %v1176_v60 = vpop.f32.mrf.mxu1 }
 0x116   : > { %v1032_v53 = vadd.f32 %v3124_v30, %v2444_v44 }
 0x117   : > { %v955_v1 = vpop.f32.mrf.mxu0  ;;  %v3144_v6 = vadd.f32 %v830_v55, %v829_v54  ;;  %v2471_v27 = vpop.f32.mrf.mxu1  ;;  %v802_v54 = vrot.slane %v3141_v32, 4 }
 0x118   : > { %v1024_v63 = vadd.f32 %v1023_v8, %v955_v1 }
 0x119   : > { %v2445_v43 = vpop.f32.mrf.mxu0  ;;  %v1179_v35 = vpop.f32.mrf.mxu1 }
 0x11a   : > { %v1035_v36 = vadd.f32 %v3131_v17, %v2445_v43 }
 0x11b   : > { %v958_v4 = vpop.f32.mrf.mxu0  ;;  %v2474_v26 = vpop.f32.mrf.mxu1 }
 0x11c   : > { %v1027_v37 = vadd.f32 %v1026_v57, %v958_v4 }
 0x11d   : > { %v2460_v58 = vpop.f32.mrf.mxu0  ;;  %v1192_v40 = vpop.f32.mrf.mxu1 }
 0x11e   : > { %v1110_v23 = vadd.f32 %v2460_v58, %v1016_v50 }
 0x11f   : > { %v1077_v59 = vpop.f32.mrf.mxu0  ;;  %v2475_v47 = vpop.f32.mrf.mxu1 }
 0x120   : > { %v1209_v41 = vadd.f32 %v2470_v14, %v1110_v23  ;;  %v1108_v25 = vadd.f32 %v1077_v59, %v1008_v9 }
 0x121   : > { %v2461_v56 = vpop.f32.mrf.mxu0  ;;  %v1195_v45 = vpop.f32.mrf.mxu1 }
 0x122   : > { %2217 = vst.msk [vmem:[%s3096_s28 + $0x50] sm:$0xff] %vm778_vm8, %v1209_v41  ;;  %v1207_v24 = vadd.f32 %v1176_v60, %v1108_v25  ;;  %v1111_v3 = vadd.f32 %v2461_v56, %v1019_v52  ;;  %v1248_v11 = vmul.f32 %v1209_v41, %v1209_v41  ;;  %v1227_v48 = vsel %vm778_vm8, %v1209_v41, 0.0 }
 0x123   : > { %v1080_v46 = vpop.f32.mrf.mxu0  ;;  %v3153_v49 = vpop.f32.mrf.mxu1  ;;  %v803_v52 = vadd.f32 %v802_v54, %v3141_v32 }
 0x124   : > { %v1109_v29 = vadd.f32 %v1080_v46, %v1011_v22  ;;  %2215 = vst.msk [vmem:[%s3096_s28 + $0x40] sm:$0xff] %vm778_vm8, %v1207_v24  ;;  %v1210_v2 = vadd.f32 %v2471_v27, %v1111_v3  ;;  %v1246_v5 = vmul.f32 %v1207_v24, %v1207_v24  ;;  %v1224_v31 = vsel %vm778_vm8, %v1207_v24, 0.0 }
 0x125   : > { %v2464_v18 = vpop.f32.mrf.mxu0  ;;  %v3157_v7 = vpop.f32.mrf.mxu1  ;;  %v1257_v57 = vsel %vm778_vm8, %v1248_v11, 0.0 }
 0x126   : > { %v1208_v0 = vadd.f32 %v1179_v35, %v1109_v29  ;;  %v1114_v61 = vadd.f32 %v2464_v18, %v1032_v53  ;;  %2218 = vst.msk [vmem:[%s3096_s28 + $0x58] sm:$0xff] %vm778_vm8, %v1210_v2  ;;  %v1254_v39 = vsel %vm778_vm8, %v1246_v5, 0.0  ;;  %v1249_v51 = vmul.f32 %v1210_v2, %v1210_v2 }
 0x127   : > { %v1093_v30 = vpop.f32.mrf.mxu0  ;;  %v3165_v8 = vpop.f32.mrf.mxu1  ;;  %v1229_v14 = vsel %vm778_vm8, %v1210_v2, 0.0 }
 0x128   : > { %2216 = vst.msk [vmem:[%s3096_s28 + $0x48] sm:$0xff] %vm778_vm8, %v1208_v0  ;;  %v1225_v13 = vsel %vm778_vm8, %v1208_v0, 0.0  ;;  %v1247_v62 = vmul.f32 %v1208_v0, %v1208_v0  ;;  %v1213_v15 = vadd.f32 %v2474_v26, %v1114_v61  ;;  %v1112_v16 = vadd.f32 %v1093_v30, %v1024_v63 }
 0x129   : > { %v1226_v19 = vadd.f32 %v1225_v13, %v1224_v31  ;;  %v2465_v38 = vpop.f32.mrf.mxu0  ;;  %v3173_v20 = vpop.f32.mrf.mxu1  ;;  %v1259_v43 = vsel %vm778_vm8, %v1249_v51, 0.0  ;;  %v832_v26 = vrot.slane %v3144_v6, 4  ;;  %v804_v61 = vrot.slane %v803_v52, 2 }
 0x12a   : > { %v1255_v10 = vsel %vm778_vm8, %v1247_v62, 0.0  ;;  %2221 = vst.msk [vmem:[%s3096_s28 + $0x70] sm:$0xff] %vm778_vm8, %v1213_v15  ;;  %v1211_v12 = vadd.f32 %v1192_v40, %v1112_v16  ;;  %v1115_v42 = vadd.f32 %v2465_v38, %v1035_v36  ;;  %v1252_v40 = vmul.f32 %v1213_v15, %v1213_v15 }
 0x12b   : > { %v1228_v21 = vadd.f32 %v1227_v48, %v1226_v19  ;;  %v1256_v28 = vadd.f32 %v1255_v10, %v1254_v39  ;;  %v1096_v17 = vpop.f32.mrf.mxu0  ;;  %v3179_v44 = vpop.f32.mrf.mxu1  ;;  %v1235_v24 = vsel %vm778_vm8, %v1213_v15, 0.0  ;;  %v833_v29 = vadd.f32 %v832_v26, %v3144_v6 }
 0x12c   : > { %2219 = vst.msk [vmem:[%s3096_s28 + $0x60] sm:$0xff] %vm778_vm8, %v1211_v12  ;;  %v1250_v33 = vmul.f32 %v1211_v12, %v1211_v12  ;;  %v1113_v34 = vadd.f32 %v1096_v17, %v1027_v37  ;;  %v1214_v1 = vadd.f32 %v2475_v47, %v1115_v42  ;;  %v1231_v35 = vsel %vm778_vm8, %v1211_v12, 0.0 }
 0x12d   : > { %v1258_v60 = vadd.f32 %v1257_v57, %v1256_v28  ;;  %v1230_v55 = vadd.f32 %v1229_v14, %v1228_v21  ;;  %v2480_v27 = vpop.f32.mrf.mxu0  ;;  %v3184_v50 = vpop.f32.mrf.mxu1  ;;  %v1265_v5 = vsel %vm778_vm8, %v1252_v40, 0.0  ;;  %v834_v15 = vrot.slane %v833_v29, 2 }
 0x12e   : > { %v1212_v4 = vadd.f32 %v1195_v45, %v1113_v34  ;;  %2222 = vst.msk [vmem:[%s3096_s28 + $0x78] sm:$0xff] %vm778_vm8, %v1214_v1  ;;  %v1261_v59 = vsel %vm778_vm8, %v1250_v33, 0.0  ;;  %v1253_v3 = vmul.f32 %v1214_v1, %v1214_v1  ;;  %v1237_v0 = vsel %vm778_vm8, %v1214_v1, 0.0 }
 0x12f   : > { %v1232_v58 = vadd.f32 %v1231_v35, %v1230_v55  ;;  %v1260_v9 = vadd.f32 %v1259_v43, %v1258_v60  ;;  %v1317_v23 = vpop.f32.mrf.mxu0  ;;  %v3193_v47 = vpop.f32.mrf.mxu1  ;;  %v805_v48 = vadd.f32 %v804_v61, %v803_v52  ;;  %v835_v10 = vadd.f32 %v834_v15, %v833_v29 }
 0x130   : > { %2220 = vst.msk [vmem:[%s3096_s28 + $0x68] sm:$0xff] %vm778_vm8, %v1212_v4  ;;  %v1233_v41 = vsel %vm778_vm8, %v1212_v4, 0.0  ;;  %v1251_v25 = vmul.f32 %v1212_v4, %v1212_v4  ;;  %v1267_v13 = vsel %vm778_vm8, %v1253_v3, 0.0  ;;  %v1394_v42 = vadd.f32 %v3153_v49, %v2480_v27 }
 0x131   : > { %v1262_v56 = vadd.f32 %v1261_v59, %v1260_v9  ;;  %v1234_v22 = vadd.f32 %v1233_v41, %v1232_v58  ;;  %v2481_v45 = vpop.f32.mrf.mxu0  ;;  %v3198_v53 = vpop.f32.mrf.mxu1  ;;  %v806_v57 = vrot.slane %v805_v48, 1  ;;  %v1386_v54 = vadd.f32 %v3157_v7, %v1317_v23 }
 0x132   : > { %v1263_v46 = vsel %vm778_vm8, %v1251_v25, 0.0  ;;  %v836_v1 = vrot.slane %v835_v10, 1  ;;  %v1397_v26 = vadd.f32 %v3165_v8, %v2481_v45 }
 0x133   : > { %v1236_v2 = vadd.f32 %v1235_v24, %v1234_v22  ;;  %v1264_v18 = vadd.f32 %v1263_v46, %v1262_v56  ;;  %v1320_v63 = vpop.f32.mrf.mxu0  ;;  %v2510_v32 = vpop.f32.mrf.mxu1  ;;  %v807_v27 = vadd.f32 %v806_v57, %v805_v48 }
 0x134   : > { %v837_v52 = vadd.f32 %v836_v1, %v835_v10  ;;  %v1389_v8 = vadd.f32 %v3173_v20, %v1320_v63 }
 0x135   : > { %v1238_v11 = vadd.f32 %v1237_v0, %v1236_v2  ;;  %v1266_v31 = vadd.f32 %v1265_v5, %v1264_v18  ;;  %v2484_v30 = vpop.f32.mrf.mxu0  ;;  %v1561_v62 = vpop.f32.mrf.mxu1 }
 0x136   : > { %v1410_v24 = vadd.f32 %v3179_v44, %v2484_v30 }
 0x137   : > { %v1239_v16 = vrot.slane %v1238_v11, 4  ;;  %v1268_v36 = vadd.f32 %v1267_v13, %v1266_v31  ;;  %v1333_v37 = vpop.f32.mrf.mxu0  ;;  %v2511_v6 = vpop.f32.mrf.mxu1 }
 0x138   : > { %v1402_v5 = vadd.f32 %v3184_v50, %v1333_v37 }
 0x139   : > { %v1240_v19 = vadd.f32 %v1239_v16, %v1238_v11  ;;  %v1269_v38 = vrot.slane %v1268_v36, 4  ;;  %v2485_v39 = vpop.f32.mrf.mxu0  ;;  %v1564_v51 = vpop.f32.mrf.mxu1 }
 0x13a   : > { %v1413_v31 = vadd.f32 %v3193_v47, %v2485_v39 }
 0x13b   : > { %v1241_v12 = vrot.slane %v1240_v19, 2  ;;  %v1270_v21 = vadd.f32 %v1269_v38, %v1268_v36  ;;  %v1336_v28 = vpop.f32.mrf.mxu0  ;;  %v2514_v17 = vpop.f32.mrf.mxu1 }
 0x13c   : > { %v1405_v37 = vadd.f32 %v3198_v53, %v1336_v28 }
 0x13d   : > { %v1242_v14 = vadd.f32 %v1241_v12, %v1240_v19  ;;  %v1271_v33 = vrot.slane %v1270_v21, 2  ;;  %v2500_v34 = vpop.f32.mrf.mxu0  ;;  %v1577_v55 = vpop.f32.mrf.mxu1 }
 0x13e   : > { %v1494_v60 = vadd.f32 %v2500_v34, %v1394_v42 }
 0x13f   : > { %v1243_v43 = vrot.slane %v1242_v14, 1  ;;  %v1272_v35 = vadd.f32 %v1271_v33, %v1270_v21  ;;  %v1461_v4 = vpop.f32.mrf.mxu0  ;;  %v2515_v49 = vpop.f32.mrf.mxu1 }
 0x140   : > { %v1594_v58 = vadd.f32 %v2510_v32, %v1494_v60  ;;  %v1492_v9 = vadd.f32 %v1461_v4, %v1386_v54 }
 0x141   : > { %v1244_v40 = vadd.f32 %v1243_v43, %v1242_v14  ;;  %v1273_v59 = vrot.slane %v1272_v35, 1  ;;  %v2501_v41 = vpop.f32.mrf.mxu0  ;;  %v1580_v23 = vpop.f32.mrf.mxu1 }
 0x142   : > { %2249 = vst.msk [vmem:[%s3096_s28 + $0x90] sm:$0xff] %vm778_vm8, %v1594_v58  ;;  %v1592_v25 = vadd.f32 %v1561_v62, %v1492_v9  ;;  %v1495_v7 = vadd.f32 %v2501_v41, %v1397_v26  ;;  %v1612_v12 = vsel %vm778_vm8, %v1594_v58, 0.0  ;;  %v1633_v21 = vmul.f32 %v1594_v58, %v1594_v58 }
 0x143   : > { %v3209_v56 = vadd.f32 %v1244_v40, %v807_v27  ;;  %v1274_v22 = vadd.f32 %v1273_v59, %v1272_v35  ;;  %v1464_v45 = vpop.f32.mrf.mxu0  ;;  %v3215_v46 = vpop.f32.mrf.mxu1 }
 0x144   : > { %2247 = vst.msk [vmem:[%s3096_s28 + $0x80] sm:$0xff] %vm778_vm8, %v1592_v25  ;;  %v1595_v3 = vadd.f32 %v2511_v6, %v1495_v7  ;;  %v1493_v2 = vadd.f32 %v1464_v45, %v1389_v8  ;;  %v1609_v62 = vsel %vm778_vm8, %v1592_v25, 0.0  ;;  %v1631_v15 = vmul.f32 %v1592_v25, %v1592_v25 }
 0x145   : > { %v3217_v29 = vadd.f32 %v1274_v22, %v837_v52  ;;  %v2504_v18 = vpop.f32.mrf.mxu0  ;;  %v3222_v20 = vpop.f32.mrf.mxu1  ;;  %v1642_v54 = vsel %vm778_vm8, %v1633_v21, 0.0 }
 0x146   : > { %2250 = vst.msk [vmem:[%s3096_s28 + $0x98] sm:$0xff] %vm778_vm8, %v1595_v3  ;;  %v1498_v0 = vadd.f32 %v2504_v18, %v1410_v24  ;;  %v1593_v63 = vadd.f32 %v1564_v51, %v1493_v2  ;;  %v1639_v42 = vsel %vm778_vm8, %v1631_v15, 0.0  ;;  %v1614_v60 = vsel %vm778_vm8, %v1595_v3, 0.0 }
 0x147   : > { %v1477_v44 = vpop.f32.mrf.mxu0  ;;  %v3226_v11 = vpop.f32.mrf.mxu1 }
 0x148   : > { %v3224_v32 = vadd.f32 %v2514_v17, %v1498_v0  ;;  %v1496_v61 = vadd.f32 %v1477_v44, %v1402_v5  ;;  %2248 = vst.msk [vmem:[%s3096_s28 + $0x88] sm:$0xff] %vm778_vm8, %v1593_v63  ;;  %v1610_v50 = vsel %vm778_vm8, %v1593_v63, 0.0  ;;  %v1632_v30 = vmul.f32 %v1593_v63, %v1593_v63 }
 0x149   : > { %v2505_v13 = vpop.f32.mrf.mxu0  ;;  %v3236_v36 = vpop.f32.mrf.mxu1  ;;  %v1611_v6 = vadd.f32 %v1610_v50, %v1609_v62 }
 0x14a   : > { %2253 = vst.msk [vmem:[%s3096_s28 + $0xb0] sm:$0xff] %vm778_vm8, %v3224_v32  ;;  %v1596_v16 = vadd.f32 %v1577_v55, %v1496_v61  ;;  %v1499_v47 = vadd.f32 %v2505_v13, %v1413_v31  ;;  %v1640_v19 = vsel %vm778_vm8, %v1632_v30, 0.0  ;;  %v1634_v55 = vmul.f32 %v1595_v3, %v1595_v3 }
 0x14b   : > { %v1480_v48 = vpop.f32.mrf.mxu0  ;;  %v3242_v38 = vpop.f32.mrf.mxu1  ;;  %v1613_v28 = vadd.f32 %v1612_v12, %v1611_v6  ;;  %v1641_v17 = vadd.f32 %v1640_v19, %v1639_v42  ;;  %v1620_v63 = vsel %vm778_vm8, %v3224_v32, 0.0  ;;  %v1637_v44 = vmul.f32 %v3224_v32, %v3224_v32 }
 0x14c   : > { %2251 = vst.msk [vmem:[%s3096_s28 + $0xa0] sm:$0xff] %vm778_vm8, %v1596_v16  ;;  %v1599_v39 = vadd.f32 %v2515_v49, %v1499_v47  ;;  %v1497_v51 = vadd.f32 %v1480_v48, %v1405_v37  ;;  %v1644_v9 = vsel %vm778_vm8, %v1634_v55, 0.0  ;;  %v1616_v49 = vsel %vm778_vm8, %v1596_v16, 0.0 }
 0x14d   : > { %v2520_v10 = vpop.f32.mrf.mxu0  ;;  %v3246_v53 = vpop.f32.mrf.mxu1  ;;  %v1643_v43 = vadd.f32 %v1642_v54, %v1641_v17  ;;  %v1615_v35 = vadd.f32 %v1614_v60, %v1613_v28  ;;  %v1635_v27 = vmul.f32 %v1596_v16, %v1596_v16  ;;  %v1650_v47 = vsel %vm778_vm8, %v1637_v44, 0.0 }
 0x14e   : > { %2254 = vst.msk [vmem:[%s3096_s28 + $0xb8] sm:$0xff] %vm778_vm8, %v1599_v39  ;;  %v1597_v57 = vadd.f32 %v1580_v23, %v1497_v51  ;;  %v1779_v18 = vadd.f32 %v3215_v46, %v2520_v10  ;;  %v1638_v16 = vmul.f32 %v1599_v39, %v1599_v39  ;;  %v1622_v48 = vsel %vm778_vm8, %v1599_v39, 0.0 }
 0x14f   : > { %v1702_v14 = vpop.f32.mrf.mxu0  ;;  %v3250_v33 = vpop.f32.mrf.mxu1  ;;  %v1617_v59 = vadd.f32 %v1616_v49, %v1615_v35  ;;  %v1645_v41 = vadd.f32 %v1644_v9, %v1643_v43  ;;  %v1646_v8 = vsel %vm778_vm8, %v1635_v27, 0.0 }
 0x150   : > { %2252 = vst.msk [vmem:[%s3096_s28 + $0xa8] sm:$0xff] %vm778_vm8, %v1597_v57  ;;  %v1618_v7 = vsel %vm778_vm8, %v1597_v57, 0.0  ;;  %v1636_v23 = vmul.f32 %v1597_v57, %v1597_v57  ;;  %v1771_v61 = vadd.f32 %v3222_v20, %v1702_v14 }
 0x151   : > { %v2521_v34 = vpop.f32.mrf.mxu0  ;;  %v3256_v1 = vpop.f32.mrf.mxu1  ;;  %v1647_v45 = vadd.f32 %v1646_v8, %v1645_v41  ;;  %v1619_v24 = vadd.f32 %v1618_v7, %v1617_v59 }
 0x152   : > { %v1648_v2 = vsel %vm778_vm8, %v1636_v23, 0.0  ;;  %v1782_v46 = vadd.f32 %v3226_v11, %v2521_v34  ;;  %v1652_v11 = vsel %vm778_vm8, %v1638_v16, 0.0 }
 0x153   : > { %v1705_v4 = vpop.f32.mrf.mxu0  ;;  %v2550_v26 = vpop.f32.mrf.mxu1  ;;  %v1621_v50 = vadd.f32 %v1620_v63, %v1619_v24  ;;  %v1649_v30 = vadd.f32 %v1648_v2, %v1647_v45 }
 0x154   : > { %v1774_v32 = vadd.f32 %v3236_v36, %v1705_v4 }
 0x155   : > { %v2524_v58 = vpop.f32.mrf.mxu0  ;;  %v1926_v40 = vpop.f32.mrf.mxu1  ;;  %v1623_v20 = vadd.f32 %v1622_v48, %v1621_v50  ;;  %v1651_v19 = vadd.f32 %v1650_v47, %v1649_v30 }
 0x156   : > { %v1795_v21 = vadd.f32 %v3242_v38, %v2524_v58 }
 0x157   : > { %v1718_v25 = vpop.f32.mrf.mxu0  ;;  %v2551_v22 = vpop.f32.mrf.mxu1  ;;  %v1624_v54 = vrot.slane %v1623_v20, 4  ;;  %v1653_v60 = vadd.f32 %v1652_v11, %v1651_v19 }
 0x158   : > { %v1787_v36 = vadd.f32 %v3246_v53, %v1718_v25 }
 0x159   : > { %v2525_v52 = vpop.f32.mrf.mxu0  ;;  %v1929_v0 = vpop.f32.mrf.mxu1 }
 0x15a   : > { %v1798_v53 = vadd.f32 %v3250_v33, %v2525_v52 }
 0x15b   : > { %v1721_v3 = vpop.f32.mrf.mxu0  ;;  %v2554_v6 = vpop.f32.mrf.mxu1 }
 0x15c   : > { %v1790_v9 = vadd.f32 %v3256_v1, %v1721_v3 }
 0x15d   : > { %v2540_v5 = vpop.f32.mrf.mxu0  ;;  %v1942_v39 = vpop.f32.mrf.mxu1 }
 0x15e   : > { %v1873_v31 = vadd.f32 %v2540_v5, %v1779_v18  ;;  %v1625_v18 = vadd.f32 %v1624_v54, %v1623_v20 }
 0x15f   : > { %v1840_v13 = vpop.f32.mrf.mxu0 }
 0x160   : > { %v1959_v62 = vadd.f32 %v2550_v26, %v1873_v31  ;;  %v1871_v15 = vadd.f32 %v1840_v13, %v1771_v61 }
 0x161   : > { %v2541_v37 = vpop.f32.mrf.mxu0 }
 0x162   : > { %2278 = vst.msk [vmem:[%s3096_s28 + $0xd0] sm:$0xff] %vm778_vm8, %v1959_v62  ;;  %v1957_v51 = vadd.f32 %v1926_v40, %v1871_v15  ;;  %v1874_v10 = vadd.f32 %v2541_v37, %v1782_v46  ;;  %v1998_v55 = vmul.f32 %v1959_v62, %v1959_v62  ;;  %v1977_v49 = vsel %vm778_vm8, %v1959_v62, 0.0  ;;  %v2555_v40 = vpop.f32.mrf.mxu1 }
 0x163   : > { %v1843_v12 = vpop.f32.mrf.mxu0 }
 0x164   : > { %v1872_v42 = vadd.f32 %v1843_v12, %v1774_v32  ;;  %2276 = vst.msk [vmem:[%s3096_s28 + $0xc0] sm:$0xff] %vm778_vm8, %v1957_v51  ;;  %v1960_v28 = vadd.f32 %v2551_v22, %v1874_v10  ;;  %v1996_v57 = vmul.f32 %v1957_v51, %v1957_v51  ;;  %v1974_v43 = vsel %vm778_vm8, %v1957_v51, 0.0  ;;  %v1945_v63 = vpop.f32.mrf.mxu1 }
 0x165   : > { %v2544_v17 = vpop.f32.mrf.mxu0  ;;  %v1654_v22 = vrot.slane %v1653_v60, 4  ;;  %v2007_v1 = vsel %vm778_vm8, %v1998_v55, 0.0 }
 0x166   : > { %v1958_v14 = vadd.f32 %v1929_v0, %v1872_v42  ;;  %v1877_v34 = vadd.f32 %v2544_v17, %v1795_v21  ;;  %2279 = vst.msk [vmem:[%s3096_s28 + $0xd8] sm:$0xff] %vm778_vm8, %v1960_v28  ;;  %v2004_v41 = vsel %vm778_vm8, %v1996_v57, 0.0  ;;  %v1999_v25 = vmul.f32 %v1960_v28, %v1960_v28 }
 0x167   : > { %v1856_v38 = vpop.f32.mrf.mxu0  ;;  %v1979_v24 = vsel %vm778_vm8, %v1960_v28, 0.0  ;;  %v1655_v30 = vadd.f32 %v1654_v22, %v1653_v60 }
 0x168   : > { %2277 = vst.msk [vmem:[%s3096_s28 + $0xc8] sm:$0xff] %vm778_vm8, %v1958_v14  ;;  %v1975_v35 = vsel %vm778_vm8, %v1958_v14, 0.0  ;;  %v1997_v4 = vmul.f32 %v1958_v14, %v1958_v14  ;;  %v1963_v26 = vadd.f32 %v2554_v6, %v1877_v34  ;;  %v1875_v58 = vadd.f32 %v1856_v38, %v1787_v36 }
 0x169   : > { %v1976_v27 = vadd.f32 %v1975_v35, %v1974_v43  ;;  %v2545_v59 = vpop.f32.mrf.mxu0  ;;  %v2009_v61 = vsel %vm778_vm8, %v1999_v25, 0.0  ;;  %v1626_v6 = vrot.slane %v1625_v18, 2  ;;  %v1656_v51 = vrot.slane %v1655_v30, 2 }
 0x16a   : > { %v2005_v7 = vsel %vm778_vm8, %v1997_v4, 0.0  ;;  %2282 = vst.msk [vmem:[%s3096_s28 + $0xf0] sm:$0xff] %vm778_vm8, %v1963_v26  ;;  %v1961_v23 = vadd.f32 %v1942_v39, %v1875_v58  ;;  %v1878_v33 = vadd.f32 %v2545_v59, %v1798_v53  ;;  %v2002_v15 = vmul.f32 %v1963_v26, %v1963_v26 }
 0x16b   : > { %v1978_v8 = vadd.f32 %v1977_v49, %v1976_v27  ;;  %v2006_v45 = vadd.f32 %v2005_v7, %v2004_v41  ;;  %v1859_v52 = vpop.f32.mrf.mxu0  ;;  %v1985_v32 = vsel %vm778_vm8, %v1963_v26, 0.0  ;;  %v1627_v11 = vadd.f32 %v1626_v6, %v1625_v18 }
 0x16c   : > { %2280 = vst.msk [vmem:[%s3096_s28 + $0xe0] sm:$0xff] %vm778_vm8, %v1961_v23  ;;  %v2000_v3 = vmul.f32 %v1961_v23, %v1961_v23  ;;  %v1876_v2 = vadd.f32 %v1859_v52, %v1790_v9  ;;  %v1964_v44 = vadd.f32 %v2555_v40, %v1878_v33  ;;  %v1981_v31 = vsel %vm778_vm8, %v1961_v23, 0.0 }
 0x16d   : > { %v2008_v5 = vadd.f32 %v2007_v1, %v2006_v45  ;;  %v1980_v0 = vadd.f32 %v1979_v24, %v1978_v8  ;;  %v2015_v21 = vsel %vm778_vm8, %v2002_v15, 0.0  ;;  %v1657_v36 = vadd.f32 %v1656_v51, %v1655_v30 }
 0x16e   : > { %v1962_v50 = vadd.f32 %v1945_v63, %v1876_v2  ;;  %2283 = vst.msk [vmem:[%s3096_s28 + $0xf8] sm:$0xff] %vm778_vm8, %v1964_v44  ;;  %v2011_v16 = vsel %vm778_vm8, %v2000_v3, 0.0  ;;  %v2003_v20 = vmul.f32 %v1964_v44, %v1964_v44  ;;  %v1987_v42 = vsel %vm778_vm8, %v1964_v44, 0.0 }
 0x16f   : > { %v1982_v13 = vadd.f32 %v1981_v31, %v1980_v0  ;;  %v2010_v62 = vadd.f32 %v2009_v61, %v2008_v5  ;;  %v1628_v34 = vrot.slane %v1627_v11, 1  ;;  %v1658_v55 = vrot.slane %v1657_v36, 1 }
 0x170   : > { %2281 = vst.msk [vmem:[%s3096_s28 + $0xe8] sm:$0xff] %vm778_vm8, %v1962_v50  ;;  %v1983_v46 = vsel %vm778_vm8, %v1962_v50, 0.0  ;;  %v2001_v37 = vmul.f32 %v1962_v50, %v1962_v50  ;;  %v2017_v17 = vsel %vm778_vm8, %v2003_v20, 0.0 }
 0x171   : > { %v2012_v47 = vadd.f32 %v2011_v16, %v2010_v62  ;;  %v1984_v48 = vadd.f32 %v1983_v46, %v1982_v13  ;;  %v1629_v35 = vadd.f32 %v1628_v34, %v1627_v11  ;;  %v1659_v58 = vadd.f32 %v1658_v55, %v1657_v36 }
 0x172   : > { %v2013_v19 = vsel %vm778_vm8, %v2001_v37, 0.0 }
 0x173   : > { %v1986_v10 = vadd.f32 %v1985_v32, %v1984_v48  ;;  %v2014_v12 = vadd.f32 %v2013_v19, %v2012_v47  ;;  %v1630_v49 = vadd.f32 %v1629_v35, %v3209_v56  ;;  %v1660_v59 = vadd.f32 %v1659_v58, %v3217_v29 }
 0x175   : > { %v1988_v28 = vadd.f32 %v1987_v42, %v1986_v10  ;;  %v2016_v39 = vadd.f32 %v2015_v21, %v2014_v12 }
 0x177   : > { %v1989_v57 = vrot.slane %v1988_v28, 4  ;;  %v2018_v14 = vadd.f32 %v2017_v17, %v2016_v39 }
 0x179   : > { %v1990_v54 = vadd.f32 %v1989_v57, %v1988_v28  ;;  %v2019_v60 = vrot.slane %v2018_v14, 4 }
 0x17b   : > { %v1991_v43 = vrot.slane %v1990_v54, 2  ;;  %v2020_v38 = vadd.f32 %v2019_v60, %v2018_v14 }
 0x17d   : > { %v1992_v4 = vadd.f32 %v1991_v43, %v1990_v54  ;;  %v2021_v26 = vrot.slane %v2020_v38, 2 }
 0x17f   : > { %v1993_v53 = vrot.slane %v1992_v4, 1  ;;  %v2022_v9 = vadd.f32 %v2021_v26, %v2020_v38 }
 0x181   : > { %v1994_v27 = vadd.f32 %v1993_v53, %v1992_v4  ;;  %v2023_v40 = vrot.slane %v2022_v9, 1 }
 0x183   : > { %v1995_v41 = vadd.f32 %v1994_v27, %v1630_v49  ;;  %v2024_v25 = vadd.f32 %v2023_v40, %v2022_v9 }
 0x185   : > { %v2025_v7 = vadd.f32 %v2024_v25, %v1660_v59  ;;  %2027 = vst.msk [vmem:[%s181_s5] sm:$0x1] %vm2026_vm9, %v1995_v41 }
 0x187   : > { %2028 = vst.msk [vmem:[%s181_s5 + $0x1] sm:$0x1] %vm2026_vm9, %v2025_v7 }
 0x188 PF: > { %s14_s12 = sadd.s32 1, %s2587_s12  }
 0x189   : > { %p11_p4 = scmp.ge.s32.totalorder %s14_s12, 4  }
 0x18b   :  { %13 = sbr.rel (!%p11_p4) target bundleno = 1 (0x1), region = 88 }

// kernel: unet_innermost_forward.3
= control target key start
LH: loop header
LB: loop body
LE: loop exit
PB: predicated region body
PF: predicated region fallthrough
CT: control target
= control target key end

     0   :  { %s3363_s9 = smov 0   ;;  %s4434_s0 = inlined_call_operand.vmem [shape: f32[2,4,9,9,4], index: 0, kind: input, shape index: {}]   ;;  %s4435_s1 = inlined_call_operand.vmem [shape: bf16[16,4,8], index: 1, kind: input, shape index: {}]   ;;  %s4436_s2 = inlined_call_operand.vmem [shape: f32[2,8,8,8], index: 2, kind: output, shape index: {}]  }
   0x1 LB: > { %s2745_s10 = sadd.s32 4294967295, %s3346_s9   ;;  %p2749_p0 = scmp.ge.s32.totalorder %s3346_s9, 1  ;;  %s3346_s9 = sphi %s3363_s9, %s12_s9  }
   0x2   : > { %p112_p1 = scmp.lt.s32.totalorder %s3346_s9, 3 }
   0x4   : > { %p113_p2 = pnand %p2749_p0, %p112_p1 }
   0x6   : > { %116 = sbr.rel (%p113_p2) target bundleno = 436 (0x1b4), region = 28 }
   0xb   : > { %v2753_v0 = vld [vmem:[%s4435_s1 + $0x2] sm:$0x3]  ;;  %vm505_vm0 = vcmask 1041408   ;;  %v469_v1 = vld [vmem:[%s4435_s1] sm:$0x3]  ;;  %p134_p3 = scmp.lt.s32.totalorder %s2745_s10, 1 }
   0xc   : > { %3315 = vmatprep.subr.msk.bf16.mxu0 %vm505_vm0, %v2753_v0  ;;  %v507_v2 = vsel %vm505_vm0, %v2753_v0, 0  ;;  %3316 = vmatprep.subr.msk.bf16.mxu1 %vm505_vm0, %v469_v1  ;;  %v607_v3 = vsel %vm505_vm0, %v469_v1, 0  ;;  %v2786_v4 = vld [vmem:[%s4435_s1 + $0x4] sm:$0x3]  ;;  %v2811_v5 = vld [vmem:[%s4435_s1 + $0x6] sm:$0x3] }
   0xd   : > { %3156 = vmatpush3.bf16.msra.mxu0 %v507_v2  ;;  %3166 = vmatpush3.bf16.msra.mxu1 %v607_v3  ;;  %s4558_s10 = smov (!%p134_p3, %s2745_s10), 1  ;;  %v3394_v6 = vld [vmem:[%s4435_s1 + $0x8] sm:$0x3]  ;;  %v3400_v7 = vld [vmem:[%s4435_s1 + $0xa] sm:$0x3]  ;;  %vm492_vm1 = vcmask 31744  }
   0xe   : > { %3317 = vmatprep.subr.msk.bf16.mxu0 %vm505_vm0, %v2786_v4  ;;  %3318 = vmatprep.subr.msk.bf16.mxu1 %vm505_vm0, %v2811_v5  ;;  %s3331_s21 = smul.u32 576, %s4558_s10  ;;  %v3405_v8 = vld [vmem:[%s4435_s1 + $0xc] sm:$0x3]  ;;  %v3410_v9 = vld [vmem:[%s4435_s1 + $0xe] sm:$0x3]  ;;  %v3418_v10 = vsel %vm505_vm0, %v2786_v4, 0 }
   0xf   : > { %v3421_v11 = vsel %vm505_vm0, %v2811_v5, 0  ;;  %v3425_v12 = vsel %vm505_vm0, %v3394_v6, 0  ;;  %v3432_v16 = vsel %vm505_vm0, %v3400_v7, 0  ;;  %v3436_v17 = vsel %vm505_vm0, %v3405_v8, 0 }
  0x10   : > { %s3415_s30 = scalar_lea.vmem %s4434_s0, %s3331_s21  ;;  %v3440_v18 = vsel %vm505_vm0, %v3410_v9, 0  ;;  %s2970_s21 = sshll.u32 %s4558_s10, 6 }
  0x11   : > { %v163_v13 = vld [vmem:[%s3415_s30 + $0x90] sm:$0xff]  ;;  %v165_v14 = vld [vmem:[%s3415_s30 + $0xa0] sm:$0xff]  ;;  %s4412_s24 = scalar_lea.vmem %s4436_s2, %s2970_s21 }
  0x12   : > { %v167_v15 = vld [vmem:[%s3415_s30 + $0xb0] sm:$0xff]  ;;  %vm235_vm2 = vcmp.ge.f32.partialorder %v163_v13, 0.0  ;;  %vm237_vm3 = vcmp.ge.f32.partialorder %v165_v14, 0.0  ;;  %v307_v19 = vmul.f32 0.2, %v163_v13  ;;  %v145_v20 = vld [vmem:[%s3415_s30] sm:$0xff] }
  0x13   : > { %vm239_vm4 = vcmp.ge.f32.partialorder %v167_v15, 0.0  ;;  %v309_v21 = vmul.f32 0.2, %v165_v14  ;;  %v311_v22 = vmul.f32 0.2, %v167_v15  ;;  %v147_v23 = vld [vmem:[%s3415_s30 + $0x10] sm:$0xff] }
  0x14   : > { %v149_v24 = vld [vmem:[%s3415_s30 + $0x20] sm:$0xff]  ;;  %v379_v25 = vsel %vm235_vm2, %v163_v13, %v307_v19  ;;  %vm217_vm5 = vcmp.ge.f32.partialorder %v145_v20, 0.0  ;;  %vm219_vm6 = vcmp.ge.f32.partialorder %v147_v23, 0.0  ;;  %v289_v29 = vmul.f32 0.2, %v145_v20  ;;  %v151_v3 = vld [vmem:[%s3415_s30 + $0x30] sm:$0xff] }
  0x15   : > { %vm221_vm7 = vcmp.ge.f32.partialorder %v149_v24, 0.0  ;;  %v3445_v26 = vsel %vm237_vm3, %v165_v14, %v309_v21  ;;  %v3447_v27 = vsel %vm239_vm4, %v167_v15, %v311_v22  ;;  %v2995_v28 = vpack.c.bf16 %v379_v25, %v379_v25  ;;  %v169_v62 = vld [vmem:[%s3415_s30 + $0xc0] sm:$0xff]  ;;  %v171_v15 = vld [vmem:[%s3415_s30 + $0xd0] sm:$0xff] }
  0x16   : > { %v2971_v30 = vpack.c.bf16 %v3445_v26, %v379_v25  ;;  %v2997_v31 = vpack.c.bf16 %v3445_v26, %v3445_v26  ;;  %v2999_v32 = vpack.c.bf16 %v3447_v27, %v3447_v27  ;;  %v291_v36 = vmul.f32 0.2, %v147_v23  ;;  %v173_v25 = vld [vmem:[%s3415_s30 + $0xe0] sm:$0xff] }
  0x17   : > { %v940_v34 = vshrl.u32 %v2995_v28, 16  ;;  %v943_v35 = vshll.u32 %v2995_v28, 16  ;;  %v293_v37 = vmul.f32 0.2, %v149_v24  ;;  %v361_v44 = vsel %vm217_vm5, %v145_v20, %v289_v29 }
  0x18   : > { %3157 = vmatprep.mubr.msk.bf16.mxu0 %vm492_vm1, %v2971_v30  ;;  %v954_v38 = vshrl.u32 %v2997_v31, 16  ;;  %v957_v39 = vshll.u32 %v2997_v31, 16  ;;  %v968_v40 = vshrl.u32 %v2999_v32, 16  ;;  %v971_v41 = vshll.u32 %v2999_v32, 16 }
  0x19   : > { %v942_v42 = vrot.slane %v940_v34, 4  ;;  %v945_v43 = vrot.slane %v943_v35, 5  ;;  %v3459_v45 = vsel %vm219_vm6, %v147_v23, %v291_v36  ;;  %v3462_v51 = vsel %vm221_vm7, %v149_v24, %v293_v37  ;;  %v153_v36 = vld [vmem:[%s3415_s30 + $0x40] sm:$0xff] }
  0x1a   : > { %v956_v46 = vrot.slane %v954_v38, 4  ;;  %v959_v47 = vrot.slane %v957_v39, 5  ;;  %v970_v48 = vrot.slane %v968_v40, 4  ;;  %v973_v49 = vrot.slane %v971_v41, 5 }
  0x1b   : > { %v946_v50 = vor.u32 %v945_v43, %v942_v42  ;;  %v2975_v52 = vpack.c.bf16 %v3459_v45, %v361_v44  ;;  %v2979_v53 = vpack.c.bf16 %v361_v44, %v361_v44  ;;  %v2981_v56 = vpack.c.bf16 %v3459_v45, %v3459_v45  ;;  %v155_v44 = vld [vmem:[%s3415_s30 + $0x50] sm:$0xff] }
  0x1c   : > { %v960_v54 = vor.u32 %v959_v47, %v956_v46  ;;  %v974_v55 = vor.u32 %v973_v49, %v970_v48  ;;  %v2983_v57 = vpack.c.bf16 %v3462_v51, %v3462_v51  ;;  %vm241_vm8 = vcmp.ge.f32.partialorder %v169_v62, 0.0 }
  0x1d   : > { %v3469_v58 = vrot.slane %v946_v50, 4  ;;  %3167 = vmatprep.mubr.msk.bf16.mxu1 %vm492_vm1, %v2975_v52  ;;  %v702_v59 = vshrl.u32 %v2979_v53, 16  ;;  %v705_v60 = vshll.u32 %v2979_v53, 16  ;;  %v716_v1 = vshrl.u32 %v2981_v56, 16 }
  0x1e   : > { %v3475_v63 = vrot.slane %v960_v54, 4  ;;  %v3477_v0 = vrot.slane %v974_v55, 4  ;;  %v719_v2 = vshll.u32 %v2981_v56, 16  ;;  %v730_v13 = vshrl.u32 %v2983_v57, 16 }
  0x1f   : > { %v704_v4 = vrot.slane %v702_v59, 4  ;;  %v707_v5 = vrot.slane %v705_v60, 5  ;;  %v733_v14 = vshll.u32 %v2983_v57, 16  ;;  %v718_v19 = vrot.slane %v716_v1, 4 }
  0x20   : > { %v721_v20 = vrot.slane %v719_v2, 5  ;;  %v313_v21 = vmul.f32 0.2, %v169_v62  ;;  %v732_v23 = vrot.slane %v730_v13, 4  ;;  %vm223_vm9 = vcmp.ge.f32.partialorder %v151_v3, 0.0  ;;  %v175_v13 = vld [vmem:[%s3415_s30 + $0xf0] sm:$0xff] }
  0x21   : > { %v708_v22 = vor.u32 %v707_v5, %v704_v4  ;;  %v735_v24 = vrot.slane %v733_v14, 5  ;;  %v295_v30 = vmul.f32 0.2, %v151_v3  ;;  %vm243_vm10 = vcmp.ge.f32.partialorder %v171_v15, 0.0  ;;  %v177_v14 = vld [vmem:[%s3415_s30 + $0x100] sm:$0xff] }
  0x22   : > { %v722_v28 = vor.u32 %v721_v20, %v718_v19  ;;  %v3482_v29 = vsel %vm241_vm8, %v169_v62, %v313_v21  ;;  %vm245_vm11 = vcmp.ge.f32.partialorder %v173_v25, 0.0  ;;  %v315_v39 = vmul.f32 0.2, %v171_v15 }
  0x23   : > { %4467 = vst [vmem:[#allocation2_spill] sm:$0xff] %v3482_v29  ;;  %v3484_v31 = vrot.slane %v708_v22, 4  ;;  %v736_v32 = vor.u32 %v735_v24, %v732_v23  ;;  %v2972_v34 = vpack.c.bf16 %v3482_v29, %v3447_v27  ;;  %v3001_v35 = vpack.c.bf16 %v3482_v29, %v3482_v29  ;;  %v170_v24 = vld [vmem:[%s3415_s30 + $0xc8] sm:$0x1] }
  0x24   : > { %v3491_v37 = vrot.slane %v722_v28, 4  ;;  %v3493_v38 = vsel %vm223_vm9, %v151_v3, %v295_v30  ;;  %v317_v47 = vmul.f32 0.2, %v173_v25  ;;  %v3505_v48 = vsel %vm243_vm10, %v171_v15, %v315_v39  ;;  %v159_v28 = vld [vmem:[%s3415_s30 + $0x70] sm:$0xff] }
  0x25   : > { %v3495_v40 = vrot.slane %v736_v32, 4  ;;  %3158 = vmatmul.mubr.msk.bf16.vlgmr.msra.gmra.mxu0 %vm492_vm1, %v2972_v34  ;;  %v982_v41 = vshrl.u32 %v3001_v35, 16  ;;  %v985_v42 = vshll.u32 %v3001_v35, 16  ;;  %v2976_v43 = vpack.c.bf16 %v3493_v38, %v3462_v51  ;;  %4468 = vst [vmem:[#allocation3_spill] sm:$0xff] %v3505_v48 }
  0x26   : > { %v2985_v46 = vpack.c.bf16 %v3493_v38, %v3493_v38  ;;  %3176 = vmatpush3.bf16.msra.mxu0 %v3418_v10  ;;  %vm225_vm12 = vcmp.ge.f32.partialorder %v153_v36, 0.0  ;;  %v3003_v52 = vpack.c.bf16 %v3505_v48, %v3505_v48  ;;  %v3516_v55 = vsel %vm245_vm11, %v173_v25, %v317_v47  ;;  %v157_v25 = vld [vmem:[%s3415_s30 + $0x60] sm:$0xff] }
  0x27   : > { %v984_v49 = vrot.slane %v982_v41, 4  ;;  %v987_v50 = vrot.slane %v985_v42, 5  ;;  %3168 = vmatmul.mubr.msk.bf16.vlgmr.msra.gmra.mxu1 %vm492_vm1, %v2976_v43  ;;  %3319 = vmatprep.subr.msk.bf16.mxu0 %vm505_vm0, %v3394_v6  ;;  %vm227_vm13 = vcmp.ge.f32.partialorder %v155_v44, 0.0  ;;  %v2973_v57 = vpack.c.bf16 %v3516_v55, %v3505_v48 }
  0x28   : > { %v744_v54 = vshrl.u32 %v2985_v46, 16  ;;  %v747_v10 = vshll.u32 %v2985_v46, 16  ;;  %3186 = vmatpush3.bf16.msra.mxu1 %v3421_v11  ;;  %v3005_v59 = vpack.c.bf16 %v3516_v55, %v3516_v55  ;;  %v996_v60 = vshrl.u32 %v3003_v52, 16 }
  0x29   : > { %v988_v56 = vor.u32 %v987_v50, %v984_v49  ;;  %3320 = vmatprep.subr.msk.bf16.mxu1 %vm505_vm0, %v3400_v7  ;;  %v999_v11 = vshll.u32 %v3003_v52, 16  ;;  %v297_v1 = vmul.f32 0.2, %v153_v36  ;;  %3161 = vmatprep.mubr.msk.bf16.mxu0 %vm492_vm1, %v2973_v57  ;;  %v299_v7 = vmul.f32 0.2, %v155_v44 }
  0x2a   : > { %v746_v6 = vrot.slane %v744_v54, 4  ;;  %v749_v62 = vrot.slane %v747_v10, 5  ;;  %v3527_v3 = vrot.slane %v996_v60, 4  ;;  %v1010_v4 = vshrl.u32 %v3005_v59, 16  ;;  %v146_v49 = vld [vmem:[%s3415_s30 + $0x8] sm:$0x1] }
  0x2b   : > { %v3524_v2 = vrot.slane %v988_v56, 4  ;;  %v1013_v5 = vshll.u32 %v3005_v59, 16  ;;  %v3531_v19 = vrot.slane %v999_v11, 5  ;;  %v3534_v20 = vsel %vm225_vm12, %v153_v36, %v297_v1 }
  0x2c   : > { %v750_v15 = vor.u32 %v749_v62, %v746_v6  ;;  %v3536_v21 = vrot.slane %v1010_v4, 4  ;;  %v2987_v23 = vpack.c.bf16 %v3534_v20, %v3534_v20  ;;  %v3549_v32 = vsel %vm227_vm13, %v155_v44, %v299_v7  ;;  %v148_v6 = vld [vmem:[%s3415_s30 + $0x18] sm:$0x1] }
  0x2d   : > { %v3538_v22 = vrot.slane %v1013_v5, 5  ;;  %vm247_vm14 = vcmp.ge.f32.partialorder %v175_v13, 0.0  ;;  %vm249_vm15 = vcmp.ge.f32.partialorder %v177_v14, 0.0  ;;  %v2977_v34 = vpack.c.bf16 %v3549_v32, %v3534_v20 }
  0x2e   : > { %v3546_v30 = vrot.slane %v750_v15, 4  ;;  %v2989_v35 = vpack.c.bf16 %v3549_v32, %v3549_v32  ;;  %v758_v36 = vshrl.u32 %v2987_v23, 16  ;;  %v761_v39 = vshll.u32 %v2987_v23, 16  ;;  %v164_v15 = vld [vmem:[%s3415_s30 + $0x98] sm:$0x1] }
  0x2f   : > { %v319_v41 = vmul.f32 0.2, %v175_v13  ;;  %v321_v42 = vmul.f32 0.2, %v177_v14  ;;  %vm229_vm2 = vcmp.ge.f32.partialorder %v157_v25, 0.0  ;;  %vm231_vm3 = vcmp.ge.f32.partialorder %v159_v28, 0.0  ;;  %3171 = vmatprep.mubr.msk.bf16.mxu1 %vm492_vm1, %v2977_v34 }
  0x30   : > { %v3556_v43 = vrot.slane %v758_v36, 4  ;;  %v3558_v44 = vrot.slane %v761_v39, 5  ;;  %v772_v46 = vshrl.u32 %v2989_v35, 16  ;;  %v775_v47 = vshll.u32 %v2989_v35, 16 }
  0x31   : > { %v3562_v50 = vsel %vm247_vm14, %v175_v13, %v319_v41  ;;  %v3565_v52 = vsel %vm249_vm15, %v177_v14, %v321_v42  ;;  %v301_v54 = vmul.f32 0.2, %v157_v25  ;;  %v303_v10 = vmul.f32 0.2, %v159_v28  ;;  %v150_v41 = vld [vmem:[%s3415_s30 + $0x28] sm:$0x1] }
  0x32   : > { %4469 = vst [vmem:[#allocation4_spill] sm:$0xff] %v3565_v52  ;;  %v3567_v56 = vrot.slane %v772_v46, 4  ;;  %v3569_v57 = vrot.slane %v775_v47, 5  ;;  %v2974_v59 = vpack.c.bf16 %v3565_v52, %v3562_v50  ;;  %v3007_v60 = vpack.c.bf16 %v3562_v50, %v3562_v50 }
  0x33   : > { %v3009_v62 = vpack.c.bf16 %v3565_v52, %v3565_v52  ;;  %v3579_v11 = vsel %vm229_vm2, %v157_v25, %v301_v54  ;;  %v3582_v1 = vsel %vm231_vm3, %v159_v28, %v303_v10  ;;  %vm218_vm4 = vcmp.ge.f32.partialorder %v146_v49, 0.0  ;;  %v166_v28 = vld [vmem:[%s3415_s30 + $0xa8] sm:$0x1]  ;;  %v152_v10 = vld [vmem:[%s3415_s30 + $0x38] sm:$0x1] }
  0x34   : > { %4470 = vst [vmem:[#allocation5_spill] sm:$0xff] %v3582_v1  ;;  %vm698_vm5 = vsmask.f32 3328  ;;  %vm699_vm6 = vsmask.f32 7440  ;;  %3162 = vmatmul.mubr.msk.bf16.gmra.mxu0 %vm492_vm1, %v2974_v59  ;;  %v1024_v4 = vshrl.u32 %v3007_v60, 16  ;;  %v2978_v13 = vpack.c.bf16 %v3582_v1, %v3579_v11 }
  0x35   : > { %v1027_v5 = vshll.u32 %v3007_v60, 16  ;;  %v2991_v14 = vpack.c.bf16 %v3579_v11, %v3579_v11  ;;  %v1038_v7 = vshrl.u32 %v3009_v62, 16  ;;  %v1041_v23 = vshll.u32 %v3009_v62, 16  ;;  %vm3618_vm12 = vmor %vm698_vm5, %vm699_vm6 }
  0x36   : > { %v2993_v25 = vpack.c.bf16 %v3582_v1, %v3582_v1  ;;  %vm220_vm7 = vcmp.ge.f32.partialorder %v148_v6, 0.0  ;;  %v3593_v34 = vrot.slane %v1024_v4, 4  ;;  %3172 = vmatmul.mubr.msk.bf16.gmra.mxu1 %vm492_vm1, %v2978_v13  ;;  %v290_v62 = vmul.f32 0.2, %v146_v49 }
  0x37   : > { %v3595_v35 = vrot.slane %v1027_v5, 5  ;;  %v786_v36 = vshrl.u32 %v2991_v14, 16  ;;  %v789_v39 = vshll.u32 %v2991_v14, 16  ;;  %v3599_v42 = vrot.slane %v1038_v7, 4 }
  0x38   : > { %v3601_v46 = vrot.slane %v1041_v23, 5  ;;  %v800_v47 = vshrl.u32 %v2993_v25, 16  ;;  %v803_v54 = vshll.u32 %v2993_v25, 16  ;;  %v292_v4 = vmul.f32 0.2, %v148_v6 }
  0x39   : > { %v3604_v59 = vrot.slane %v786_v36, 4  ;;  %v3606_v60 = vrot.slane %v789_v39, 5  ;;  %vm236_vm8 = vcmp.ge.f32.partialorder %v164_v15, 0.0  ;;  %vm238_vm9 = vcmp.ge.f32.partialorder %v166_v28, 0.0  ;;  %v168_v39 = vld [vmem:[%s3415_s30 + $0xb8] sm:$0x1] }
  0x3a   : > { %v3608_v5 = vrot.slane %v800_v47, 4  ;;  %v3610_v13 = vrot.slane %v803_v54, 5  ;;  %v362_v14 = vsel %vm218_vm4, %v146_v49, %v290_v62  ;;  %v364_v7 = vsel %vm220_vm7, %v148_v6, %v292_v4 }
  0x3b   : > { %v308_v23 = vmul.f32 0.2, %v164_v15  ;;  %v310_v25 = vmul.f32 0.2, %v166_v28  ;;  %v2980_v36 = vpack.c.bf16 %v362_v14, %v362_v14  ;;  %v2982_v53 = vpack.c.bf16 %v364_v7, %v364_v7 }
  0x3c   : > { %vm222_vm10 = vcmp.ge.f32.partialorder %v150_v41, 0.0  ;;  %vm224_vm11 = vcmp.ge.f32.partialorder %v152_v10, 0.0  ;;  %v294_v47 = vmul.f32 0.2, %v150_v41  ;;  %v296_v52 = vmul.f32 0.2, %v152_v10 }
  0x3d   : > { %v380_v33 = vsel %vm236_vm8, %v164_v15, %v308_v23  ;;  %v382_v61 = vsel %vm238_vm9, %v166_v28, %v310_v25  ;;  %v711_v54 = vshll.u32 %v2980_v36, 16  ;;  %v725_v29 = vshll.u32 %v2982_v53, 16  ;;  %v154_v36 = vld [vmem:[%s3415_s30 + $0x48] sm:$0x1] }
  0x3e   : > { %v2996_v48 = vpack.c.bf16 %v380_v33, %v380_v33  ;;  %v2998_v1 = vpack.c.bf16 %v382_v61, %v382_v61  ;;  %v366_v6 = vsel %vm222_vm10, %v150_v41, %v294_v47  ;;  %v368_v62 = vsel %vm224_vm11, %v152_v10, %v296_v52  ;;  %v156_v47 = vld [vmem:[%s3415_s30 + $0x58] sm:$0x1] }
  0x3f   : > { %vm240_vm13 = vcmp.ge.f32.partialorder %v168_v39, 0.0  ;;  %vm242_vm14 = vcmp.ge.f32.partialorder %v170_v24, 0.0  ;;  %v713_v4 = vrot.slane %v711_v54, 5  ;;  %v727_v15 = vrot.slane %v725_v29, 5 }
  0x40   : > { %v949_v28 = vshll.u32 %v2996_v48, 16  ;;  %v963_v14 = vshll.u32 %v2998_v1, 16  ;;  %v2984_v7 = vpack.c.bf16 %v366_v6, %v366_v6  ;;  %v2986_v53 = vpack.c.bf16 %v368_v62, %v368_v62 }
  0x41   : > { %v312_v33 = vmul.f32 0.2, %v168_v39  ;;  %v314_v61 = vmul.f32 0.2, %v170_v24  ;;  %v714_v23 = vsel %vm3618_vm12, %v3484_v31, %v713_v4  ;;  %v3628_v52 = vsel %vm3618_vm12, %v3491_v37, %v727_v15 }
  0x42   : > { %4473 = vst [vmem:[#allocation6_spill] sm:$0xff] %v3628_v52  ;;  %v951_v41 = vrot.slane %v949_v28, 5  ;;  %v965_v10 = vrot.slane %v963_v14, 5  ;;  %v2787_v29 = vcombine.low %v714_v23, %v3628_v52  ;;  %v739_v25 = vshll.u32 %v2984_v7, 16 }
  0x43   : > { %v753_v48 = vshll.u32 %v2986_v53, 16  ;;  %v384_v1 = vsel %vm240_vm13, %v168_v39, %v312_v33  ;;  %v386_v37 = vsel %vm242_vm14, %v170_v24, %v314_v61  ;;  %vm226_vm15 = vcmp.ge.f32.partialorder %v154_v36, 0.0  ;;  %v172_v53 = vld [vmem:[%s3415_s30 + $0xd8] sm:$0x1] }
  0x44   : > { %v952_v54 = vsel %vm3618_vm12, %v3469_v58, %v951_v41  ;;  %v3640_v31 = vsel %vm3618_vm12, %v3475_v63, %v965_v10  ;;  %v3000_v6 = vpack.c.bf16 %v384_v1, %v384_v1  ;;  %3177 = vmatprep.mubr.msk.bf16.mxu0 %vm492_vm1, %v2787_v29  ;;  %v741_v39 = vrot.slane %v739_v25, 5  ;;  %v174_v10 = vld [vmem:[%s3415_s30 + $0xe8] sm:$0x1] }
  0x45   : > { %4474 = vst [vmem:[#allocation7_spill] sm:$0xff] %v3640_v31  ;;  %v2812_v62 = vcombine.low %v952_v54, %v3640_v31  ;;  %v755_v4 = vrot.slane %v753_v48, 5  ;;  %v3002_v15 = vpack.c.bf16 %v386_v37, %v386_v37  ;;  %vm228_vm2 = vcmp.ge.f32.partialorder %v156_v47, 0.0  ;;  %v158_v54 = vld [vmem:[%s3415_s30 + $0x68] sm:$0x1] }
  0x46   : > { %v977_v28 = vshll.u32 %v3000_v6, 16  ;;  %v298_v58 = vmul.f32 0.2, %v154_v36  ;;  %v3649_v63 = vsel %vm3618_vm12, %v3495_v40, %v741_v39  ;;  %v300_v7 = vmul.f32 0.2, %v156_v47 }
  0x47   : > { %3187 = vmatprep.mubr.msk.bf16.mxu1 %vm492_vm1, %v2812_v62  ;;  %4475 = vst [vmem:[#allocation8_spill] sm:$0xff] %v3649_v63  ;;  %v3654_v24 = vsel %vm3618_vm12, %v3546_v30, %v755_v4  ;;  %v991_v14 = vshll.u32 %v3002_v15, 16  ;;  %v764_v41 = vor.u32 %v3558_v44, %v3556_v43  ;;  %v778_v30 = vor.u32 %v3569_v57, %v3567_v56  ;;  %v160_v57 = vld [vmem:[%s3415_s30 + $0x78] sm:$0x1] }
  0x48   : > { %4476 = vst [vmem:[#allocation9_spill] sm:$0xff] %v3654_v24  ;;  %v2788_v33 = vcombine.low %v3649_v63, %v3654_v24  ;;  %v979_v61 = vrot.slane %v977_v28, 5  ;;  %v370_v23 = vsel %vm226_vm15, %v154_v36, %v298_v58  ;;  %v372_v29 = vsel %vm228_vm2, %v156_v47, %v300_v7  ;;  %v176_v58 = vld [vmem:[%s3415_s30 + $0xf8] sm:$0x1] }
  0x49   : > { %v993_v40 = vrot.slane %v991_v14, 5  ;;  %v2988_v25 = vpack.c.bf16 %v370_v23, %v370_v23  ;;  %v2990_v1 = vpack.c.bf16 %v372_v29, %v372_v29  ;;  %v765_v36 = vrot.slane %v764_v41, 4  ;;  %v178_v23 = vld [vmem:[%s3415_s30 + $0x108] sm:$0x1]  ;;  %v200_v31 = vld [vmem:[%s3415_s30 + $0x1b8] sm:$0x1] }
  0x4a   : > { %3178 = vmatmul.mubr.msk.bf16.vlgmr.msra.gmra.mxu0 %vm492_vm1, %v2788_v33  ;;  %v3668_v48 = vsel %vm3618_vm12, %v3477_v0, %v979_v61  ;;  %vm244_vm3 = vcmp.ge.f32.partialorder %v172_v53, 0.0  ;;  %v779_v56 = vrot.slane %v778_v30, 4  ;;  %vm246_vm4 = vcmp.ge.f32.partialorder %v174_v10, 0.0 }
  0x4b   : > { %4477 = vst [vmem:[#allocation10_spill] sm:$0xff] %v3668_v48  ;;  %v3674_v43 = vsel %vm3618_vm12, %v3524_v2, %v993_v40  ;;  %3196 = vmatpush3.bf16.msra.mxu0 %v3425_v12  ;;  %v767_v44 = vshll.u32 %v2988_v25, 16  ;;  %v781_v0 = vshll.u32 %v2990_v1, 16  ;;  %v316_v37 = vmul.f32 0.2, %v172_v53 }
  0x4c   : > { %4478 = vst [vmem:[#allocation11_spill] sm:$0xff] %v3674_v43  ;;  %v2813_v47 = vcombine.low %v3668_v48, %v3674_v43  ;;  %v318_v6 = vmul.f32 0.2, %v174_v10  ;;  %3321 = vmatprep.subr.msk.bf16.mxu0 %vm505_vm0, %v3405_v8  ;;  %v1002_v2 = vor.u32 %v3531_v19, %v3527_v3  ;;  %v1016_v12 = vor.u32 %v3538_v22, %v3536_v21  ;;  %v211_v43 = vld [vmem:[%s3415_s30 + $0x210] sm:$0xff]  ;;  %v202_v48 = vld [vmem:[%s3415_s30 + $0x1c8] sm:$0x1] }
  0x4d   : > { %v769_v62 = vrot.slane %v767_v44, 5  ;;  %vm230_vm5 = vcmp.ge.f32.partialorder %v158_v54, 0.0  ;;  %v783_v39 = vrot.slane %v781_v0, 5  ;;  %v388_v4 = vsel %vm244_vm3, %v172_v53, %v316_v37 }
  0x4e   : > { %3188 = vmatmul.mubr.msk.bf16.vlgmr.msra.gmra.mxu1 %vm492_vm1, %v2813_v47  ;;  %v390_v15 = vsel %vm246_vm4, %v174_v10, %v318_v6  ;;  %vm232_vm6 = vcmp.ge.f32.partialorder %v160_v57, 0.0  ;;  %v3004_v28 = vpack.c.bf16 %v388_v4, %v388_v4  ;;  %v1003_v19 = vrot.slane %v1002_v2, 4 }
  0x4f   : > { %3206 = vmatpush3.bf16.msra.mxu1 %v3432_v16  ;;  %v3691_v8 = vsel %vm3618_vm12, %v765_v36, %v769_v62  ;;  %v3006_v3 = vpack.c.bf16 %v390_v15, %v390_v15  ;;  %v3696_v21 = vsel %vm3618_vm12, %v779_v56, %v783_v39  ;;  %v1017_v14 = vrot.slane %v1016_v12, 4  ;;  %v183_v12 = vld [vmem:[%s3415_s30 + $0x130] sm:$0xff] }
  0x50   : > { %4479 = vst [vmem:[#allocation12_spill] sm:$0xff] %v3691_v8  ;;  %4480 = vst [vmem:[#allocation13_spill] sm:$0xff] %v3696_v21  ;;  %v302_v7 = vmul.f32 0.2, %v158_v54  ;;  %3322 = vmatprep.subr.msk.bf16.mxu1 %vm505_vm0, %v3410_v9  ;;  %v2789_v16 = vcombine.low %v3691_v8, %v3696_v21  ;;  %v1005_v53 = vshll.u32 %v3004_v28, 16  ;;  %v792_v10 = vor.u32 %v3606_v60, %v3604_v59  ;;  %v199_v28 = vld [vmem:[%s3415_s30 + $0x1b0] sm:$0xff] }
  0x51   : > { %v1019_v33 = vshll.u32 %v3006_v3, 16  ;;  %v304_v61 = vmul.f32 0.2, %v160_v57  ;;  %v806_v40 = vor.u32 %v3610_v13, %v3608_v5  ;;  %vm248_vm7 = vcmp.ge.f32.partialorder %v176_v58, 0.0 }
  0x52   : > { %v374_v41 = vsel %vm230_vm5, %v158_v54, %v302_v7  ;;  %3181 = vmatprep.mubr.msk.bf16.mxu0 %vm492_vm1, %v2789_v16  ;;  %v1007_v9 = vrot.slane %v1005_v53, 5  ;;  %v793_v36 = vrot.slane %v792_v10, 4  ;;  %vm250_vm8 = vcmp.ge.f32.partialorder %v178_v23, 0.0  ;;  %v181_v54 = vld [vmem:[%s3415_s30 + $0x120] sm:$0xff] }
  0x53   : > { %v1021_v29 = vrot.slane %v1019_v33, 5  ;;  %v376_v25 = vsel %vm232_vm6, %v160_v57, %v304_v61  ;;  %v2992_v30 = vpack.c.bf16 %v374_v41, %v374_v41  ;;  %v807_v44 = vrot.slane %v806_v40, 4  ;;  %v195_v57 = vld [vmem:[%s3415_s30 + $0x190] sm:$0xff] }
  0x54   : > { %v2994_v1 = vpack.c.bf16 %v376_v25, %v376_v25  ;;  %v3714_v59 = vsel %vm3618_vm12, %v1003_v19, %v1007_v9  ;;  %v320_v13 = vmul.f32 0.2, %v176_v58  ;;  %v322_v0 = vmul.f32 0.2, %v178_v23 }
  0x55   : > { %4481 = vst [vmem:[#allocation14_spill] sm:$0xff] %v3714_v59  ;;  %v3718_v60 = vsel %vm3618_vm12, %v1017_v14, %v1021_v29  ;;  %v795_v5 = vshll.u32 %v2992_v30, 16  ;;  %v1030_v62 = vor.u32 %v3595_v35, %v3593_v34  ;;  %v1044_v2 = vor.u32 %v3601_v46, %v3599_v42  ;;  %v201_v34 = vld [vmem:[%s3415_s30 + $0x1c0] sm:$0xff] }
  0x56   : > { %4482 = vst [vmem:[#allocation15_spill] sm:$0xff] %v3718_v60  ;;  %v2814_v56 = vcombine.low %v3714_v59, %v3718_v60  ;;  %v809_v47 = vshll.u32 %v2994_v1, 16  ;;  %v392_v6 = vsel %vm248_vm7, %v176_v58, %v320_v13  ;;  %v394_v4 = vsel %vm250_vm8, %v178_v23, %v322_v0 }
  0x57   : > { %v797_v37 = vrot.slane %v795_v5, 5  ;;  %v3008_v15 = vpack.c.bf16 %v392_v6, %v392_v6  ;;  %vm253_vm9 = vcmp.ge.f32.partialorder %v181_v54, 0.0  ;;  %v3010_v19 = vpack.c.bf16 %v394_v4, %v394_v4  ;;  %v203_v4 = vld [vmem:[%s3415_s30 + $0x1d0] sm:$0xff] }
  0x58   : > { %3191 = vmatprep.mubr.msk.bf16.mxu1 %vm492_vm1, %v2814_v56  ;;  %v811_v39 = vrot.slane %v809_v47, 5  ;;  %v1031_v58 = vrot.slane %v1030_v62, 4  ;;  %v1045_v14 = vrot.slane %v1044_v2, 4  ;;  %vm255_vm10 = vcmp.ge.f32.partialorder %v183_v12, 0.0  ;;  %v187_v56 = vld [vmem:[%s3415_s30 + $0x150] sm:$0xff] }
  0x59   : > { %v3736_v3 = vsel %vm3618_vm12, %v793_v36, %v797_v37  ;;  %v1033_v42 = vshll.u32 %v3008_v15, 16  ;;  %v325_v46 = vmul.f32 0.2, %v181_v54  ;;  %v1047_v16 = vshll.u32 %v3010_v19, 16  ;;  %v205_v15 = vld [vmem:[%s3415_s30 + $0x1e0] sm:$0xff] }
  0x5a   : > { %4483 = vst [vmem:[#allocation16_spill] sm:$0xff] %v3736_v3  ;;  %v3741_v35 = vsel %vm3618_vm12, %v807_v44, %v811_v39  ;;  %v327_v53 = vmul.f32 0.2, %v183_v12  ;;  %vm271_vm11 = vcmp.ge.f32.partialorder %v199_v28, 0.0  ;;  %vm273_vm13 = vcmp.ge.f32.partialorder %v201_v34, 0.0 }
  0x5b   : > { %4484 = vst [vmem:[#allocation17_spill] sm:$0xff] %v3741_v35  ;;  %v2790_v7 = vcombine.low %v3736_v3, %v3741_v35  ;;  %v1035_v33 = vrot.slane %v1033_v42, 5  ;;  %v397_v61 = vsel %vm253_vm9, %v181_v54, %v325_v46  ;;  %v343_v23 = vmul.f32 0.2, %v199_v28  ;;  %v185_v54 = vld [vmem:[%s3415_s30 + $0x140] sm:$0xff] }
  0x5c   : > { %v1049_v41 = vrot.slane %v1047_v16, 5  ;;  %v3747_v10 = vsel %vm255_vm10, %v183_v12, %v327_v53  ;;  %v3019_v40 = vpack.c.bf16 %v397_v61, %v397_v61  ;;  %v345_v9 = vmul.f32 0.2, %v201_v34  ;;  %v189_v46 = vld [vmem:[%s3415_s30 + $0x160] sm:$0xff] }
  0x5d   : > { %3182 = vmatmul.mubr.msk.bf16.gmra.mxu0 %vm492_vm1, %v2790_v7  ;;  %4485 = vst [vmem:[#allocation18_spill] sm:$0xff] %v3747_v10  ;;  %v3751_v29 = vsel %vm3618_vm12, %v1031_v58, %v1035_v33  ;;  %v3011_v25 = vpack.c.bf16 %v3747_v10, %v397_v61  ;;  %v3021_v30 = vpack.c.bf16 %v3747_v10, %v3747_v10  ;;  %vm257_vm14 = vcmp.ge.f32.partialorder %v185_v54, 0.0 }
  0x5e   : > { %4486 = vst [vmem:[#allocation19_spill] sm:$0xff] %v3751_v29  ;;  %v415_v1 = vsel %vm271_vm11, %v199_v28, %v343_v23  ;;  %v3758_v36 = vsel %vm3618_vm12, %v1045_v14, %v1049_v41  ;;  %v1398_v44 = vshrl.u32 %v3019_v40, 16  ;;  %v1401_v5 = vshll.u32 %v3019_v40, 16  ;;  %v191_v41 = vld [vmem:[%s3415_s30 + $0x170] sm:$0xff] }
  0x5f   : > { %4487 = vst [vmem:[#allocation20_spill] sm:$0xff] %v3758_v36  ;;  %v3760_v13 = vsel %vm273_vm13, %v201_v34, %v345_v9  ;;  %v2815_v47 = vcombine.low %v3751_v29, %v3758_v36  ;;  %3197 = vmatprep.mubr.msk.bf16.mxu0 %vm492_vm1, %v3011_v25  ;;  %v1412_v0 = vshrl.u32 %v3021_v30, 16  ;;  %v1415_v37 = vshll.u32 %v3021_v30, 16 }
  0x60   : > { %4488 = vst [vmem:[#allocation21_spill] sm:$0xff] %v3760_v13  ;;  %v3015_v6 = vpack.c.bf16 %v3760_v13, %v415_v1  ;;  %v3768_v62 = vrot.slane %v1398_v44, 4  ;;  %v3770_v2 = vrot.slane %v1401_v5, 5  ;;  %v3035_v12 = vpack.c.bf16 %v415_v1, %v415_v1 }
  0x61   : > { %v3037_v39 = vpack.c.bf16 %v3760_v13, %v3760_v13  ;;  %3192 = vmatmul.mubr.msk.bf16.gmra.mxu1 %vm492_vm1, %v2815_v47  ;;  %v3777_v28 = vrot.slane %v1412_v0, 4  ;;  %v3779_v19 = vrot.slane %v1415_v37, 5  ;;  %vm259_vm15 = vcmp.ge.f32.partialorder %v187_v56, 0.0  ;;  %v3811_v0 = vld [vmem:[%s4435_s1 + $0x10] sm:$0x3] }
  0x62   : > { %3207 = vmatprep.mubr.msk.bf16.mxu1 %vm492_vm1, %v3015_v6  ;;  %v1636_v58 = vshrl.u32 %v3035_v12, 16  ;;  %v1639_v14 = vshll.u32 %v3035_v12, 16  ;;  %v329_v7 = vmul.f32 0.2, %v185_v54  ;;  %v331_v16 = vmul.f32 0.2, %v187_v56 }
  0x63   : > { %v1650_v34 = vshrl.u32 %v3037_v39, 16  ;;  %v1653_v42 = vshll.u32 %v3037_v39, 16  ;;  %vm275_vm2 = vcmp.ge.f32.partialorder %v203_v4, 0.0  ;;  %vm277_vm3 = vcmp.ge.f32.partialorder %v205_v15, 0.0 }
  0x64   : > { %v3783_v53 = vrot.slane %v1636_v58, 4  ;;  %v3785_v33 = vrot.slane %v1639_v14, 5  ;;  %v3793_v40 = vsel %vm257_vm14, %v185_v54, %v329_v7  ;;  %v3796_v9 = vsel %vm259_vm15, %v187_v56, %v331_v16 }
  0x65   : > { %v3787_v61 = vrot.slane %v1650_v34, 4  ;;  %v3789_v23 = vrot.slane %v1653_v42, 5  ;;  %4489 = vst [vmem:[#allocation22_spill] sm:$0xff] %v3793_v40  ;;  %4490 = vst [vmem:[#allocation23_spill] sm:$0xff] %v3796_v9  ;;  %v347_v25 = vmul.f32 0.2, %v203_v4  ;;  %v3012_v1 = vpack.c.bf16 %v3796_v9, %v3793_v40 }
  0x66   : > { %v349_v30 = vmul.f32 0.2, %v205_v15  ;;  %v3023_v44 = vpack.c.bf16 %v3793_v40, %v3793_v40  ;;  %v3025_v5 = vpack.c.bf16 %v3796_v9, %v3796_v9  ;;  %vm261_vm4 = vcmp.ge.f32.partialorder %v189_v46, 0.0  ;;  %v207_v34 = vld [vmem:[%s3415_s30 + $0x1f0] sm:$0xff]  ;;  %v209_v42 = vld [vmem:[%s3415_s30 + $0x200] sm:$0xff] }
  0x67   : > { %v3804_v47 = vsel %vm275_vm2, %v203_v4, %v347_v25  ;;  %vm263_vm5 = vcmp.ge.f32.partialorder %v191_v41, 0.0  ;;  %v333_v56 = vmul.f32 0.2, %v189_v46  ;;  %3198 = vmatmul.mubr.msk.bf16.vlgmr.msra.gmra.mxu0 %vm492_vm1, %v3012_v1  ;;  %v335_v14 = vmul.f32 0.2, %v191_v41 }
  0x68   : > { %4491 = vst [vmem:[#allocation24_spill] sm:$0xff] %v3804_v47  ;;  %v3806_v54 = vsel %vm277_vm3, %v205_v15, %v349_v30  ;;  %v1426_v37 = vshrl.u32 %v3023_v44, 16  ;;  %v1429_v6 = vshll.u32 %v3023_v44, 16  ;;  %v1440_v12 = vshrl.u32 %v3025_v5, 16  ;;  %3216 = vmatpush3.bf16.msra.mxu0 %v3436_v17  ;;  %v3836_v17 = vld [vmem:[%s4435_s1 + $0x12] sm:$0x3] }
  0x69   : > { %4492 = vst [vmem:[#allocation25_spill] sm:$0xff] %v3806_v54  ;;  %v1443_v39 = vshll.u32 %v3025_v5, 16  ;;  %v3016_v4 = vpack.c.bf16 %v3806_v54, %v3804_v47  ;;  %v3039_v15 = vpack.c.bf16 %v3804_v47, %v3804_v47  ;;  %v3041_v58 = vpack.c.bf16 %v3806_v54, %v3806_v54  ;;  %3323 = vmatprep.subr.msk.bf16.mxu0 %vm505_vm0, %v3811_v0 }
  0x6a   : > { %v3823_v7 = vrot.slane %v1426_v37, 4  ;;  %v3825_v16 = vrot.slane %v1429_v6, 5  ;;  %v3827_v25 = vrot.slane %v1440_v12, 4  ;;  %v3841_v6 = vsel %vm261_vm4, %v189_v46, %v333_v56  ;;  %v213_v56 = vld [vmem:[%s3415_s30 + $0x220] sm:$0xff] }
  0x6b   : > { %v3829_v30 = vrot.slane %v1443_v39, 5  ;;  %3208 = vmatmul.mubr.msk.bf16.vlgmr.msra.gmra.mxu1 %vm492_vm1, %v3016_v4  ;;  %v1664_v1 = vshrl.u32 %v3039_v15, 16  ;;  %v1667_v44 = vshll.u32 %v3039_v15, 16  ;;  %v1678_v5 = vshrl.u32 %v3041_v58, 16  ;;  %4493 = vst [vmem:[#allocation26_spill] sm:$0xff] %v3841_v6  ;;  %v193_v39 = vld [vmem:[%s3415_s30 + $0x180] sm:$0xff] }
  0x6c   : > { %v1681_v37 = vshll.u32 %v3041_v58, 16  ;;  %3226 = vmatpush3.bf16.msra.mxu1 %v3440_v18  ;;  %v3844_v12 = vsel %vm263_vm5, %v191_v41, %v335_v14  ;;  %vm279_vm6 = vcmp.ge.f32.partialorder %v207_v34, 0.0  ;;  %vm281_vm7 = vcmp.ge.f32.partialorder %v209_v42, 0.0 }
  0x6d   : > { %4494 = vst [vmem:[#allocation27_spill] sm:$0xff] %v3844_v12  ;;  %v3848_v22 = vrot.slane %v1664_v1, 4  ;;  %v3850_v47 = vrot.slane %v1667_v44, 5  ;;  %v3852_v4 = vrot.slane %v1678_v5, 4  ;;  %3324 = vmatprep.subr.msk.bf16.mxu1 %vm505_vm0, %v3836_v17  ;;  %v3013_v18 = vpack.c.bf16 %v3844_v12, %v3841_v6 }
  0x6e   : > { %v3854_v15 = vrot.slane %v1681_v37, 5  ;;  %v3027_v46 = vpack.c.bf16 %v3841_v6, %v3841_v6  ;;  %v3029_v41 = vpack.c.bf16 %v3844_v12, %v3844_v12  ;;  %v351_v58 = vmul.f32 0.2, %v207_v34 }
  0x6f   : > { %v353_v14 = vmul.f32 0.2, %v209_v42  ;;  %vm265_vm8 = vcmp.ge.f32.partialorder %v193_v39, 0.0  ;;  %vm267_vm9 = vcmp.ge.f32.partialorder %v195_v57, 0.0  ;;  %3201 = vmatprep.mubr.msk.bf16.mxu0 %vm492_vm1, %v3013_v18  ;;  %v337_v12 = vmul.f32 0.2, %v193_v39 }
  0x70   : > { %v1454_v1 = vshrl.u32 %v3027_v46, 16  ;;  %v1457_v44 = vshll.u32 %v3027_v46, 16  ;;  %v1468_v5 = vshrl.u32 %v3029_v41, 16  ;;  %v1471_v37 = vshll.u32 %v3029_v41, 16 }
  0x71   : > { %v3868_v13 = vsel %vm279_vm6, %v207_v34, %v351_v58  ;;  %v3871_v36 = vsel %vm281_vm7, %v209_v42, %v353_v14  ;;  %v339_v59 = vmul.f32 0.2, %v195_v57  ;;  %v3892_v58 = vsel %vm265_vm8, %v193_v39, %v337_v12 }
  0x72   : > { %4495 = vst [vmem:[#allocation28_spill] sm:$0xff] %v3868_v13  ;;  %v3875_v9 = vrot.slane %v1454_v1, 4  ;;  %v3877_v6 = vrot.slane %v1457_v44, 5  ;;  %v3879_v40 = vrot.slane %v1468_v5, 4  ;;  %v3881_v18 = vrot.slane %v1471_v37, 5  ;;  %4496 = vst [vmem:[#allocation29_spill] sm:$0xff] %v3892_v58 }
  0x73   : > { %v3017_v46 = vpack.c.bf16 %v3871_v36, %v3868_v13  ;;  %v3043_v34 = vpack.c.bf16 %v3868_v13, %v3868_v13  ;;  %v3045_v42 = vpack.c.bf16 %v3871_v36, %v3871_v36  ;;  %v3895_v14 = vsel %vm267_vm9, %v195_v57, %v339_v59  ;;  %v182_v59 = vld [vmem:[%s3415_s30 + $0x128] sm:$0x1]  ;;  %v184_v57 = vld [vmem:[%s3415_s30 + $0x138] sm:$0x1] }
  0x74   : > { %4497 = vst [vmem:[#allocation30_spill] sm:$0xff] %v3895_v14  ;;  %vm283_vm10 = vcmp.ge.f32.partialorder %v211_v43, 0.0  ;;  %vm285_vm11 = vcmp.ge.f32.partialorder %v213_v56, 0.0  ;;  %v3014_v10 = vpack.c.bf16 %v3895_v14, %v3892_v58  ;;  %v3031_v41 = vpack.c.bf16 %v3892_v58, %v3892_v58 }
  0x75   : > { %3211 = vmatprep.mubr.msk.bf16.mxu1 %vm492_vm1, %v3017_v46  ;;  %v1692_v1 = vshrl.u32 %v3043_v34, 16  ;;  %v1695_v44 = vshll.u32 %v3043_v34, 16  ;;  %v1706_v5 = vshrl.u32 %v3045_v42, 16  ;;  %v1709_v37 = vshll.u32 %v3045_v42, 16 }
  0x76   : > { %v3033_v12 = vpack.c.bf16 %v3895_v14, %v3895_v14  ;;  %v355_v39 = vmul.f32 0.2, %v211_v43  ;;  %3202 = vmatmul.mubr.msk.bf16.gmra.mxu0 %vm492_vm1, %v3014_v10  ;;  %v1482_v42 = vshrl.u32 %v3031_v41, 16  ;;  %v1485_v35 = vshll.u32 %v3031_v41, 16 }
  0x77   : > { %v3906_v54 = vrot.slane %v1692_v1, 4  ;;  %v3908_v13 = vrot.slane %v1695_v44, 5  ;;  %v3910_v46 = vrot.slane %v1706_v5, 4  ;;  %v3912_v34 = vrot.slane %v1709_v37, 5 }
  0x78   : > { %v1496_v60 = vshrl.u32 %v3033_v12, 16  ;;  %v1499_v58 = vshll.u32 %v3033_v12, 16  ;;  %v357_v29 = vmul.f32 0.2, %v213_v56  ;;  %v3916_v14 = vsel %vm283_vm10, %v211_v43, %v355_v39 }
  0x79   : > { %vm254_vm13 = vcmp.ge.f32.partialorder %v182_v59, 0.0  ;;  %vm256_vm14 = vcmp.ge.f32.partialorder %v184_v57, 0.0  ;;  %v3918_v1 = vrot.slane %v1482_v42, 4  ;;  %v3920_v44 = vrot.slane %v1485_v35, 5 }
  0x7a   : > { %v3922_v5 = vrot.slane %v1496_v60, 4  ;;  %v3924_v37 = vrot.slane %v1499_v58, 5  ;;  %v3927_v10 = vsel %vm285_vm11, %v213_v56, %v357_v29  ;;  %v3047_v41 = vpack.c.bf16 %v3916_v14, %v3916_v14 }
  0x7b   : > { %4498 = vst [vmem:[#allocation31_spill] sm:$0xff] %v3927_v10  ;;  %v326_v12 = vmul.f32 0.2, %v182_v59  ;;  %v328_v43 = vmul.f32 0.2, %v184_v57  ;;  %v3018_v39 = vpack.c.bf16 %v3927_v10, %v3916_v14  ;;  %v3049_v35 = vpack.c.bf16 %v3927_v10, %v3927_v10 }
  0x7c   : > { %v1404_v60 = vor.u32 %v3770_v2, %v3768_v62  ;;  %v1418_v29 = vor.u32 %v3779_v19, %v3777_v28  ;;  %v1720_v56 = vshrl.u32 %v3047_v41, 16  ;;  %v1723_v58 = vshll.u32 %v3047_v41, 16  ;;  %v186_v41 = vld [vmem:[%s3415_s30 + $0x148] sm:$0x1] }
  0x7d   : > { %v398_v42 = vsel %vm254_vm13, %v182_v59, %v326_v12  ;;  %v400_v8 = vsel %vm256_vm14, %v184_v57, %v328_v43  ;;  %3212 = vmatmul.mubr.msk.bf16.gmra.mxu1 %vm492_vm1, %v3018_v39  ;;  %v1734_v24 = vshrl.u32 %v3049_v35, 16  ;;  %v1737_v21 = vshll.u32 %v3049_v35, 16  ;;  %v188_v43 = vld [vmem:[%s3415_s30 + $0x158] sm:$0x1] }
  0x7e   : > { %v3020_v3 = vpack.c.bf16 %v398_v42, %v398_v42  ;;  %v3022_v10 = vpack.c.bf16 %v400_v8, %v400_v8  ;;  %v3944_v62 = vrot.slane %v1720_v56, 4  ;;  %v3946_v2 = vrot.slane %v1723_v58, 5 }
  0x7f   : > { %v1405_v28 = vrot.slane %v1404_v60, 4  ;;  %v1419_v19 = vrot.slane %v1418_v29, 4  ;;  %v3949_v52 = vrot.slane %v1734_v24, 4  ;;  %v3951_v59 = vrot.slane %v1737_v21, 5 }
  0x80   : > { %v1407_v57 = vshll.u32 %v3020_v3, 16  ;;  %v1421_v12 = vshll.u32 %v3022_v10, 16  ;;  %vm272_vm15 = vcmp.ge.f32.partialorder %v200_v31, 0.0  ;;  %vm274_vm2 = vcmp.ge.f32.partialorder %v202_v48, 0.0 }
  0x81   : > { %v344_v8 = vmul.f32 0.2, %v200_v31  ;;  %v346_v39 = vmul.f32 0.2, %v202_v48  ;;  %v1642_v60 = vor.u32 %v3785_v33, %v3783_v53  ;;  %v1656_v24 = vor.u32 %v3789_v23, %v3787_v61 }
  0x82   : > { %v1409_v35 = vrot.slane %v1407_v57, 5  ;;  %v1423_v56 = vrot.slane %v1421_v12, 5  ;;  %vm258_vm3 = vcmp.ge.f32.partialorder %v186_v41, 0.0  ;;  %vm260_vm4 = vcmp.ge.f32.partialorder %v188_v43, 0.0  ;;  %v204_v57 = vld [vmem:[%s3415_s30 + $0x1d8] sm:$0x1] }
  0x83   : > { %v416_v29 = vsel %vm272_vm15, %v200_v31, %v344_v8  ;;  %v418_v21 = vsel %vm274_vm2, %v202_v48, %v346_v39  ;;  %v206_v12 = vld [vmem:[%s3415_s30 + $0x1e8] sm:$0x1]  ;;  %v1643_v33 = vrot.slane %v1642_v60, 4  ;;  %v1657_v63 = vrot.slane %v1656_v24, 4 }
  0x84   : > { %v1410_v3 = vsel %vm3618_vm12, %v1405_v28, %v1409_v35  ;;  %v3962_v10 = vsel %vm3618_vm12, %v1419_v19, %v1423_v56  ;;  %v3036_v58 = vpack.c.bf16 %v416_v29, %v416_v29  ;;  %v3038_v42 = vpack.c.bf16 %v418_v21, %v418_v21 }
  0x85   : > { %v2855_v53 = vcombine.low %v1410_v3, %v3962_v10  ;;  %v330_v61 = vmul.f32 0.2, %v186_v41  ;;  %v332_v23 = vmul.f32 0.2, %v188_v43  ;;  %v1432_v8 = vor.u32 %v3825_v16, %v3823_v7 }
  0x86   : > { %v1645_v31 = vshll.u32 %v3036_v58, 16  ;;  %v1659_v48 = vshll.u32 %v3038_v42, 16  ;;  %v1446_v19 = vor.u32 %v3829_v30, %v3827_v25  ;;  %vm276_vm5 = vcmp.ge.f32.partialorder %v204_v57, 0.0 }
  0x87   : > { %3217 = vmatprep.mubr.msk.bf16.mxu0 %vm492_vm1, %v2855_v53  ;;  %v402_v28 = vsel %vm258_vm3, %v186_v41, %v330_v61  ;;  %vm278_vm6 = vcmp.ge.f32.partialorder %v206_v12, 0.0  ;;  %v404_v56 = vsel %vm260_vm4, %v188_v43, %v332_v23  ;;  %v1433_v29 = vrot.slane %v1432_v8, 4 }
  0x88   : > { %v1647_v39 = vrot.slane %v1645_v31, 5  ;;  %v1661_v35 = vrot.slane %v1659_v48, 5  ;;  %v3024_v60 = vpack.c.bf16 %v402_v28, %v402_v28  ;;  %v3026_v24 = vpack.c.bf16 %v404_v56, %v404_v56  ;;  %v192_v48 = vld [vmem:[%s3415_s30 + $0x178] sm:$0x1] }
  0x89   : > { %v1447_v21 = vrot.slane %v1446_v19, 4  ;;  %v348_v7 = vmul.f32 0.2, %v204_v57  ;;  %v350_v30 = vmul.f32 0.2, %v206_v12  ;;  %v1670_v42 = vor.u32 %v3850_v47, %v3848_v22 }
  0x8a   : > { %v1648_v16 = vsel %vm3618_vm12, %v1643_v33, %v1647_v39  ;;  %v3978_v41 = vsel %vm3618_vm12, %v1657_v63, %v1661_v35  ;;  %v1435_v25 = vshll.u32 %v3024_v60, 16  ;;  %v1449_v58 = vshll.u32 %v3026_v24, 16  ;;  %v190_v63 = vld [vmem:[%s3415_s30 + $0x168] sm:$0x1] }
  0x8b   : > { %v2880_v3 = vcombine.low %v1648_v16, %v3978_v41  ;;  %v420_v43 = vsel %vm276_vm5, %v204_v57, %v348_v7  ;;  %v422_v61 = vsel %vm278_vm6, %v206_v12, %v350_v30  ;;  %v1684_v33 = vor.u32 %v3854_v15, %v3852_v4  ;;  %v208_v15 = vld [vmem:[%s3415_s30 + $0x1f8] sm:$0x1]  ;;  %v210_v35 = vld [vmem:[%s3415_s30 + $0x208] sm:$0x1]  ;;  %v4013_v7 = vld [vmem:[%s4435_s1 + $0x14] sm:$0x3] }
  0x8c   : > { %v1437_v53 = vrot.slane %v1435_v25, 5  ;;  %v3040_v31 = vpack.c.bf16 %v420_v43, %v420_v43  ;;  %v1451_v23 = vrot.slane %v1449_v58, 5  ;;  %v3042_v8 = vpack.c.bf16 %v422_v61, %v422_v61  ;;  %v196_v58 = vld [vmem:[%s3415_s30 + $0x198] sm:$0x1] }
  0x8d   : > { %3227 = vmatprep.mubr.msk.bf16.mxu1 %vm492_vm1, %v2880_v3  ;;  %v1671_v28 = vrot.slane %v1670_v42, 4  ;;  %v1870_v57 = vsel %vm505_vm0, %v3811_v0, 0  ;;  %v1685_v12 = vrot.slane %v1684_v33, 4  ;;  %v1966_v4 = vsel %vm505_vm0, %v3836_v17, 0  ;;  %v194_v3 = vld [vmem:[%s3415_s30 + $0x188] sm:$0x1] }
  0x8e   : > { %v3994_v22 = vsel %vm3618_vm12, %v1433_v29, %v1437_v53  ;;  %v1673_v47 = vshll.u32 %v3040_v31, 16  ;;  %v4001_v19 = vsel %vm3618_vm12, %v1447_v21, %v1451_v23  ;;  %v1687_v39 = vshll.u32 %v3042_v8, 16  ;;  %v4037_v23 = vld [vmem:[%s4435_s1 + $0x16] sm:$0x3] }
  0x8f   : > { %vm262_vm7 = vcmp.ge.f32.partialorder %v190_v63, 0.0  ;;  %vm264_vm8 = vcmp.ge.f32.partialorder %v192_v48, 0.0  ;;  %v2856_v0 = vcombine.low %v3994_v22, %v4001_v19  ;;  %v334_v60 = vmul.f32 0.2, %v190_v63 }
  0x90   : > { %v1675_v56 = vrot.slane %v1673_v47, 5  ;;  %v336_v24 = vmul.f32 0.2, %v192_v48  ;;  %v1689_v29 = vrot.slane %v1687_v39, 5  ;;  %v1460_v17 = vor.u32 %v3877_v6, %v3875_v9 }
  0x91   : > { %v1474_v21 = vor.u32 %v3881_v18, %v3879_v40  ;;  %vm280_vm9 = vcmp.ge.f32.partialorder %v208_v15, 0.0  ;;  %3218 = vmatmul.mubr.msk.bf16.vlgmr.msra.gmra.mxu0 %vm492_vm1, %v2856_v0  ;;  %v406_v25 = vsel %vm262_vm7, %v190_v63, %v334_v60  ;;  %vm282_vm10 = vcmp.ge.f32.partialorder %v210_v35, 0.0  ;;  %v214_v60 = vld [vmem:[%s3415_s30 + $0x228] sm:$0x1] }
  0x92   : > { %v4018_v16 = vsel %vm3618_vm12, %v1671_v28, %v1675_v56  ;;  %v408_v30 = vsel %vm264_vm8, %v192_v48, %v336_v24  ;;  %v4022_v9 = vsel %vm3618_vm12, %v1685_v12, %v1689_v29  ;;  %3236 = vmatpush3.bf16.msra.mxu0 %v1870_v57  ;;  %v3028_v40 = vpack.c.bf16 %v406_v25, %v406_v25  ;;  %v212_v56 = vld [vmem:[%s3415_s30 + $0x218] sm:$0x1] }
  0x93   : > { %v3030_v6 = vpack.c.bf16 %v408_v30, %v408_v30  ;;  %v1461_v18 = vrot.slane %v1460_v17, 4  ;;  %v2881_v43 = vcombine.low %v4018_v16, %v4022_v9  ;;  %v1475_v42 = vrot.slane %v1474_v21, 4  ;;  %3325 = vmatprep.subr.msk.bf16.mxu0 %vm505_vm0, %v4013_v7 }
  0x94   : > { %v352_v53 = vmul.f32 0.2, %v208_v15  ;;  %v354_v61 = vmul.f32 0.2, %v210_v35  ;;  %v1463_v31 = vshll.u32 %v3028_v40, 16  ;;  %v1698_v63 = vor.u32 %v3908_v13, %v3906_v54 }
  0x95   : > { %v1477_v33 = vshll.u32 %v3030_v6, 16  ;;  %v1712_v48 = vor.u32 %v3912_v34, %v3910_v46  ;;  %3228 = vmatmul.mubr.msk.bf16.vlgmr.msra.gmra.mxu1 %vm492_vm1, %v2881_v43  ;;  %vm266_vm11 = vcmp.ge.f32.partialorder %v194_v3, 0.0  ;;  %vm268_vm13 = vcmp.ge.f32.partialorder %v196_v58, 0.0 }
  0x96   : > { %v424_v8 = vsel %vm280_vm9, %v208_v15, %v352_v53  ;;  %v426_v28 = vsel %vm282_vm10, %v210_v35, %v354_v61  ;;  %3246 = vmatpush3.bf16.msra.mxu1 %v1966_v4  ;;  %v1465_v13 = vrot.slane %v1463_v31, 5  ;;  %v1699_v34 = vrot.slane %v1698_v63, 4 }
  0x97   : > { %v1479_v54 = vrot.slane %v1477_v33, 5  ;;  %v3044_v57 = vpack.c.bf16 %v424_v8, %v424_v8  ;;  %v3046_v46 = vpack.c.bf16 %v426_v28, %v426_v28  ;;  %v1713_v47 = vrot.slane %v1712_v48, 4  ;;  %3326 = vmatprep.subr.msk.bf16.mxu1 %vm505_vm0, %v4037_v23 }
  0x98   : > { %v338_v12 = vmul.f32 0.2, %v194_v3  ;;  %v340_v39 = vmul.f32 0.2, %v196_v58  ;;  %v4046_v15 = vsel %vm3618_vm12, %v1461_v18, %v1465_v13  ;;  %v1488_v18 = vor.u32 %v3920_v44, %v3918_v1 }
  0x99   : > { %v4050_v35 = vsel %vm3618_vm12, %v1475_v42, %v1479_v54  ;;  %v1701_v4 = vshll.u32 %v3044_v57, 16  ;;  %v1715_v0 = vshll.u32 %v3046_v46, 16  ;;  %v2950_v29 = vcombine.low %v4001_v19, %v4046_v15  ;;  %v161_v46 = vld [vmem:[%s3415_s30 + $0x80] sm:$0xff] }
  0x9a   : > { %v2857_v24 = vcombine.low %v4046_v15, %v4050_v35  ;;  %v410_v17 = vsel %vm266_vm11, %v194_v3, %v338_v12  ;;  %v412_v21 = vsel %vm268_vm13, %v196_v58, %v340_v39  ;;  %v1502_v43 = vor.u32 %v3924_v37, %v3922_v5 }
  0x9b   : > { %v1703_v25 = vrot.slane %v1701_v4, 5  ;;  %v1717_v30 = vrot.slane %v1715_v0, 5  ;;  %v3032_v40 = vpack.c.bf16 %v410_v17, %v410_v17  ;;  %v3034_v6 = vpack.c.bf16 %v412_v21, %v412_v21  ;;  %v179_v21 = vld [vmem:[%s3415_s30 + $0x110] sm:$0xff] }
  0x9c   : > { %3221 = vmatprep.mubr.msk.bf16.mxu0 %vm492_vm1, %v2857_v24  ;;  %vm284_vm14 = vcmp.ge.f32.partialorder %v212_v56, 0.0  ;;  %vm286_vm15 = vcmp.ge.f32.partialorder %v214_v60, 0.0  ;;  %v1489_v44 = vrot.slane %v1488_v18, 4  ;;  %v1503_v5 = vrot.slane %v1502_v43, 4  ;;  %v2928_v18 = vld [vmem:[%s4435_s1 + $0x18] sm:$0x3] }
  0x9d   : > { %v4067_v42 = vsel %vm3618_vm12, %v1699_v34, %v1703_v25  ;;  %v4071_v3 = vsel %vm3618_vm12, %v1713_v47, %v1717_v30  ;;  %v1491_v58 = vshll.u32 %v3032_v40, 16  ;;  %v1505_v53 = vshll.u32 %v3034_v6, 16  ;;  %v162_v25 = vld [vmem:[%s3415_s30 + $0x88] sm:$0x1] }
  0x9e   : > { %v2882_v61 = vcombine.low %v4067_v42, %v4071_v3  ;;  %v2961_v1 = vcombine.low %v4022_v9, %v4067_v42  ;;  %v356_v33 = vmul.f32 0.2, %v212_v56  ;;  %v358_v63 = vmul.f32 0.2, %v214_v60 }
  0x9f   : > { %v1493_v37 = vrot.slane %v1491_v58, 5  ;;  %v1507_v31 = vrot.slane %v1505_v53, 5  ;;  %v1726_v48 = vor.u32 %v3946_v2, %v3944_v62  ;;  %v1740_v8 = vor.u32 %v3951_v59, %v3949_v52  ;;  %v180_v53 = vld [vmem:[%s3415_s30 + $0x118] sm:$0x1] }
  0xa0   : > { %3231 = vmatprep.mubr.msk.bf16.mxu1 %vm492_vm1, %v2882_v61  ;;  %v428_v54 = vsel %vm284_vm14, %v212_v56, %v356_v33  ;;  %v430_v57 = vsel %vm286_vm15, %v214_v60, %v358_v63  ;;  %v305_v39 = vmul.f32 0.2, %v161_v46  ;;  %v4499_v4 = vpack.c.bf16 %v3462_v51, %v3459_v45  ;;  %v4504_v33 = vld [vmem:[#allocation5_spill] sm:$0xff] }
  0xa1   : > { %v4084_v28 = vsel %vm3618_vm12, %v1489_v44, %v1493_v37  ;;  %v4088_v13 = vsel %vm3618_vm12, %v1503_v5, %v1507_v31  ;;  %v3048_v62 = vpack.c.bf16 %v428_v54, %v428_v54  ;;  %v3050_v52 = vpack.c.bf16 %v430_v57, %v430_v57  ;;  %v4502_v5 = vld [vmem:[#allocation8_spill] sm:$0xff]  ;;  %v4503_v37 = vld [vmem:[#allocation6_spill] sm:$0xff] }
  0xa2   : > { %v2858_v34 = vcombine.low %v4084_v28, %v4088_v13  ;;  %v1727_v2 = vrot.slane %v1726_v48, 4  ;;  %v1741_v47 = vrot.slane %v1740_v8, 4  ;;  %vm233_vm2 = vcmp.ge.f32.partialorder %v161_v46, 0.0 }
  0xa3   : > { %v1729_v59 = vshll.u32 %v3048_v62, 16  ;;  %v1743_v12 = vshll.u32 %v3050_v52, 16  ;;  %v377_v17 = vsel %vm233_vm2, %v161_v46, %v305_v39  ;;  %v3053_v45 = vpack.c.bf16 %v3579_v11, %v3549_v32  ;;  %v2937_v46 = vld [vmem:[%s4435_s1 + $0x1a] sm:$0x3]  ;;  %v4508_v39 = vld [vmem:[#allocation4_spill] sm:$0xff] }
  0xa4   : > { %3222 = vmatmul.mubr.msk.bf16.gmra.mxu0 %vm492_vm1, %v2858_v34  ;;  %v3059_v51 = vpack.c.bf16 %v377_v17, %v377_v17  ;;  %v2078_v40 = vsel %vm505_vm0, %v4013_v7, 0  ;;  %v323_v6 = vmul.f32 0.2, %v179_v21  ;;  %v306_v43 = vmul.f32 0.2, %v162_v25  ;;  %v4506_v34 = vld [vmem:[#allocation2_spill] sm:$0xff] }
  0xa5   : > { %3237 = vmatprep.mubr.msk.bf16.mxu0 %vm492_vm1, %v4499_v4  ;;  %v1731_v0 = vrot.slane %v1729_v59, 5  ;;  %v1745_v56 = vrot.slane %v1743_v12, 5  ;;  %v4500_v58 = vpack.c.bf16 %v3447_v27, %v3445_v26  ;;  %v4501_v32 = vpack.c.bf16 %v3534_v20, %v3493_v38 }
  0xa6   : > { %vm251_vm3 = vcmp.ge.f32.partialorder %v179_v21, 0.0  ;;  %vm234_vm4 = vcmp.ge.f32.partialorder %v162_v25, 0.0  ;;  %v2045_v11 = vshrl.u32 %v3059_v51, 16  ;;  %v2048_v7 = vshll.u32 %v3059_v51, 16  ;;  %v4512_v51 = vld [vmem:[#allocation13_spill] sm:$0xff] }
  0xa7   : > { %v4102_v60 = vsel %vm3618_vm12, %v1727_v2, %v1731_v0  ;;  %v4106_v24 = vsel %vm3618_vm12, %v1741_v47, %v1745_v56  ;;  %v395_v61 = vsel %vm251_vm3, %v179_v21, %v323_v6  ;;  %v378_v44 = vsel %vm234_vm4, %v162_v25, %v306_v43  ;;  %v4510_v21 = vld [vmem:[#allocation7_spill] sm:$0xff] }
  0xa8   : > { %v2883_v30 = vcombine.low %v4102_v60, %v4106_v24  ;;  %v3069_v26 = vpack.c.bf16 %v3916_v14, %v3871_v36  ;;  %v2190_v27 = vsel %vm505_vm0, %v4037_v23, 0  ;;  %v3057_v38 = vpack.c.bf16 %v3562_v50, %v3516_v55  ;;  %v4505_v50 = vld [vmem:[#allocation3_spill] sm:$0xff] }
  0xa9   : > { %v3061_v20 = vpack.c.bf16 %v395_v61, %v395_v61  ;;  %v2909_v31 = vcombine.low %v4503_v37, %v4502_v5  ;;  %v3054_v63 = vpack.c.bf16 %v377_v17, %v4504_v33  ;;  %v2047_v48 = vrot.slane %v2045_v11, 4  ;;  %v4509_v17 = vld [vmem:[#allocation10_spill] sm:$0xff]  ;;  %v4518_v33 = vld [vmem:[#allocation17_spill] sm:$0xff] }
  0xaa   : > { %3232 = vmatmul.mubr.msk.bf16.gmra.mxu1 %vm492_vm1, %v2883_v30  ;;  %v324_v8 = vmul.f32 0.2, %v180_v53  ;;  %v2949_v54 = vcombine.low %v3962_v10, %v3994_v22  ;;  %v2050_v57 = vrot.slane %v2048_v7, 5  ;;  %v3060_v23 = vpack.c.bf16 %v378_v44, %v378_v44  ;;  %v2948_v7 = vld [vmem:[%s4435_s1 + $0x1c] sm:$0x3] }
  0xab   : > { %3247 = vmatprep.mubr.msk.bf16.mxu1 %vm492_vm1, %v4500_v58  ;;  %vm252_vm5 = vcmp.ge.f32.partialorder %v180_v53, 0.0  ;;  %v2960_v55 = vcombine.low %v3978_v41, %v4018_v16  ;;  %v4507_v62 = vpack.c.bf16 %v4505_v50, %v4506_v34  ;;  %v2157_v52 = vshrl.u32 %v3061_v20, 16  ;;  %v197_v50 = vld [vmem:[%s3415_s30 + $0x1a0] sm:$0xff]  ;;  %v4521_v34 = vld [vmem:[#allocation11_spill] sm:$0xff] }
  0xac   : > { %3238 = vmatmul.mubr.msk.bf16.vlgmr.msra.gmra.mxu0 %vm492_vm1, %v4501_v32  ;;  %v2160_v2 = vshll.u32 %v3061_v20, 16  ;;  %v396_v59 = vsel %vm252_vm5, %v180_v53, %v324_v8  ;;  %v2051_v47 = vor.u32 %v2050_v57, %v2047_v48  ;;  %v2054_v12 = vshll.u32 %v3060_v23, 16  ;;  %v4513_v53 = vld [vmem:[#allocation9_spill] sm:$0xff]  ;;  %v4519_v48 = vld [vmem:[#allocation18_spill] sm:$0xff] }
  0xad   : > { %3256 = vmatpush3.bf16.msra.mxu0 %v2078_v40  ;;  %3241 = vmatprep.mubr.msk.bf16.mxu0 %vm492_vm1, %v3053_v45  ;;  %v3058_v4 = vpack.c.bf16 %v395_v61, %v4508_v39  ;;  %v2159_v0 = vrot.slane %v2157_v52, 4  ;;  %v2920_v25 = vcombine.low %v4510_v21, %v4509_v17  ;;  %v3062_v30 = vpack.c.bf16 %v396_v59, %v396_v59  ;;  %v4511_v45 = vld [vmem:[#allocation16_spill] sm:$0xff]  ;;  %v4520_v8 = vld [vmem:[#allocation22_spill] sm:$0xff]  ;;  %v2959_v23 = vld [vmem:[%s4435_s1 + $0x1e] sm:$0x3] }
  0xae   : > { %3327 = vmatprep.subr.msk.bf16.mxu0 %vm505_vm0, %v2928_v18  ;;  %v2162_v56 = vrot.slane %v2160_v2, 5  ;;  %v2911_v40 = vcombine.low %v4512_v51, %v4511_v45  ;;  %v2052_v6 = vrot.slane %v2051_v47, 4  ;;  %v2056_v43 = vrot.slane %v2054_v12, 5  ;;  %v4514_v61 = vld [vmem:[#allocation12_spill] sm:$0xff]  ;;  %v4525_v12 = vld [vmem:[#allocation21_spill] sm:$0xff]  ;;  %v4527_v21 = vld [vmem:[#allocation27_spill] sm:$0xff] }
  0xaf   : > { %v2286_v58 = vsel %vm505_vm0, %v2928_v18, 0  ;;  %v2166_v11 = vshll.u32 %v3062_v30, 16  ;;  %v4515_v44 = vcombine.low %v4513_v53, %v4514_v61  ;;  %v3063_v57 = vpack.c.bf16 %v4520_v8, %v4519_v48  ;;  %v4524_v59 = vld [vmem:[#allocation20_spill] sm:$0xff]  ;;  %v216_v61 = vld [vmem:[%s3415_s30 + $0x238] sm:$0x1] }
  0xb0   : > { %v2163_v32 = vor.u32 %v2162_v56, %v2159_v0  ;;  %v2057_v18 = vsel %vm3618_vm12, %v2052_v6, %v2056_v43  ;;  %v341_v2 = vmul.f32 0.2, %v197_v50  ;;  %vm269_vm6 = vcmp.ge.f32.partialorder %v197_v50, 0.0  ;;  %v4526_v39 = vld [vmem:[#allocation24_spill] sm:$0xff]  ;;  %v198_v56 = vld [vmem:[%s3415_s30 + $0x1a8] sm:$0x1] }
  0xb1   : > { %v2168_v37 = vrot.slane %v2166_v11, 5  ;;  %v215_v0 = vld [vmem:[%s3415_s30 + $0x230] sm:$0xff]  ;;  %v2494_v51 = vsel %vm505_vm0, %v2948_v7, 0  ;;  %v342_v6 = vmul.f32 0.2, %v198_v56  ;;  %vm270_vm8 = vcmp.ge.f32.partialorder %v198_v56, 0.0 }
  0xb2   : > { %3248 = vmatmul.mubr.msk.bf16.vlgmr.msra.gmra.mxu1 %vm492_vm1, %v4507_v62  ;;  %v2164_v5 = vrot.slane %v2163_v32, 4  ;;  %v4522_v62 = vld [vmem:[#allocation14_spill] sm:$0xff]  ;;  %v413_v17 = vsel %vm269_vm6, %v197_v50, %v341_v2  ;;  %vm287_vm7 = vcmp.ge.f32.partialorder %v215_v0, 0.0  ;;  %vm288_vm9 = vcmp.ge.f32.partialorder %v216_v61, 0.0  ;;  %v4534_v48 = vld [vmem:[#allocation25_spill] sm:$0xff] }
  0xb3   : > { %3266 = vmatpush3.bf16.msra.mxu1 %v2190_v27  ;;  %3251 = vmatprep.mubr.msk.bf16.mxu1 %vm492_vm1, %v3057_v38  ;;  %v4516_v27 = vld [vmem:[#allocation19_spill] sm:$0xff]  ;;  %v4523_v52 = vcombine.low %v4521_v34, %v4522_v62  ;;  %v3071_v45 = vpack.c.bf16 %v413_v17, %v413_v17  ;;  %v4529_v43 = vld [vmem:[#allocation26_spill] sm:$0xff]  ;;  %v2951_v36 = vcombine.low %v4050_v35, %v4084_v28 }
  0xb4   : > { %3242 = vmatmul.mubr.msk.bf16.gmra.mxu0 %vm492_vm1, %v3054_v63  ;;  %3328 = vmatprep.subr.msk.bf16.mxu1 %vm505_vm0, %v2937_v46  ;;  %v4517_v38 = vld [vmem:[#allocation15_spill] sm:$0xff]  ;;  %v2912_v63 = vcombine.low %v4518_v33, %v2057_v18  ;;  %v414_v18 = vsel %vm270_vm8, %v198_v56, %v342_v6  ;;  %v2962_v28 = vcombine.low %v4071_v3, %v4102_v60 }
  0xb5   : > { %3257 = vmatprep.mubr.msk.bf16.mxu0 %vm492_vm1, %v2909_v31  ;;  %v2922_v20 = vcombine.low %v4517_v38, %v4516_v27  ;;  %v2382_v31 = vsel %vm505_vm0, %v2937_v46, 0  ;;  %v2169_v46 = vsel %vm3618_vm12, %v2164_v5, %v2168_v37  ;;  %v2461_v11 = vshrl.u32 %v3071_v45, 16  ;;  %v4532_v38 = vld [vmem:[#allocation30_spill] sm:$0xff] }
  0xb6   : > { %v2923_v47 = vcombine.low %v4524_v59, %v2169_v46  ;;  %v2464_v53 = vshll.u32 %v3071_v45, 16  ;;  %v2606_v27 = vsel %vm505_vm0, %v2959_v23, 0  ;;  %v360_v5 = vmul.f32 0.2, %v216_v61 }
  0xb7   : > { %v2463_v37 = vrot.slane %v2461_v11, 4  ;;  %v3072_v33 = vpack.c.bf16 %v414_v18, %v414_v18 }
  0xb8   : > { %v432_v50 = vsel %vm288_vm9, %v216_v61, %v360_v5 }
  0xb9   : > { %v2470_v62 = vshll.u32 %v3072_v33, 16 }
  0xba   : > { %3252 = vmatmul.mubr.msk.bf16.gmra.mxu1 %vm492_vm1, %v3058_v4  ;;  %v3067_v4 = vpack.c.bf16 %v4526_v39, %v4525_v12 }
  0xbb   : > { %3267 = vmatprep.mubr.msk.bf16.mxu1 %vm492_vm1, %v2920_v25  ;;  %v4528_v25 = vld [vmem:[#allocation29_spill] sm:$0xff] }
  0xbc   : > { %3258 = vmatmul.mubr.msk.bf16.vlgmr.msra.gmra.mxu0 %vm492_vm1, %v4515_v44  ;;  %v3065_v30 = vpack.c.bf16 %v4528_v25, %v4527_v21 }
  0xbd   : > { %3276 = vmatpush3.bf16.msra.mxu0 %v2286_v58  ;;  %3261 = vmatprep.mubr.msk.bf16.mxu0 %vm492_vm1, %v2911_v40  ;;  %v359_v40 = vmul.f32 0.2, %v215_v0  ;;  %v4530_v58 = vld [vmem:[#allocation23_spill] sm:$0xff] }
  0xbe   : > { %3329 = vmatprep.subr.msk.bf16.mxu0 %vm505_vm0, %v2948_v7  ;;  %v4531_v32 = vpack.c.bf16 %v4529_v43, %v4530_v58 }
  0xbf   : > { %v431_v44 = vsel %vm287_vm7, %v215_v0, %v359_v40 }
  0xc0   : > { %v3073_v7 = vpack.c.bf16 %v431_v44, %v431_v44 }
  0xc2   : > { %3268 = vmatmul.mubr.msk.bf16.vlgmr.msra.gmra.mxu1 %vm492_vm1, %v4523_v52  ;;  %v4536_v52 = vld [vmem:[#allocation31_spill] sm:$0xff] }
  0xc3   : > { %3286 = vmatpush3.bf16.msra.mxu1 %v2382_v31  ;;  %3271 = vmatprep.mubr.msk.bf16.mxu1 %vm492_vm1, %v2922_v20  ;;  %v3066_v20 = vpack.c.bf16 %v413_v17, %v4532_v38  ;;  %v2466_v31 = vrot.slane %v2464_v53, 5  ;;  %v3070_v46 = vpack.c.bf16 %v431_v44, %v4536_v52 }
  0xc4   : > { %3262 = vmatmul.mubr.msk.bf16.gmra.mxu0 %vm492_vm1, %v2912_v63  ;;  %3330 = vmatprep.subr.msk.bf16.mxu1 %vm505_vm0, %v2959_v23  ;;  %v4533_v63 = vld [vmem:[#allocation28_spill] sm:$0xff]  ;;  %v2576_v23 = vshll.u32 %v3073_v7, 16  ;;  %vm2681_vm0 = vcmask 64512  }
  0xc5   : > { %3277 = vmatprep.mubr.msk.bf16.mxu0 %vm492_vm1, %v3063_v57  ;;  %v4535_v8 = vpack.c.bf16 %v4533_v63, %v4534_v48  ;;  %v2573_v57 = vshrl.u32 %v3073_v7, 16  ;;  %v2467_v34 = vor.u32 %v2466_v31, %v2463_v37 }
  0xc6   : > { %v2578_v59 = vrot.slane %v2576_v23, 5 }
  0xc7   : > { %v2575_v2 = vrot.slane %v2573_v57, 4  ;;  %v2468_v14 = vrot.slane %v2467_v34, 4 }
  0xc9   : > { %v2579_v10 = vor.u32 %v2578_v59, %v2575_v2 }
  0xca   : > { %3272 = vmatmul.mubr.msk.bf16.gmra.mxu1 %vm492_vm1, %v2923_v47  ;;  %v3074_v47 = vpack.c.bf16 %v432_v50, %v432_v50 }
  0xcb   : > { %3287 = vmatprep.mubr.msk.bf16.mxu1 %vm492_vm1, %v3067_v4 }
  0xcc   : > { %3278 = vmatmul.mubr.msk.bf16.vlgmr.msra.gmra.mxu0 %vm492_vm1, %v4531_v32  ;;  %v2582_v22 = vshll.u32 %v3074_v47, 16 }
  0xcd   : > { %3296 = vmatpush3.bf16.msra.mxu0 %v2494_v51  ;;  %3281 = vmatprep.mubr.msk.bf16.mxu0 %vm492_vm1, %v3065_v30 }
  0xce   : > { %v2584_v12 = vrot.slane %v2582_v22, 5 }
  0xd2   : > { %3288 = vmatmul.mubr.msk.bf16.vlgmr.msra.gmra.mxu1 %vm492_vm1, %v4535_v8 }
  0xd3   : > { %3306 = vmatpush3.bf16.msra.mxu1 %v2606_v27  ;;  %3291 = vmatprep.mubr.msk.bf16.mxu1 %vm492_vm1, %v3069_v26  ;;  %v2472_v26 = vrot.slane %v2470_v62, 5 }
  0xd4   : > { %3282 = vmatmul.mubr.msk.bf16.gmra.mxu0 %vm492_vm1, %v3066_v20 }
  0xd5   : > { %3297 = vmatprep.mubr.msk.bf16.mxu0 %vm492_vm1, %v2949_v54  ;;  %v2473_v35 = vsel %vm3618_vm12, %v2468_v14, %v2472_v26  ;;  %v2580_v54 = vrot.slane %v2579_v10, 4 }
  0xd6   : > { %v2952_v41 = vcombine.low %v4088_v13, %v2473_v35 }
  0xd7   : > { %v2585_v19 = vsel %vm3618_vm12, %v2580_v54, %v2584_v12 }
  0xd8   : > { %v2963_v3 = vcombine.low %v4106_v24, %v2585_v19 }
  0xda   : > { %3292 = vmatmul.mubr.msk.bf16.gmra.mxu1 %vm492_vm1, %v3070_v46 }
  0xdb   : > { %3307 = vmatprep.mubr.msk.bf16.mxu1 %vm492_vm1, %v2960_v55 }
  0xdc   : > { %3298 = vmatmul.mubr.msk.bf16.vlgmr.msra.gmra.mxu0 %vm492_vm1, %v2950_v29 }
  0xdd   : > { %3301 = vmatprep.mubr.msk.bf16.mxu0 %vm492_vm1, %v2951_v36 }
  0xe2   : > { %3308 = vmatmul.mubr.msk.bf16.vlgmr.msra.gmra.mxu1 %vm492_vm1, %v2961_v1 }
  0xe3   : > { %3311 = vmatprep.mubr.msk.bf16.mxu1 %vm492_vm1, %v2962_v28 }
  0xe4   : > { %3302 = vmatmul.mubr.msk.bf16.gmra.mxu0 %vm492_vm1, %v2952_v41 }
  0xe5   : > { %v3159_v16 = vpop.f32.mrf.mxu0 }
  0xe7   : > { %v3169_v15 = vpop.f32.mrf.mxu1  ;;  %v543_v29 = vpop.f32.mrf.mxu0 }
  0xe8   : > { %v652_v60 = vadd.f32 %v3169_v15, %v3159_v16 }
  0xe9   : > { %v643_v55 = vpop.f32.mrf.mxu1  ;;  %v3160_v13 = vpop.f32.mrf.mxu0 }
  0xea   : > { %v644_v39 = vadd.f32 %v643_v55, %v543_v29  ;;  %3312 = vmatmul.mubr.msk.bf16.gmra.mxu1 %vm492_vm1, %v2963_v3 }
  0xeb   : > { %v3170_v4 = vpop.f32.mrf.mxu1  ;;  %v546_v9 = vpop.f32.mrf.mxu0 }
  0xec   : > { %v655_v42 = vadd.f32 %v3170_v4, %v3160_v13 }
  0xed   : > { %v646_v1 = vpop.f32.mrf.mxu1 }
  0xee   : > { %v647_v0 = vadd.f32 %v646_v1, %v546_v9 }
  0xf4   : > { %v3163_v49 = vpop.f32.mrf.mxu0 }
  0xf6   : > { %v3173_v56 = vpop.f32.mrf.mxu1  ;;  %v559_v17 = vpop.f32.mrf.mxu0 }
  0xf7   : > { %v668_v21 = vadd.f32 %v3173_v56, %v3163_v49 }
  0xf8   : > { %v659_v25 = vpop.f32.mrf.mxu1  ;;  %v3164_v30 = vpop.f32.mrf.mxu0 }
  0xf9   : > { %v660_v45 = vadd.f32 %v659_v25, %v559_v17 }
  0xfa   : > { %v3174_v51 = vpop.f32.mrf.mxu1  ;;  %v562_v24 = vpop.f32.mrf.mxu0 }
  0xfb   : > { %v671_v40 = vadd.f32 %v3174_v51, %v3164_v30 }
  0xfc   : > { %v662_v6 = vpop.f32.mrf.mxu1 }
  0xfd   : > { %v663_v43 = vadd.f32 %v662_v6, %v562_v24 }
 0x10a   : > { %v3179_v58 = vpop.f32.mrf.mxu0 }
 0x10b   : > { %v909_v32 = vadd.f32 %v3179_v58, %v652_v60 }
 0x10c   : > { %v876_v11 = vpop.f32.mrf.mxu0 }
 0x10d   : > { %v907_v53 = vadd.f32 %v876_v11, %v644_v39 }
 0x10e   : > { %v3189_v61 = vpop.f32.mrf.mxu1  ;;  %v3180_v44 = vpop.f32.mrf.mxu0 }
 0x10f   : > { %v4253_v18 = vadd.f32 %v3189_v61, %v909_v32  ;;  %v910_v7 = vadd.f32 %v3180_v44, %v655_v42 }
 0x110   : > { %v1114_v27 = vpop.f32.mrf.mxu1  ;;  %v879_v38 = vpop.f32.mrf.mxu0 }
 0x111   : > { %v4255_v20 = vadd.f32 %v1114_v27, %v907_v53  ;;  %v908_v5 = vadd.f32 %v879_v38, %v647_v0 }
 0x112   : > { %v3190_v37 = vpop.f32.mrf.mxu1 }
 0x113   : > { %v4257_v31 = vadd.f32 %v3190_v37, %v910_v7 }
 0x114   : > { %v1117_v33 = vpop.f32.mrf.mxu1 }
 0x115   : > { %v4259_v63 = vadd.f32 %v1117_v33, %v908_v5 }
 0x11d   : > { %v3183_v48 = vpop.f32.mrf.mxu0 }
 0x11e   : > { %v913_v8 = vadd.f32 %v3183_v48, %v668_v21 }
 0x11f   : > { %v892_v57 = vpop.f32.mrf.mxu0 }
 0x120   : > { %v911_v23 = vadd.f32 %v892_v57, %v660_v45 }
 0x121   : > { %v3184_v50 = vpop.f32.mrf.mxu0  ;;  %v3193_v34 = vpop.f32.mrf.mxu1 }
 0x122   : > { %v914_v62 = vadd.f32 %v3184_v50, %v671_v40  ;;  %v4261_v52 = vadd.f32 %v3193_v34, %v913_v8 }
 0x123   : > { %v895_v46 = vpop.f32.mrf.mxu0  ;;  %v1130_v2 = vpop.f32.mrf.mxu1 }
 0x124   : > { %v912_v59 = vadd.f32 %v895_v46, %v663_v43  ;;  %v4263_v47 = vadd.f32 %v1130_v2, %v911_v23 }
 0x125   : > { %v3194_v36 = vpop.f32.mrf.mxu1 }
 0x126   : > { %v4265_v14 = vadd.f32 %v3194_v36, %v914_v62 }
 0x127   : > { %v1133_v26 = vpop.f32.mrf.mxu1  ;;  %v3199_v22 = vpop.f32.mrf.mxu0 }
 0x128   : > { %v4267_v10 = vadd.f32 %v1133_v26, %v912_v59  ;;  %v1257_v46 = vadd.f32 %v3199_v22, %v4253_v18 }
 0x129   : > { %v1224_v35 = vpop.f32.mrf.mxu0 }
 0x12a   : > { %v1255_v36 = vadd.f32 %v1224_v35, %v4255_v20 }
 0x12b   : > { %v3209_v28 = vpop.f32.mrf.mxu1  ;;  %v3200_v54 = vpop.f32.mrf.mxu0 }
 0x12d   : > { %v1334_v12 = vpop.f32.mrf.mxu1  ;;  %v1227_v41 = vpop.f32.mrf.mxu0 }
 0x12e   : > { %v1256_v18 = vadd.f32 %v1227_v41, %v4259_v63 }
 0x12f   : > { %v3210_v19 = vpop.f32.mrf.mxu1 }
 0x131   : > { %v4269_v15 = vpop.f32.mrf.mxu1 }
 0x136   : > { %v3203_v16 = vpop.f32.mrf.mxu0 }
 0x137   : > { %v1261_v35 = vadd.f32 %v3203_v16, %v4261_v52 }
 0x138   : > { %v4271_v29 = vpop.f32.mrf.mxu0 }
 0x13a   : > { %v4275_v60 = vpop.f32.mrf.mxu0 }
 0x13b   : > { %v1262_v41 = vadd.f32 %v4275_v60, %v4265_v14 }
 0x13c   : > { %v4279_v13 = vpop.f32.mrf.mxu0 }
 0x13d   : > { %v4273_v3 = vpop.f32.mrf.mxu1 }
 0x13e   : > { %v1371_v52 = vadd.f32 %v4273_v3, %v1261_v35 }
 0x13f   : > { %v4277_v55 = vpop.f32.mrf.mxu1 }
 0x141   : > { %v4281_v39 = vpop.f32.mrf.mxu1 }
 0x143   : > { %v4283_v9 = vpop.f32.mrf.mxu1 }
 0x151   : > { %v3219_v4 = vpop.f32.mrf.mxu0 }
 0x153   : > { %v1572_v42 = vpop.f32.mrf.mxu0 }
 0x155   : > { %v3229_v1 = vpop.f32.mrf.mxu1  ;;  %v3220_v0 = vpop.f32.mrf.mxu0 }
 0x157   : > { %v1810_v49 = vpop.f32.mrf.mxu1  ;;  %v1575_v56 = vpop.f32.mrf.mxu0 }
 0x159   : > { %v4285_v17 = vpop.f32.mrf.mxu1 }
 0x15b   : > { %v4291_v30 = vpop.f32.mrf.mxu1 }
 0x164   : > { %v4287_v21 = vpop.f32.mrf.mxu0 }
 0x165   : > { %v1609_v14 = vadd.f32 %v4287_v21, %v1371_v52 }
 0x166   : > { %v4289_v25 = vpop.f32.mrf.mxu0 }
 0x168   : > { %v4293_v45 = vpop.f32.mrf.mxu0 }
 0x16a   : > { %v4295_v51 = vpop.f32.mrf.mxu0  ;;  %v4297_v24 = vpop.f32.mrf.mxu1 }
 0x16b   : > { %v1847_v21 = vadd.f32 %v4297_v24, %v1609_v14 }
 0x16c   : > { %v3239_v40 = vpop.f32.mrf.mxu0  ;;  %v4299_v6 = vpop.f32.mrf.mxu1 }
 0x16e   : > { %v1906_v43 = vpop.f32.mrf.mxu0  ;;  %v4301_v58 = vpop.f32.mrf.mxu1 }
 0x170   : > { %v3240_v32 = vpop.f32.mrf.mxu0  ;;  %v4303_v11 = vpop.f32.mrf.mxu1 }
 0x171   : > { %4537 = vst [vmem:[#allocation8_spill] sm:$0xff] %v4303_v11 }
 0x172   : > { %v4305_v53 = vpop.f32.mrf.mxu0  ;;  %v3249_v61 = vpop.f32.mrf.mxu1 }
 0x174   : > { %v4307_v44 = vpop.f32.mrf.mxu1  ;;  %v4309_v7 = vpop.f32.mrf.mxu0 }
 0x176   : > { %v4311_v27 = vpop.f32.mrf.mxu1  ;;  %v4313_v38 = vpop.f32.mrf.mxu0 }
 0x178   : > { %v4315_v5 = vpop.f32.mrf.mxu1  ;;  %v4317_v37 = vpop.f32.mrf.mxu0 }
 0x179   : > { %4538 = vst [vmem:[#allocation6_spill] sm:$0xff] %v4317_v37  ;;  %v1365_v37 = vadd.f32 %v1334_v12, %v1255_v36 }
 0x17a   : > { %v4319_v33 = vpop.f32.mrf.mxu1  ;;  %v4321_v48 = vpop.f32.mrf.mxu0 }
 0x17b   : > { %4539 = vst [vmem:[#allocation5_spill] sm:$0xff] %v4319_v33  ;;  %4540 = vst [vmem:[#allocation3_spill] sm:$0xff] %v4321_v48 }
 0x17c   : > { %v4323_v8 = vpop.f32.mrf.mxu1  ;;  %v3259_v57 = vpop.f32.mrf.mxu0 }
 0x17d   : > { %4541 = vst [vmem:[#allocation2_spill] sm:$0xff] %v4323_v8  ;;  %v1367_v8 = vadd.f32 %v3209_v28, %v1257_v46 }
 0x17e   : > { %v4325_v23 = vpop.f32.mrf.mxu1  ;;  %v2114_v50 = vpop.f32.mrf.mxu0 }
 0x17f   : > { %4542 = vst [vmem:[#allocation4_spill] sm:$0xff] %v4325_v23  ;;  %v1258_v23 = vadd.f32 %v3200_v54, %v4257_v31  ;;  %v1605_v22 = vadd.f32 %v3219_v4, %v1367_v8  ;;  %v1366_v31 = vadd.f32 %v4269_v15, %v1256_v18  ;;  %v1259_v54 = vadd.f32 %v4271_v29, %v4263_v47 }
 0x180   : > { %v4327_v34 = vpop.f32.mrf.mxu1  ;;  %v4329_v62 = vpop.f32.mrf.mxu0  ;;  %v1260_v8 = vadd.f32 %v4279_v13, %v4267_v10 }
 0x181   : > { %4543 = vst [vmem:[#allocation10_spill] sm:$0xff] %v4327_v34  ;;  %v1368_v20 = vadd.f32 %v3210_v19, %v1258_v23  ;;  %v1843_v12 = vadd.f32 %v3229_v1, %v1605_v22  ;;  %v1369_v47 = vadd.f32 %v4277_v55, %v1259_v54  ;;  %v1372_v1 = vadd.f32 %v4281_v39, %v1262_v41 }
 0x182   : > { %v4332_v2 = vpop.f32.mrf.mxu1  ;;  %v4334_v59 = vpop.f32.mrf.mxu0 }
 0x183   : > { %4544 = vst [vmem:[#allocation7_spill] sm:$0xff] %v4334_v59  ;;  %v1606_v63 = vadd.f32 %v3220_v0, %v1368_v20  ;;  %v1610_v55 = vadd.f32 %v4293_v45, %v1372_v1  ;;  %v4547_v20 = vld [vmem:[#allocation8_spill] sm:$0xff] }
 0x184   : > { %v4337_v26 = vpop.f32.mrf.mxu1  ;;  %v4339_v48 = vpop.f32.mrf.mxu0 }
 0x185   : > { %4545 = vst [vmem:[#allocation16_spill] sm:$0xff] %v4337_v26  ;;  %4546 = vst [vmem:[#allocation13_spill] sm:$0xff] %v4339_v48  ;;  %v1603_v26 = vadd.f32 %v1572_v42, %v1365_v37  ;;  %v1604_v42 = vadd.f32 %v1575_v56, %v1366_v31  ;;  %v1939_v37 = vadd.f32 %v3239_v40, %v1843_v12 }
 0x186   : > { %v4342_v33 = vpop.f32.mrf.mxu1  ;;  %v4344_v34 = vpop.f32.mrf.mxu0  ;;  %v1844_v29 = vadd.f32 %v4285_v17, %v1606_v63  ;;  %v1607_v56 = vadd.f32 %v4289_v25, %v1369_v47  ;;  %v1370_v40 = vadd.f32 %v4283_v9, %v1260_v8  ;;  %v1943_v9 = vadd.f32 %v4309_v7, %v1847_v21  ;;  %v4549_v7 = vld [vmem:[#allocation5_spill] sm:$0xff]  ;;  %v4555_v14 = vld [vmem:[#allocation4_spill] sm:$0xff] }
 0x187   : > { %v1841_v16 = vadd.f32 %v1810_v49, %v1603_v26  ;;  %v1842_v49 = vadd.f32 %v4291_v30, %v1604_v42  ;;  %v2035_v10 = vadd.f32 %v3249_v61, %v1939_v37  ;;  %v1848_v61 = vadd.f32 %v4301_v58, %v1610_v55 }
 0x188   : > { %v4347_v11 = vpop.f32.mrf.mxu1  ;;  %v4349_v59 = vpop.f32.mrf.mxu0  ;;  %v1940_v13 = vadd.f32 %v3240_v32, %v1844_v29  ;;  %v1608_v26 = vadd.f32 %v4295_v51, %v1370_v40  ;;  %v1845_v25 = vadd.f32 %v4299_v6, %v1607_v56  ;;  %v4548_v6 = vld [vmem:[#allocation6_spill] sm:$0xff] }
 0x189   : > { %v1937_v60 = vadd.f32 %v1906_v43, %v1841_v16  ;;  %v1938_v39 = vadd.f32 %v4305_v53, %v1842_v49  ;;  %v2147_v36 = vadd.f32 %v3259_v57, %v2035_v10  ;;  %v1944_v31 = vadd.f32 %v4548_v6, %v1848_v61  ;;  %v4556_v40 = vld [vmem:[#allocation10_spill] sm:$0xff] }
 0x18a   : > { %v4352_v48 = vpop.f32.mrf.mxu1  ;;  %v4354_v28 = vpop.f32.mrf.mxu0  ;;  %v2036_v32 = vadd.f32 %v4311_v27, %v1940_v13  ;;  %v1941_v53 = vadd.f32 %v4313_v38, %v1845_v25  ;;  %v1846_v35 = vadd.f32 %v4547_v20, %v1608_v26  ;;  %v4551_v63 = vld [vmem:[#allocation7_spill] sm:$0xff] }
 0x18b   : > { %v2033_v43 = vadd.f32 %v4307_v44, %v1937_v60  ;;  %v2034_v44 = vadd.f32 %v4315_v5, %v1938_v39  ;;  %v2259_v57 = vadd.f32 %v4332_v2, %v2147_v36  ;;  %v4552_v5 = vld [vmem:[#allocation3_spill] sm:$0xff]  ;;  %v4553_v2 = vld [vmem:[#allocation2_spill] sm:$0xff]  ;;  %v2040_v60 = vadd.f32 %v4555_v14, %v1944_v31 }
 0x18c   : > { %v4361_v4 = vpop.f32.mrf.mxu1  ;;  %v3279_v19 = vpop.f32.mrf.mxu0  ;;  %v2148_v51 = vadd.f32 %v4329_v62, %v2036_v32  ;;  %v4550_v12 = vld [vmem:[#allocation16_spill] sm:$0xff]  ;;  %v1942_v16 = vadd.f32 %v4552_v5, %v1846_v35  ;;  %v2037_v37 = vadd.f32 %v4553_v2, %v1941_v53  ;;  %v4554_v8 = vld [vmem:[#allocation13_spill] sm:$0xff] }
 0x18d   : > { %v2145_v45 = vadd.f32 %v2114_v50, %v2033_v43  ;;  %v2039_v50 = vadd.f32 %v4549_v7, %v1943_v9  ;;  %v2146_v41 = vadd.f32 %v4551_v63, %v2034_v44  ;;  %v2355_v52 = vadd.f32 %v3279_v19, %v2259_v57 }
 0x18e   : > { %v4366_v15 = vpop.f32.mrf.mxu1  ;;  %v2322_v23 = vpop.f32.mrf.mxu0  ;;  %v2260_v62 = vadd.f32 %v4342_v33, %v2148_v51  ;;  %v2149_v19 = vadd.f32 %v4344_v34, %v2037_v37  ;;  %v2038_v55 = vadd.f32 %v4556_v40, %v1942_v16  ;;  %v2152_v21 = vadd.f32 %v4349_v59, %v2040_v60 }
 0x18f   : > { %v2257_v58 = vadd.f32 %v4550_v12, %v2145_v45  ;;  %v2151_v47 = vadd.f32 %v4554_v8, %v2039_v50  ;;  %v2258_v56 = vadd.f32 %v4347_v11, %v2146_v41 }
 0x190   : > { %v4372_v0 = vpop.f32.mrf.mxu1  ;;  %v3280_v3 = vpop.f32.mrf.mxu0  ;;  %v2150_v25 = vadd.f32 %v4354_v28, %v2038_v55  ;;  %v2261_v34 = vadd.f32 %v4361_v4, %v2149_v19  ;;  %v2264_v45 = vadd.f32 %v4366_v15, %v2152_v21 }
 0x191   : > { %v2353_v29 = vadd.f32 %v2322_v23, %v2257_v58  ;;  %v2356_v13 = vadd.f32 %v3280_v3, %v2260_v62  ;;  %v2263_v39 = vadd.f32 %v4352_v48, %v2151_v47 }
 0x192   : > { %v3289_v46 = vpop.f32.mrf.mxu1  ;;  %v2325_v17 = vpop.f32.mrf.mxu0  ;;  %v2262_v4 = vadd.f32 %v4372_v0, %v2150_v25 }
 0x193   : > { %v2451_v10 = vadd.f32 %v3289_v46, %v2355_v52  ;;  %v2354_v36 = vadd.f32 %v2325_v17, %v2258_v56 }
 0x194   : > { %v2418_v30 = vpop.f32.mrf.mxu1  ;;  %v3283_v18 = vpop.f32.mrf.mxu0 }
 0x195   : > { %v2449_v23 = vadd.f32 %v2418_v30, %v2353_v29  ;;  %v2359_v3 = vadd.f32 %v3283_v18, %v2263_v39 }
 0x196   : > { %v3290_v22 = vpop.f32.mrf.mxu1  ;;  %v2338_v24 = vpop.f32.mrf.mxu0 }
 0x197   : > { %v2452_v46 = vadd.f32 %v3290_v22, %v2356_v13  ;;  %v2357_v28 = vadd.f32 %v2338_v24, %v2261_v34 }
 0x198   : > { %v2421_v27 = vpop.f32.mrf.mxu1  ;;  %v3284_v54 = vpop.f32.mrf.mxu0 }
 0x199   : > { %v2450_v17 = vadd.f32 %v2421_v27, %v2354_v36  ;;  %v2360_v44 = vadd.f32 %v3284_v54, %v2264_v45 }
 0x19a   : > { %v3293_v38 = vpop.f32.mrf.mxu1  ;;  %v2341_v42 = vpop.f32.mrf.mxu0 }
 0x19b   : > { %v2455_v15 = vadd.f32 %v3293_v38, %v2359_v3  ;;  %v2358_v6 = vadd.f32 %v2341_v42, %v2262_v4 }
 0x19c   : > { %v2434_v1 = vpop.f32.mrf.mxu1  ;;  %v3299_v49 = vpop.f32.mrf.mxu0 }
 0x19d   : > { %v2563_v26 = vadd.f32 %v3299_v49, %v2451_v10  ;;  %v2453_v35 = vadd.f32 %v2434_v1, %v2357_v28 }
 0x19e   : > { %v3294_v43 = vpop.f32.mrf.mxu1  ;;  %v2530_v33 = vpop.f32.mrf.mxu0 }
 0x19f   : > { %v2561_v9 = vadd.f32 %v2530_v33, %v2449_v23  ;;  %v2456_v7 = vadd.f32 %v3294_v43, %v2360_v44 }
 0x1a0   : > { %v2437_v32 = vpop.f32.mrf.mxu1  ;;  %v3300_v11 = vpop.f32.mrf.mxu0 }
 0x1a1   : > { %v2564_v61 = vadd.f32 %v3300_v11, %v2452_v46  ;;  %v2454_v63 = vadd.f32 %v2437_v32, %v2358_v6 }
 0x1a2   : > { %v3309_v48 = vpop.f32.mrf.mxu1  ;;  %v2533_v59 = vpop.f32.mrf.mxu0 }
 0x1a3   : > { %v2675_v30 = vadd.f32 %v3309_v48, %v2563_v26  ;;  %v2562_v57 = vadd.f32 %v2533_v59, %v2450_v17 }
 0x1a4   : > { %v2642_v18 = vpop.f32.mrf.mxu1  ;;  %v3303_v22 = vpop.f32.mrf.mxu0 }
 0x1a5   : > { %2684 = vst.msk [vmem:[%s4412_s24 + $0x10] sm:$0xff] %vm2681_vm0, %v2675_v30  ;;  %v2673_v53 = vadd.f32 %v2642_v18, %v2561_v9  ;;  %v2567_v31 = vadd.f32 %v3303_v22, %v2455_v15 }
 0x1a6   : > { %v3310_v51 = vpop.f32.mrf.mxu1  ;;  %v2546_v20 = vpop.f32.mrf.mxu0 }
 0x1a7   : > { %2682 = vst.msk [vmem:[%s4412_s24] sm:$0xff] %vm2681_vm0, %v2673_v53  ;;  %v2676_v24 = vadd.f32 %v3310_v51, %v2564_v61  ;;  %v2565_v50 = vadd.f32 %v2546_v20, %v2453_v35 }
 0x1a8   : > { %v2645_v0 = vpop.f32.mrf.mxu1  ;;  %v3304_v27 = vpop.f32.mrf.mxu0 }
 0x1a9   : > { %2685 = vst.msk [vmem:[%s4412_s24 + $0x18] sm:$0xff] %vm2681_vm0, %v2676_v24  ;;  %v2674_v54 = vadd.f32 %v2645_v0, %v2562_v57  ;;  %v2568_v52 = vadd.f32 %v3304_v27, %v2456_v7 }
 0x1aa   : > { %v3313_v12 = vpop.f32.mrf.mxu1  ;;  %v2549_v58 = vpop.f32.mrf.mxu0 }
 0x1ab   : > { %2683 = vst.msk [vmem:[%s4412_s24 + $0x8] sm:$0xff] %vm2681_vm0, %v2674_v54  ;;  %v2679_v41 = vadd.f32 %v3313_v12, %v2567_v31  ;;  %v2566_v38 = vadd.f32 %v2549_v58, %v2454_v63 }
 0x1ac   : > { %v2658_v5 = vpop.f32.mrf.mxu1 }
 0x1ad   : > { %2688 = vst.msk [vmem:[%s4412_s24 + $0x30] sm:$0xff] %vm2681_vm0, %v2679_v41  ;;  %v2677_v16 = vadd.f32 %v2658_v5, %v2565_v50 }
 0x1ae   : > { %v3314_v42 = vpop.f32.mrf.mxu1 }
 0x1af   : > { %2686 = vst.msk [vmem:[%s4412_s24 + $0x20] sm:$0xff] %vm2681_vm0, %v2677_v16  ;;  %v2680_v2 = vadd.f32 %v3314_v42, %v2568_v52 }
 0x1b0   : > { %v2661_v37 = vpop.f32.mrf.mxu1 }
 0x1b1   : > { %2689 = vst.msk [vmem:[%s4412_s24 + $0x38] sm:$0xff] %vm2681_vm0, %v2680_v2  ;;  %v2678_v62 = vadd.f32 %v2661_v37, %v2566_v38 }
 0x1b3   : > { %2687 = vst.msk [vmem:[%s4412_s24 + $0x28] sm:$0xff] %vm2681_vm0, %v2678_v62 }
 0x1b4 PF: > { %s12_s9 = sadd.s32 1, %s3346_s9  }
 0x1b5   : > { %p9_p4 = scmp.ge.s32.totalorder %s12_s9, 4  }
 0x1b7   :  { %11 = sbr.rel (!%p9_p4) target bundleno = 1 (0x1), region = 73 }

</bundles_post_ra>
